<compile_context>
chip_gen: v6e
topology: v6e:2x2x1
jax: 0.10.0
libtpu: 0.0.40
codegen_flags: <defaults>
</compile_context>

<pallas_src>
import jax
import jax.numpy as jnp
from jax.experimental import pallas as pl
from jax.experimental.pallas import tpu as pltpu


def _round_up(n, m):
    return ((n + m - 1) // m) * m


# ---------------------------------------------------------------------------
# Kernel
# ---------------------------------------------------------------------------
def lenet_kernel(x_ref, w1_ref, b1_ref, w2_ref, b2_ref,
                 wf1_ref, bf1_ref, wf2_ref, bf2_ref, out_ref):
    TB = x_ref.shape[1]                        # images in this batch tile

    # ---- conv1: ONE (24*TB, 140) @ (140, 512) bf16 MXU matmul (f32 acc).
    # Row r = (i_parity*12 + h)*TB + b  with conv1 output row i = 2*h + parity;
    # columns are (w_out%2)*256 + (w_out//2)*20 + oc.
    xr = x_ref[...].reshape(24 * TB, 140)
    acc1 = jnp.dot(xr, w1_ref[...], preferred_element_type=jnp.float32)

    # ---- 2x2/2 max-pool, then bias (commutes with max) and relu, all f32.
    # W pairs live in the two 256-aligned lane halves; H pairs in the two
    # aligned sublane halves -> pure VPU maxes, no relayout.
    h1 = jnp.maximum(acc1[:, 0:240], acc1[:, 256:496])            # (24*TB, 240)
    h1 = jnp.maximum(h1[:12 * TB], h1[12 * TB:])                  # (12*TB, 240)
    h1 = jnp.maximum(h1 + b1_ref[...], 0.0).astype(jnp.bfloat16)

    # ---- conv2: 5 Toeplitz matmuls (K=240).  Rows are H-major so each ki
    # window is a contiguous aligned row slice (no gather); accumulator is
    # initialized by the first dot.
    acc2 = jnp.dot(h1[0:8 * TB], w2_ref[0],
                   preferred_element_type=jnp.float32)            # (8*TB, 512)
    for ki in range(1, 5):
        acc2 = acc2 + jnp.dot(h1[ki * TB:(ki + 8) * TB], w2_ref[ki],
                              preferred_element_type=jnp.float32)

    # ---- pool / bias / relu  => (4, TB, 200): slab = h2, row = b, lane = w2*50+oc
    h2 = jnp.maximum(acc2[:, 0:200], acc2[:, 256:456])            # (8*TB, 200)
    h2 = h2.reshape(4, 2, TB, 200)                                # leading split only
    h2 = jnp.maximum(h2[:, 0], h2[:, 1])                          # (4, TB, 200)
    h2 = jnp.maximum(h2 + b2_ref[...], 0.0).astype(jnp.bfloat16)

    # ---- fc1 as 4 accumulated (TB,200)@(200,500) matmuls (no flatten relayout).
    y1 = jnp.dot(h2[0], wf1_ref[0], preferred_element_type=jnp.float32)
    for h in range(1, 4):
        y1 = y1 + jnp.dot(h2[h], wf1_ref[h],
                          preferred_element_type=jnp.float32)
    y1 = y1 + bf1_ref[...]                                        # (TB, 500)

    # ---- fc2
    y2 = jnp.dot(y1.astype(jnp.bfloat16), wf2_ref[...],
                 preferred_element_type=jnp.float32) + bf2_ref[...]   # (TB, 10)

    # ---- softmax (exact division; the (TB,1) denominator makes approx moot).
    m = jnp.max(y2, axis=1, keepdims=True)
    e = jnp.exp(y2 - m)
    out_ref[...] = e / jnp.sum(e, axis=1, keepdims=True)


# ---------------------------------------------------------------------------
# One-time pure-JAX repacking of inputs / weights into the kernel layouts
# ---------------------------------------------------------------------------
def _prep_input(x, Bp):
    """Pack x (B,1,28,28) into conv1's fused-Toeplitz operand, bf16.

    Output (24, Bp, 140):
      dim 0: i_parity*12 + h   (conv1 output row i = 2*h + i_parity)
      dim 1: image index
      dim 2: ki*28 + w_in      (the 5 vertically shifted 28-wide rows)
    """
    B = x.shape[0]
    x2 = x[:, 0]                                                  # (B, 28, 28)
    if Bp != B:
        x2 = jnp.pad(x2, ((0, Bp - B), (0, 0), (0, 0)))
    win = jnp.concatenate([x2[:, ki:ki + 24, :] for ki in range(5)], axis=-1)
    win = win.reshape(Bp, 12, 2, 140).transpose(2, 1, 0, 3)       # (par, h, b, k)
    return win.reshape(24, Bp, 140).astype(jnp.bfloat16)


def _prep_weights(params):
    """Repack weights into banded (Toeplitz) bf16 matrices / fc blocks."""
    w1, b1, w2, b2, wf1, bf1, wf2, bf2 = params
    f = jnp.float32
    kj = jnp.arange(5)

    # conv1: fused banded matrix (140, 512).
    #   rows: ki*28 + w_in ; cols: (w_out%2)*256 + (w_out//2)*20 + oc
    #   (each 240-wide half zero-padded to the 256 lane boundary so the kernel
    #    W-pool uses 128-aligned lane slices).
    sel1 = (jnp.arange(28)[None, :, None] ==
            jnp.arange(24)[None, None, :] + kj[:, None, None]).astype(f)
    w1k = jnp.transpose(w1[:, 0], (1, 2, 0))                      # (ki, kj, oc)
    t1 = jnp.einsum('ajo,jiw->aiwo', w1k, sel1)                   # (ki,w_in,w_out,oc)
    t1 = t1.reshape(5, 28, 12, 2, 20).transpose(0, 1, 3, 2, 4)    # (ki,w_in,par,w2,oc)
    t1 = jnp.pad(t1.reshape(5, 28, 2, 240), ((0, 0), (0, 0), (0, 0), (0, 16)))
    w1c = t1.reshape(140, 512).astype(jnp.bfloat16)

    # conv2: banded matrices per vertical offset ki, (5, 240, 512).
    #   rows: w_in*20 + ic ; cols: (w_out%2)*256 + (w_out//2)*50 + oc
    sel2 = (jnp.arange(12)[None, :, None] ==
            jnp.arange(8)[None, None, :] + kj[:, None, None]).astype(f)
    w2k = jnp.transpose(w2, (2, 3, 1, 0))                         # (ki, kj, ic, oc)
    t2 = jnp.einsum('ajco,jiw->aicwo', w2k, sel2)                 # (ki,w_in,ic,w_out,oc)
    t2 = t2.reshape(5, 12, 20, 4, 2, 50).transpose(0, 1, 2, 4, 3, 5)
    t2 = jnp.pad(t2.reshape(5, 240, 2, 200), ((0, 0), (0, 0), (0, 0), (0, 56)))
    w2t = t2.reshape(5, 240, 512).astype(jnp.bfloat16)

    # fc1 split into 4 blocks (one per pooled row h2), rows ordered w2*50+oc to
    # match the kernel's conv2 slabs (PyTorch flatten rows: oc*16 + h2*4 + w2).
    wf1b = (wf1.reshape(50, 4, 4, 500).transpose(1, 2, 0, 3)
               .reshape(4, 200, 500).astype(jnp.bfloat16))

    # Conv biases tiled over the pooled W positions (added after the pool,
    # which commutes with a per-channel constant).
    b1p = jnp.tile(b1, (1, 12))                                   # (1, 240)
    b2p = jnp.tile(b2, (1, 4))                                    # (1, 200)
    return w1c, b1p, w2t, b2p, wf1b, bf1, wf2.astype(jnp.bfloat16), bf2


# ---------------------------------------------------------------------------
# Wrapper
# ---------------------------------------------------------------------------
def lenet_forward(x, params, *, tb=128):
    """Pallas LeNet forward.  `tb` = images per grid step (multiple of 16)."""
    B = x.shape[0]
    tb = max(16, min(_round_up(tb, 16), _round_up(B, 16)))
    # Prefer >= 2 grid steps when the batch allows it, so the "parallel" batch
    # axis can shard across v7x's two TensorCores.
    if B >= 32 and _round_up(B, tb) == tb:
        tb = _round_up((B + 1) // 2, 16)
    Bp = _round_up(B, tb)

    xcat = _prep_input(x, Bp)
    w1c, b1p, w2t, b2p, wf1b, bf1, wf2b, bf2 = _prep_weights(params)

    # Scoped-VMEM budget: large on v5e/v6e (128 MiB physical), clamped to 3/4
    # of physical so the same code stays safe on v7x's 64 MiB.
    try:
        vmem_cap = pltpu.get_tpu_info().vmem_capacity_bytes
    except Exception:
        vmem_cap = 64 * 1024 * 1024
    vmem_limit = int(min(96 * 1024 * 1024, (vmem_cap * 3) // 4))

    out = pl.pallas_call(
        lenet_kernel,
        out_shape=jax.ShapeDtypeStruct((Bp, 10), jnp.float32),
        grid_spec=pltpu.PrefetchScalarGridSpec(
            num_scalar_prefetch=0,
            grid=(Bp // tb,),
            # Weights/biases are grid-invariant (constant index_map): Pallas
            # elides their re-DMA across steps; at ~2 MB bf16 they are not
            # worth single-buffering even under v7x's VMEM budget.
            in_specs=[
                pl.BlockSpec((24, tb, 140), lambda b: (0, b, 0)),   # x windows
                pl.BlockSpec((140, 512), lambda b: (0, 0)),         # conv1 W (banded)
                pl.BlockSpec((1, 240), lambda b: (0, 0)),           # conv1 b (tiled)
                pl.BlockSpec((5, 240, 512), lambda b: (0, 0, 0)),   # conv2 W (banded)
                pl.BlockSpec((1, 200), lambda b: (0, 0)),           # conv2 b (tiled)
                pl.BlockSpec((4, 200, 500), lambda b: (0, 0, 0)),   # fc1 W blocks
                pl.BlockSpec((1, 500), lambda b: (0, 0)),           # fc1 b
                pl.BlockSpec((500, 10), lambda b: (0, 0)),          # fc2 W
                pl.BlockSpec((1, 10), lambda b: (0, 0)),            # fc2 b
            ],
            out_specs=pl.BlockSpec((tb, 10), lambda b: (b, 0)),
        ),
        compiler_params=pltpu.CompilerParams(
            dimension_semantics=("parallel",),
            vmem_limit_bytes=vmem_limit),
    )(xcat, w1c, b1p, w2t, b2p, wf1b, bf1, wf2b, bf2)
    return out[:B]


# ---------------------------------------------------------------------------
# Pure-JAX reference (matches the PyTorch module semantics) + init
# ---------------------------------------------------------------------------
def ref_forward(x, params):
    w1, b1, w2, b2, wf1, bf1, wf2, bf2 = params
    dn = ("NCHW", "OIHW", "NCHW")
    y = jax.lax.conv_general_dilated(x, w1, (1, 1), "VALID",
                                     dimension_numbers=dn)
    y = y + b1.reshape(1, 20, 1, 1)
    y = jax.lax.reduce_window(y, -jnp.inf, jax.lax.max,
                              (1, 1, 2, 2), (1, 1, 2, 2), "VALID")
    y = jnp.maximum(y, 0.0)
    y = jax.lax.conv_general_dilated(y, w2, (1, 1), "VALID",
                                     dimension_numbers=dn)
    y = y + b2.reshape(1, 50, 1, 1)
    y = jax.lax.reduce_window(y, -jnp.inf, jax.lax.max,
                              (1, 1, 2, 2), (1, 1, 2, 2), "VALID")
    y = jnp.maximum(y, 0.0)
    y = y.reshape(y.shape[0], -1)                     # (B, 800), NCHW flatten
    y = y @ wf1 + bf1[0]
    y = y @ wf2 + bf2[0]
    return jax.nn.softmax(y, axis=1)


def init_params(key):
    ks = jax.random.split(key, 8)

    def u(k, shape, fan_in):
        bound = 1.0 / jnp.sqrt(jnp.float32(fan_in))
        return jax.random.uniform(k, shape, jnp.float32, -bound, bound)

    w1 = u(ks[0], (20, 1, 5, 5), 1 * 5 * 5)
    b1 = u(ks[1], (1, 20), 1 * 5 * 5)
    w2 = u(ks[2], (50, 20, 5, 5), 20 * 5 * 5)
    b2 = u(ks[3], (1, 50), 20 * 5 * 5)
    wf1 = u(ks[4], (800, 500), 800)     # stored (in, out), NCHW-flatten rows
    bf1 = u(ks[5], (1, 500), 800)
    wf2 = u(ks[6], (500, 10), 500)      # stored (in, out)
    bf2 = u(ks[7], (1, 10), 500)
    return (w1, b1, w2, b2, wf1, bf1, wf2, bf2)


if __name__ == "__main__":
    key = jax.random.PRNGKey(0)
    k_param, k_x = jax.random.split(key)
    params = init_params(k_param)

    # MNIST-shaped input (28x28 is required by fc1 = Linear(4*4*50, 500)).
    x = jax.random.normal(k_x, (2, 1, 28, 28), jnp.float32)

    out = jax.block_until_ready(lenet_forward(x, params))
    ref = jax.block_until_ready(ref_forward(x, params))

    err = float(jnp.max(jnp.abs(out - ref)))
    assert out.shape == (2, 10), out.shape
    # Tolerance covers bf16 matmul inputs (f32 accumulation); observed softmax
    # error is typically well under 5e-3, 2e-2 leaves headroom.
    assert err < 2e-2, f"max abs error {err}"
    # TODO(synk): nn.CrossEntropyLoss is defined in __init__ but unused in
    # forward(); it is intentionally not implemented.
    print("KERNEL_OK")
</pallas_src>

<mosaic_0001>
module attributes {stable_mosaic.version = 11 : i64} {
  func.func @lenet_kernel(%arg0: i32, %arg1: memref<24x16x140xbf16, #tpu.memory_space<vmem>>, %arg2: memref<140x512xbf16, #tpu.memory_space<vmem>>, %arg3: memref<1x240xf32, #tpu.memory_space<vmem>>, %arg4: memref<5x240x512xbf16, #tpu.memory_space<vmem>>, %arg5: memref<1x200xf32, #tpu.memory_space<vmem>>, %arg6: memref<4x200x500xbf16, #tpu.memory_space<vmem>>, %arg7: memref<1x500xf32, #tpu.memory_space<vmem>>, %arg8: memref<500x10xbf16, #tpu.memory_space<vmem>>, %arg9: memref<1x10xf32, #tpu.memory_space<vmem>>, %arg10: memref<16x10xf32, #tpu.memory_space<vmem>>) attributes {dimension_semantics = [#tpu.dimension_semantics<parallel>], iteration_bounds = array<i64: 1>, scalar_prefetch = 0 : i64, scratch_operands = 0 : i64, tpu.core_type = #tpu.core_type<tc>, window_params = [{transform_indices = @transform_0, window_bounds = array<i64: 24, 16, 140>}, {pipeline_mode = #tpu.pipeline_mode<synchronous>, transform_indices = @transform_1, window_bounds = array<i64: 140, 512>}, {pipeline_mode = #tpu.pipeline_mode<synchronous>, transform_indices = @transform_2, window_bounds = array<i64: 1, 240>}, {pipeline_mode = #tpu.pipeline_mode<synchronous>, transform_indices = @transform_3, window_bounds = array<i64: 5, 240, 512>}, {pipeline_mode = #tpu.pipeline_mode<synchronous>, transform_indices = @transform_4, window_bounds = array<i64: 1, 200>}, {pipeline_mode = #tpu.pipeline_mode<synchronous>, transform_indices = @transform_5, window_bounds = array<i64: 4, 200, 500>}, {pipeline_mode = #tpu.pipeline_mode<synchronous>, transform_indices = @transform_6, window_bounds = array<i64: 1, 500>}, {pipeline_mode = #tpu.pipeline_mode<synchronous>, transform_indices = @transform_7, window_bounds = array<i64: 500, 10>}, {pipeline_mode = #tpu.pipeline_mode<synchronous>, transform_indices = @transform_8, window_bounds = array<i64: 1, 10>}, {transform_indices = @transform_9, window_bounds = array<i64: 16, 10>}]} {
    %c0 = arith.constant 0 : index
    %c0_0 = arith.constant 0 : index
    %c0_1 = arith.constant 0 : index
    %0 = vector.load %arg1[%c0, %c0_0, %c0_1] : memref<24x16x140xbf16, #tpu.memory_space<vmem>>, vector<24x16x140xbf16>
    %1 = vector.shape_cast %0 : vector<24x16x140xbf16> to vector<384x140xbf16>
    %c0_2 = arith.constant 0 : index
    %c0_3 = arith.constant 0 : index
    %2 = vector.load %arg2[%c0_2, %c0_3] : memref<140x512xbf16, #tpu.memory_space<vmem>>, vector<140x512xbf16>
    %cst = arith.constant dense<0.000000e+00> : vector<384x512xf32>
    %3 = tpu.matmul %1, %2, %cst {dimension_numbers = #tpu.dot_dimension_numbers<[1], [0], [0], [1], [0, 0, 1, 1], [], []>} : vector<384x140xbf16>, vector<140x512xbf16>, vector<384x512xf32> -> vector<384x512xf32>
    %4 = vector.extract_strided_slice %3 {offsets = [0, 0], sizes = [384, 240], strides = [1, 1]} : vector<384x512xf32> to vector<384x240xf32>
    %5 = vector.extract_strided_slice %3 {offsets = [0, 256], sizes = [384, 240], strides = [1, 1]} : vector<384x512xf32> to vector<384x240xf32>
    %6 = arith.maximumf %4, %5 : vector<384x240xf32>
    %7 = vector.extract_strided_slice %6 {offsets = [0, 0], sizes = [192, 240], strides = [1, 1]} : vector<384x240xf32> to vector<192x240xf32>
    %8 = vector.extract_strided_slice %6 {offsets = [192, 0], sizes = [192, 240], strides = [1, 1]} : vector<384x240xf32> to vector<192x240xf32>
    %9 = arith.maximumf %7, %8 : vector<192x240xf32>
    %c0_4 = arith.constant 0 : index
    %c0_5 = arith.constant 0 : index
    %10 = vector.load %arg3[%c0_4, %c0_5] : memref<1x240xf32, #tpu.memory_space<vmem>>, vector<1x240xf32>
    %11 = vector.broadcast %10 : vector<1x240xf32> to vector<192x240xf32>
    %12 = arith.addf %9, %11 : vector<192x240xf32>
    %cst_6 = arith.constant 0.000000e+00 : f32
    %13 = vector.broadcast %cst_6 : f32 to vector<192x240xf32>
    %14 = arith.maximumf %12, %13 : vector<192x240xf32>
    %15 = arith.truncf %14 : vector<192x240xf32> to vector<192x240xbf16>
    %16 = vector.extract_strided_slice %15 {offsets = [0, 0], sizes = [128, 240], strides = [1, 1]} : vector<192x240xbf16> to vector<128x240xbf16>
    %c0_7 = arith.constant 0 : index
    %c0_8 = arith.constant 0 : index
    %c0_9 = arith.constant 0 : index
    %17 = vector.load %arg4[%c0_7, %c0_8, %c0_9] : memref<5x240x512xbf16, #tpu.memory_space<vmem>>, vector<1x240x512xbf16>
    %18 = vector.shape_cast %17 : vector<1x240x512xbf16> to vector<240x512xbf16>
    %cst_10 = arith.constant dense<0.000000e+00> : vector<128x512xf32>
    %19 = tpu.matmul %16, %18, %cst_10 {dimension_numbers = #tpu.dot_dimension_numbers<[1], [0], [0], [1], [0, 0, 1, 1], [], []>} : vector<128x240xbf16>, vector<240x512xbf16>, vector<128x512xf32> -> vector<128x512xf32>
    %20 = vector.extract_strided_slice %15 {offsets = [16, 0], sizes = [128, 240], strides = [1, 1]} : vector<192x240xbf16> to vector<128x240xbf16>
    %c1 = arith.constant 1 : index
    %c0_11 = arith.constant 0 : index
    %c0_12 = arith.constant 0 : index
    %21 = vector.load %arg4[%c1, %c0_11, %c0_12] : memref<5x240x512xbf16, #tpu.memory_space<vmem>>, vector<1x240x512xbf16>
    %22 = vector.shape_cast %21 : vector<1x240x512xbf16> to vector<240x512xbf16>
    %cst_13 = arith.constant dense<0.000000e+00> : vector<128x512xf32>
    %23 = tpu.matmul %20, %22, %cst_13 {dimension_numbers = #tpu.dot_dimension_numbers<[1], [0], [0], [1], [0, 0, 1, 1], [], []>} : vector<128x240xbf16>, vector<240x512xbf16>, vector<128x512xf32> -> vector<128x512xf32>
    %24 = arith.addf %19, %23 : vector<128x512xf32>
    %25 = vector.extract_strided_slice %15 {offsets = [32, 0], sizes = [128, 240], strides = [1, 1]} : vector<192x240xbf16> to vector<128x240xbf16>
    %c2 = arith.constant 2 : index
    %c0_14 = arith.constant 0 : index
    %c0_15 = arith.constant 0 : index
    %26 = vector.load %arg4[%c2, %c0_14, %c0_15] : memref<5x240x512xbf16, #tpu.memory_space<vmem>>, vector<1x240x512xbf16>
    %27 = vector.shape_cast %26 : vector<1x240x512xbf16> to vector<240x512xbf16>
    %cst_16 = arith.constant dense<0.000000e+00> : vector<128x512xf32>
    %28 = tpu.matmul %25, %27, %cst_16 {dimension_numbers = #tpu.dot_dimension_numbers<[1], [0], [0], [1], [0, 0, 1, 1], [], []>} : vector<128x240xbf16>, vector<240x512xbf16>, vector<128x512xf32> -> vector<128x512xf32>
    %29 = arith.addf %24, %28 : vector<128x512xf32>
    %30 = vector.extract_strided_slice %15 {offsets = [48, 0], sizes = [128, 240], strides = [1, 1]} : vector<192x240xbf16> to vector<128x240xbf16>
    %c3 = arith.constant 3 : index
    %c0_17 = arith.constant 0 : index
    %c0_18 = arith.constant 0 : index
    %31 = vector.load %arg4[%c3, %c0_17, %c0_18] : memref<5x240x512xbf16, #tpu.memory_space<vmem>>, vector<1x240x512xbf16>
    %32 = vector.shape_cast %31 : vector<1x240x512xbf16> to vector<240x512xbf16>
    %cst_19 = arith.constant dense<0.000000e+00> : vector<128x512xf32>
    %33 = tpu.matmul %30, %32, %cst_19 {dimension_numbers = #tpu.dot_dimension_numbers<[1], [0], [0], [1], [0, 0, 1, 1], [], []>} : vector<128x240xbf16>, vector<240x512xbf16>, vector<128x512xf32> -> vector<128x512xf32>
    %34 = arith.addf %29, %33 : vector<128x512xf32>
    %35 = vector.extract_strided_slice %15 {offsets = [64, 0], sizes = [128, 240], strides = [1, 1]} : vector<192x240xbf16> to vector<128x240xbf16>
    %c4 = arith.constant 4 : index
    %c0_20 = arith.constant 0 : index
    %c0_21 = arith.constant 0 : index
    %36 = vector.load %arg4[%c4, %c0_20, %c0_21] : memref<5x240x512xbf16, #tpu.memory_space<vmem>>, vector<1x240x512xbf16>
    %37 = vector.shape_cast %36 : vector<1x240x512xbf16> to vector<240x512xbf16>
    %cst_22 = arith.constant dense<0.000000e+00> : vector<128x512xf32>
    %38 = tpu.matmul %35, %37, %cst_22 {dimension_numbers = #tpu.dot_dimension_numbers<[1], [0], [0], [1], [0, 0, 1, 1], [], []>} : vector<128x240xbf16>, vector<240x512xbf16>, vector<128x512xf32> -> vector<128x512xf32>
    %39 = arith.addf %34, %38 : vector<128x512xf32>
    %40 = vector.extract_strided_slice %39 {offsets = [0, 0], sizes = [128, 200], strides = [1, 1]} : vector<128x512xf32> to vector<128x200xf32>
    %41 = vector.extract_strided_slice %39 {offsets = [0, 256], sizes = [128, 200], strides = [1, 1]} : vector<128x512xf32> to vector<128x200xf32>
    %42 = arith.maximumf %40, %41 : vector<128x200xf32>
    %43 = vector.shape_cast %42 : vector<128x200xf32> to vector<4x2x16x200xf32>
    %44 = vector.extract_strided_slice %43 {offsets = [0, 0, 0, 0], sizes = [4, 1, 16, 200], strides = [1, 1, 1, 1]} : vector<4x2x16x200xf32> to vector<4x1x16x200xf32>
    %45 = vector.shape_cast %44 : vector<4x1x16x200xf32> to vector<4x16x200xf32>
    %46 = vector.extract_strided_slice %43 {offsets = [0, 1, 0, 0], sizes = [4, 1, 16, 200], strides = [1, 1, 1, 1]} : vector<4x2x16x200xf32> to vector<4x1x16x200xf32>
    %47 = vector.shape_cast %46 : vector<4x1x16x200xf32> to vector<4x16x200xf32>
    %48 = arith.maximumf %45, %47 : vector<4x16x200xf32>
    %c0_23 = arith.constant 0 : index
    %c0_24 = arith.constant 0 : index
    %49 = vector.load %arg5[%c0_23, %c0_24] : memref<1x200xf32, #tpu.memory_space<vmem>>, vector<1x200xf32>
    %50 = vector.shape_cast %49 : vector<1x200xf32> to vector<1x1x200xf32>
    %51 = vector.broadcast %50 : vector<1x1x200xf32> to vector<4x16x200xf32>
    %52 = arith.addf %48, %51 : vector<4x16x200xf32>
    %cst_25 = arith.constant 0.000000e+00 : f32
    %53 = vector.broadcast %cst_25 : f32 to vector<4x16x200xf32>
    %54 = arith.maximumf %52, %53 : vector<4x16x200xf32>
    %55 = arith.truncf %54 : vector<4x16x200xf32> to vector<4x16x200xbf16>
    %56 = vector.extract_strided_slice %55 {offsets = [0, 0, 0], sizes = [1, 16, 200], strides = [1, 1, 1]} : vector<4x16x200xbf16> to vector<1x16x200xbf16>
    %57 = vector.shape_cast %56 : vector<1x16x200xbf16> to vector<16x200xbf16>
    %c0_26 = arith.constant 0 : index
    %c0_27 = arith.constant 0 : index
    %c0_28 = arith.constant 0 : index
    %58 = vector.load %arg6[%c0_26, %c0_27, %c0_28] : memref<4x200x500xbf16, #tpu.memory_space<vmem>>, vector<1x200x500xbf16>
    %59 = vector.shape_cast %58 : vector<1x200x500xbf16> to vector<200x500xbf16>
    %cst_29 = arith.constant dense<0.000000e+00> : vector<16x500xf32>
    %60 = tpu.matmul %57, %59, %cst_29 {dimension_numbers = #tpu.dot_dimension_numbers<[1], [0], [0], [1], [0, 0, 1, 1], [], []>} : vector<16x200xbf16>, vector<200x500xbf16>, vector<16x500xf32> -> vector<16x500xf32>
    %61 = vector.extract_strided_slice %55 {offsets = [1, 0, 0], sizes = [1, 16, 200], strides = [1, 1, 1]} : vector<4x16x200xbf16> to vector<1x16x200xbf16>
    %62 = vector.shape_cast %61 : vector<1x16x200xbf16> to vector<16x200xbf16>
    %c1_30 = arith.constant 1 : index
    %c0_31 = arith.constant 0 : index
    %c0_32 = arith.constant 0 : index
    %63 = vector.load %arg6[%c1_30, %c0_31, %c0_32] : memref<4x200x500xbf16, #tpu.memory_space<vmem>>, vector<1x200x500xbf16>
    %64 = vector.shape_cast %63 : vector<1x200x500xbf16> to vector<200x500xbf16>
    %cst_33 = arith.constant dense<0.000000e+00> : vector<16x500xf32>
    %65 = tpu.matmul %62, %64, %cst_33 {dimension_numbers = #tpu.dot_dimension_numbers<[1], [0], [0], [1], [0, 0, 1, 1], [], []>} : vector<16x200xbf16>, vector<200x500xbf16>, vector<16x500xf32> -> vector<16x500xf32>
    %66 = arith.addf %60, %65 : vector<16x500xf32>
    %67 = vector.extract_strided_slice %55 {offsets = [2, 0, 0], sizes = [1, 16, 200], strides = [1, 1, 1]} : vector<4x16x200xbf16> to vector<1x16x200xbf16>
    %68 = vector.shape_cast %67 : vector<1x16x200xbf16> to vector<16x200xbf16>
    %c2_34 = arith.constant 2 : index
    %c0_35 = arith.constant 0 : index
    %c0_36 = arith.constant 0 : index
    %69 = vector.load %arg6[%c2_34, %c0_35, %c0_36] : memref<4x200x500xbf16, #tpu.memory_space<vmem>>, vector<1x200x500xbf16>
    %70 = vector.shape_cast %69 : vector<1x200x500xbf16> to vector<200x500xbf16>
    %cst_37 = arith.constant dense<0.000000e+00> : vector<16x500xf32>
    %71 = tpu.matmul %68, %70, %cst_37 {dimension_numbers = #tpu.dot_dimension_numbers<[1], [0], [0], [1], [0, 0, 1, 1], [], []>} : vector<16x200xbf16>, vector<200x500xbf16>, vector<16x500xf32> -> vector<16x500xf32>
    %72 = arith.addf %66, %71 : vector<16x500xf32>
    %73 = vector.extract_strided_slice %55 {offsets = [3, 0, 0], sizes = [1, 16, 200], strides = [1, 1, 1]} : vector<4x16x200xbf16> to vector<1x16x200xbf16>
    %74 = vector.shape_cast %73 : vector<1x16x200xbf16> to vector<16x200xbf16>
    %c3_38 = arith.constant 3 : index
    %c0_39 = arith.constant 0 : index
    %c0_40 = arith.constant 0 : index
    %75 = vector.load %arg6[%c3_38, %c0_39, %c0_40] : memref<4x200x500xbf16, #tpu.memory_space<vmem>>, vector<1x200x500xbf16>
    %76 = vector.shape_cast %75 : vector<1x200x500xbf16> to vector<200x500xbf16>
    %cst_41 = arith.constant dense<0.000000e+00> : vector<16x500xf32>
    %77 = tpu.matmul %74, %76, %cst_41 {dimension_numbers = #tpu.dot_dimension_numbers<[1], [0], [0], [1], [0, 0, 1, 1], [], []>} : vector<16x200xbf16>, vector<200x500xbf16>, vector<16x500xf32> -> vector<16x500xf32>
    %78 = arith.addf %72, %77 : vector<16x500xf32>
    %c0_42 = arith.constant 0 : index
    %c0_43 = arith.constant 0 : index
    %79 = vector.load %arg7[%c0_42, %c0_43] : memref<1x500xf32, #tpu.memory_space<vmem>>, vector<1x500xf32>
    %80 = vector.broadcast %79 : vector<1x500xf32> to vector<16x500xf32>
    %81 = arith.addf %78, %80 : vector<16x500xf32>
    %82 = arith.truncf %81 : vector<16x500xf32> to vector<16x500xbf16>
    %c0_44 = arith.constant 0 : index
    %c0_45 = arith.constant 0 : index
    %83 = vector.load %arg8[%c0_44, %c0_45] : memref<500x10xbf16, #tpu.memory_space<vmem>>, vector<500x10xbf16>
    %cst_46 = arith.constant dense<0.000000e+00> : vector<16x10xf32>
    %84 = tpu.matmul %82, %83, %cst_46 {dimension_numbers = #tpu.dot_dimension_numbers<[1], [0], [0], [1], [0, 0, 1, 1], [], []>} : vector<16x500xbf16>, vector<500x10xbf16>, vector<16x10xf32> -> vector<16x10xf32>
    %c0_47 = arith.constant 0 : index
    %c0_48 = arith.constant 0 : index
    %85 = vector.load %arg9[%c0_47, %c0_48] : memref<1x10xf32, #tpu.memory_space<vmem>>, vector<1x10xf32>
    %86 = vector.broadcast %85 : vector<1x10xf32> to vector<16x10xf32>
    %87 = arith.addf %84, %86 : vector<16x10xf32>
    %cst_49 = arith.constant dense<0xFF800000> : vector<16xf32>
    %88 = vector.multi_reduction <maximumf>, %87, %cst_49 [1] : vector<16x10xf32> to vector<16xf32>
    %89 = vector.shape_cast %88 : vector<16xf32> to vector<16x1xf32>
    %90 = vector.broadcast %89 : vector<16x1xf32> to vector<16x10xf32>
    %91 = arith.subf %87, %90 : vector<16x10xf32>
    %92 = math.exp %91 : vector<16x10xf32>
    %cst_50 = arith.constant dense<0.000000e+00> : vector<16xf32>
    %93 = vector.multi_reduction <add>, %92, %cst_50 [1] : vector<16x10xf32> to vector<16xf32>
    %94 = vector.shape_cast %93 : vector<16xf32> to vector<16x1xf32>
    %95 = vector.broadcast %94 : vector<16x1xf32> to vector<16x10xf32>
    %96 = arith.divf %92, %95 : vector<16x10xf32>
    %c0_51 = arith.constant 0 : index
    %c0_52 = arith.constant 0 : index
    %97 = vector.load %arg10[%c0_51, %c0_52] : memref<16x10xf32, #tpu.memory_space<vmem>>, vector<16x10xf32>
    tpu.vector_store %arg10[%c0_51, %c0_52], %96 {strides = array<i32>} : memref<16x10xf32, #tpu.memory_space<vmem>>, vector<16x10xf32>,
    return
  }
  func.func @transform_0(%arg0: i32) -> (i32, i32, i32) {
    %c0_i32 = arith.constant 0 : i32
    %c0_i32_0 = arith.constant 0 : i32
    %c0_i32_1 = arith.constant 0 : i32
    return %c0_i32, %arg0, %c0_i32_0 : i32, i32, i32
  }
  func.func @transform_1(%arg0: i32) -> (i32, i32) {
    %c0_i32 = arith.constant 0 : i32
    %c0_i32_0 = arith.constant 0 : i32
    %c0_i32_1 = arith.constant 0 : i32
    return %c0_i32, %c0_i32_0 : i32, i32
  }
  func.func @transform_2(%arg0: i32) -> (i32, i32) {
    %c0_i32 = arith.constant 0 : i32
    %c0_i32_0 = arith.constant 0 : i32
    %c0_i32_1 = arith.constant 0 : i32
    return %c0_i32, %c0_i32_0 : i32, i32
  }
  func.func @transform_3(%arg0: i32) -> (i32, i32, i32) {
    %c0_i32 = arith.constant 0 : i32
    %c0_i32_0 = arith.constant 0 : i32
    %c0_i32_1 = arith.constant 0 : i32
    %c0_i32_2 = arith.constant 0 : i32
    return %c0_i32, %c0_i32_0, %c0_i32_1 : i32, i32, i32
  }
  func.func @transform_4(%arg0: i32) -> (i32, i32) {
    %c0_i32 = arith.constant 0 : i32
    %c0_i32_0 = arith.constant 0 : i32
    %c0_i32_1 = arith.constant 0 : i32
    return %c0_i32, %c0_i32_0 : i32, i32
  }
  func.func @transform_5(%arg0: i32) -> (i32, i32, i32) {
    %c0_i32 = arith.constant 0 : i32
    %c0_i32_0 = arith.constant 0 : i32
    %c0_i32_1 = arith.constant 0 : i32
    %c0_i32_2 = arith.constant 0 : i32
    return %c0_i32, %c0_i32_0, %c0_i32_1 : i32, i32, i32
  }
  func.func @transform_6(%arg0: i32) -> (i32, i32) {
    %c0_i32 = arith.constant 0 : i32
    %c0_i32_0 = arith.constant 0 : i32
    %c0_i32_1 = arith.constant 0 : i32
    return %c0_i32, %c0_i32_0 : i32, i32
  }
  func.func @transform_7(%arg0: i32) -> (i32, i32) {
    %c0_i32 = arith.constant 0 : i32
    %c0_i32_0 = arith.constant 0 : i32
    %c0_i32_1 = arith.constant 0 : i32
    return %c0_i32, %c0_i32_0 : i32, i32
  }
  func.func @transform_8(%arg0: i32) -> (i32, i32) {
    %c0_i32 = arith.constant 0 : i32
    %c0_i32_0 = arith.constant 0 : i32
    %c0_i32_1 = arith.constant 0 : i32
    return %c0_i32, %c0_i32_0 : i32, i32
  }
  func.func @transform_9(%arg0: i32) -> (i32, i32) {
    %c0_i32 = arith.constant 0 : i32
    %c0_i32_0 = arith.constant 0 : i32
    return %arg0, %c0_i32 : i32, i32
  }
}

</mosaic_0001>

<bundles_post_ra>
// kernel: tpu_custom_call.1
= control target key start
LH: loop header
LB: loop body
LE: loop exit
PB: predicated region body
PF: predicated region fallthrough
CT: control target
= control target key end

     0   :  { %14 = vsyncpa [#allocation3], 0  ;;  %s10664_s0 = inlined_call_operand.hbm [shape: bf16[24,16,140], index: 0, kind: input, shape index: {}]   ;;  %s10665_s1 = inlined_call_operand.hbm [shape: bf16[140,512], index: 1, kind: input, shape index: {}]   ;;  %s10666_s2 = inlined_call_operand.hbm [shape: f32[1,240], index: 2, kind: input, shape index: {}]   ;;  %s10667_s3 = inlined_call_operand.hbm [shape: bf16[5,240,512], index: 3, kind: input, shape index: {}]   ;;  %s10668_s4 = inlined_call_operand.hbm [shape: f32[1,200], index: 4, kind: input, shape index: {}]   ;;  %s10669_s5 = inlined_call_operand.hbm [shape: bf16[4,200,500], index: 5, kind: input, shape index: {}]   ;;  %s10670_s6 = inlined_call_operand.hbm [shape: f32[1,500], index: 6, kind: input, shape index: {}]   ;;  %s10671_s7 = inlined_call_operand.vmem [shape: bf16[500,10], index: 7, kind: input, shape index: {}]   ;;  %s10672_s8 = inlined_call_operand.hbm [shape: f32[1,10], index: 8, kind: input, shape index: {}]   ;;  %s10673_s9 = inlined_call_operand.hbm [shape: f32[16,10], index: 9, kind: output, shape index: {}]  }
   0x1   :  { %15 = vsyncpa [#allocation6], 0 }
   0x2   :  { %16 = vsyncpa [#allocation9], 0 }
   0x3   :  { %17 = vsyncpa [#allocation12], 0 }
   0x4   :  { %18 = vsyncpa [#allocation15], 0 }
   0x5   :  { %19 = vsyncpa [#allocation4], 0  ;;  %s8778_s30 = smov [#allocation5]  }
   0x6   :  { %s37_s10 = sshll.u32 %s8778_s30, 4  ;;  %s38_s10 = int_to_ptr.vmem [resolvable:$true] %s37_s10 }
   0x7   :  { %s8594_s11 = scalar_lea.vmem %s38_s10, 4608  ;;  %p8599_p1 = scmp.lt.s32.totalorder %s38_s10, %s38_s10 }
   0x8   :  { %p8595_p0 = scmp.ne.s32.totalorder %s38_s10, %s8594_s11  ;;  %p8600_p2 = scmp.lt.s32.totalorder %s8594_s11, %s8594_s11 }
   0xa   :  { %p8601_p3 = por %p8600_p2, %p8599_p1 }
   0xc   :  { %p8602_p4 = pnand %p8601_p3, %p8595_p0 }
   0xe   :  { %8605 = shalt.err (!%p8602_p4)
}
   0xf   :  { %s8779_s12 = smov 256   ;;  %s8780_s13 = smov 16  }
  0x10   :  { %43 = dma.hbm_to_vmem [thread:$0]  %s10665_s1, 4608, %s38_s10, [#allocation6], %s8779_s12, %s8779_s12, %s8780_s13  }
  0x11   :  { %s8781_s16 = smov [#allocation8]   ;;  %s8782_s18 = smov [#allocation11]  }
  0x12   :  { %s59_s17 = sshll.u32 %s8781_s16, 4  ;;  %s81_s19 = sshll.u32 %s8782_s18, 4  ;;  %s60_s17 = int_to_ptr.vmem [resolvable:$true] %s59_s17  ;;  %s82_s19 = int_to_ptr.vmem [resolvable:$true] %s81_s19 }
  0x13   :  { %s8614_s20 = scalar_lea.vmem %s60_s17, 38400  ;;  %p8619_p6 = scmp.lt.s32.totalorder %s60_s17, %s60_s17 }
  0x14   :  { %p8615_p5 = scmp.ne.s32.totalorder %s60_s17, %s8614_s20  ;;  %p8620_p7 = scmp.lt.s32.totalorder %s8614_s20, %s8614_s20 }
  0x16   :  { %p8621_p8 = por %p8620_p7, %p8619_p6 }
  0x18   :  { %p8622_p9 = pnand %p8621_p8, %p8615_p5 }
  0x1a   :  { %8625 = shalt.err (!%p8622_p9)
}
  0x1b   :  { %65 = dma.hbm_to_vmem [thread:$0]  %s10667_s3, 38400, %s60_s17, [#allocation9], %s8779_s12, %s8779_s12, %s8780_s13  }
  0x1c   :  { %s8634_s23 = scalar_lea.vmem %s82_s19, 25600  ;;  %p8639_p11 = scmp.lt.s32.totalorder %s82_s19, %s82_s19 }
  0x1d   :  { %p8635_p10 = scmp.ne.s32.totalorder %s82_s19, %s8634_s23  ;;  %p8640_p12 = scmp.lt.s32.totalorder %s8634_s23, %s8634_s23 }
  0x1f   :  { %p8641_p13 = por %p8640_p12, %p8639_p11 }
  0x21   :  { %p8642_p0 = pnand %p8641_p13, %p8635_p10 }
  0x23   :  { %8645 = shalt.err (!%p8642_p0)
}
  0x24   :  { %87 = dma.hbm_to_vmem [thread:$0]  %s10669_s5, 25600, %s82_s19, [#allocation12], %s8779_s12, %s8779_s12, %s8780_s13  }
  0x25   :  { %s8783_s25 = smov [#allocation2]  }
  0x26   :  { %s25_s26 = sshll.u32 %s8783_s25, 4  ;;  %s26_s26 = int_to_ptr.vmem [resolvable:$true] %s25_s26 }
  0x27   :  { %s8654_s27 = scalar_lea.vmem %s26_s26, 6144  ;;  %p8659_p2 = scmp.lt.s32.totalorder %s26_s26, %s26_s26 }
  0x28   :  { %p8655_p1 = scmp.ne.s32.totalorder %s26_s26, %s8654_s27  ;;  %p8660_p3 = scmp.lt.s32.totalorder %s8654_s27, %s8654_s27 }
  0x2a   :  { %p8661_p4 = por %p8660_p3, %p8659_p2 }
  0x2c   :  { %p8662_p5 = pnand %p8661_p4, %p8655_p1 }
  0x2e   :  { %8665 = shalt.err (!%p8662_p5)
}
  0x2f   :  { %s8784_s3 = smov 128   ;;  %s8785_s28 = smov 8  }
  0x30   :  { %31 = dma.hbm_to_vmem [thread:$0]  %s10664_s0, 6144, %s26_s26, [#allocation3], %s8784_s3, %s8784_s3, %s8785_s28  }
  0x31   :  { %s8786_s5 = smov [#allocation7]   ;;  %s8787_s11 = smov [#allocation10]  }
  0x32   :  { %s50_s10 = sshll.u32 %s8786_s5, 4  ;;  %s72_s12 = sshll.u32 %s8787_s11, 4  ;;  %s51_s10 = int_to_ptr.vmem [resolvable:$true] %s50_s10  ;;  %s73_s12 = int_to_ptr.vmem [resolvable:$true] %s72_s12 }
  0x33   :  { %s8674_s13 = scalar_lea.vmem %s51_s10, 32  ;;  %p8679_p7 = scmp.lt.s32.totalorder %s51_s10, %s51_s10 }
  0x34   :  { %p8675_p6 = scmp.ne.s32.totalorder %s51_s10, %s8674_s13  ;;  %p8680_p8 = scmp.lt.s32.totalorder %s8674_s13, %s8674_s13 }
  0x36   :  { %p8681_p9 = por %p8680_p8, %p8679_p7 }
  0x38   :  { %p8682_p10 = pnand %p8681_p9, %p8675_p6 }
  0x3a   :  { %8685 = shalt.err (!%p8682_p10)
}
  0x3b   :  { %53 = dma.hbm_to_vmem [thread:$0]  %s10666_s2, 32, %s51_s10, [#allocation6]  }
  0x3c   :  { %s8694_s16 = scalar_lea.vmem %s73_s12, 32  ;;  %p8699_p12 = scmp.lt.s32.totalorder %s73_s12, %s73_s12 }
  0x3d   :  { %p8695_p11 = scmp.ne.s32.totalorder %s73_s12, %s8694_s16  ;;  %p8700_p13 = scmp.lt.s32.totalorder %s8694_s16, %s8694_s16 }
  0x3f   :  { %p8701_p0 = por %p8700_p13, %p8699_p12 }
  0x41   :  { %p8702_p1 = pnand %p8701_p0, %p8695_p11 }
  0x43   :  { %8705 = shalt.err (!%p8702_p1)
}
  0x44   :  { %75 = dma.hbm_to_vmem [thread:$0]  %s10668_s4, 32, %s73_s12, [#allocation9]  }
  0x45   :  { %s8788_s18 = smov [#allocation13]   ;;  %s8789_s20 = smov [#allocation14]  }
  0x46   :  { %s94_s19 = sshll.u32 %s8788_s18, 4  ;;  %s106_s21 = sshll.u32 %s8789_s20, 4  ;;  %s95_s19 = int_to_ptr.vmem [resolvable:$true] %s94_s19  ;;  %s107_s21 = int_to_ptr.vmem [resolvable:$true] %s106_s21 }
  0x47   :  { %s8714_s22 = scalar_lea.vmem %s95_s19, 64  ;;  %p8719_p3 = scmp.lt.s32.totalorder %s95_s19, %s95_s19 }
  0x48   :  { %p8715_p2 = scmp.ne.s32.totalorder %s95_s19, %s8714_s22  ;;  %p8720_p4 = scmp.lt.s32.totalorder %s8714_s22, %s8714_s22 }
  0x4a   :  { %p8721_p5 = por %p8720_p4, %p8719_p3 }
  0x4c   :  { %p8722_p6 = pnand %p8721_p5, %p8715_p2 }
  0x4e   :  { %8725 = shalt.err (!%p8722_p6)
}
  0x4f   :  { %97 = dma.hbm_to_vmem [thread:$0]  %s10670_s6, 64, %s95_s19, [#allocation12]  }
  0x50   :  { %s8734_s1 = scalar_lea.vmem %s107_s21, 16  ;;  %s8738_s4 = scalar_lea.vmem %s107_s21, 32 }
  0x51   :  { %p8735_p7 = scmp.ne.s32.totalorder %s107_s21, %s8734_s1  ;;  %p8739_p8 = scmp.lt.s32.totalorder %s107_s21, %s107_s21 }
  0x52   :  { %p8740_p9 = scmp.lt.s32.totalorder %s8738_s4, %s8734_s1 }
  0x54   :  { %p8741_p10 = por %p8740_p9, %p8739_p8 }
  0x56   :  { %p8742_p11 = pnand %p8741_p10, %p8735_p7 }
  0x58   :  { %8745 = shalt.err (!%p8742_p11)
}
  0x59   :  { %109 = dma.hbm_to_vmem [thread:$0]  %s10672_s8, 16, %s107_s21, [#allocation15]  }
  0x5a   :  { %8766 = dma.done.wait [#allocation3], 6144  }
  0x5b   :  { %8767 = vsyncadd [#allocation3], 4294961152 }
  0x5c   :  { %8768 = dma.done.wait [#allocation6], 4640  }
  0x5d   :  { %8769 = vsyncadd [#allocation6], 4294962656 }
  0x5e   :  { %8770 = dma.done.wait [#allocation9], 38432  }
  0x5f   :  { %8771 = vsyncadd [#allocation9], 4294928864 }
  0x60   :  { %8772 = dma.done.wait [#allocation12], 25664  }
  0x61   :  { %8773 = vsyncadd [#allocation12], 4294941632 }
  0x62   :  { %8774 = dma.done.wait [#allocation15], 16  }
  0x63   :  { %8775 = vsyncadd [#allocation15], 4294967280  ;;  %v7666_v0 = vld [vmem:[#allocation5 + $0xe4] ss:$16 sps:$4 sm:$0xff]   ;;  %v7668_v1 = vld [vmem:[#allocation5 + $0xec] ss:$16 sps:$4 sm:$0xff]  }
  0x64   :  { %697 = vmatprep.subr.bf16.mxu0 %v7666_v0  ;;  %v7670_v2 = vld [vmem:[#allocation5 + $0xe0] ss:$16 sps:$4 sm:$0xff]   ;;  %v7671_v3 = vld [vmem:[#allocation5 + $0xe8] ss:$16 sps:$4 sm:$0xff]   ;;  %970 = vmatprep.subr.bf16.mxu1 %v7668_v1  ;;  %v7672_v4 = vld [vmem:[#allocation5 + $0xc4] ss:$16 sps:$4 sm:$0xff]  }
  0x65   :  { %698 = vmatpush1.bf16.msra.mxu0 %v7670_v2  ;;  %971 = vmatpush1.bf16.msra.mxu1 %v7671_v3  ;;  %v7674_v5 = vld [vmem:[#allocation5 + $0xcc] ss:$16 sps:$4 sm:$0xff]   ;;  %v7676_v6 = vld [vmem:[#allocation5 + $0xc0] ss:$16 sps:$4 sm:$0xff]   ;;  %v7677_v7 = vld [vmem:[#allocation5 + $0xc8] ss:$16 sps:$4 sm:$0xff]  }
  0x66   :  { %699 = vmatprep.subr.bf16.mxu0 %v7672_v4  ;;  %972 = vmatprep.subr.bf16.mxu1 %v7674_v5  ;;  %v7678_v8 = vld [vmem:[#allocation5 + $0xa4] ss:$16 sps:$4 sm:$0xff]   ;;  %v7680_v9 = vld [vmem:[#allocation5 + $0xac] ss:$16 sps:$4 sm:$0xff]   ;;  %v7682_v10 = vld [vmem:[#allocation5 + $0xa0] ss:$16 sps:$4 sm:$0xff]  }
  0x67   :  { %v7683_v11 = vld [vmem:[#allocation5 + $0xa8] ss:$16 sps:$4 sm:$0xff]   ;;  %v7684_v12 = vld [vmem:[#allocation5 + $0x84] ss:$16 sps:$4 sm:$0xff]   ;;  %v7686_v13 = vld [vmem:[#allocation5 + $0x8c] ss:$16 sps:$4 sm:$0xff]  }
  0x68   :  { %v7688_v14 = vld [vmem:[#allocation5 + $0x80] ss:$16 sps:$4 sm:$0xff]   ;;  %v7689_v15 = vld [vmem:[#allocation5 + $0x88] ss:$16 sps:$4 sm:$0xff]   ;;  %v7690_v16 = vld [vmem:[#allocation5 + $0x64] ss:$16 sps:$4 sm:$0xff]  }
  0x69   :  { %700 = vmatpush1.bf16.msra.mxu0 %v7676_v6  ;;  %973 = vmatpush1.bf16.msra.mxu1 %v7677_v7  ;;  %v7692_v17 = vld [vmem:[#allocation5 + $0x6c] ss:$16 sps:$4 sm:$0xff]   ;;  %v7694_v18 = vld [vmem:[#allocation5 + $0x60] ss:$16 sps:$4 sm:$0xff]   ;;  %v7695_v19 = vld [vmem:[#allocation5 + $0x68] ss:$16 sps:$4 sm:$0xff]  }
  0x6a   :  { %701 = vmatprep.subr.bf16.mxu0 %v7678_v8  ;;  %974 = vmatprep.subr.bf16.mxu1 %v7680_v9  ;;  %v7696_v20 = vld [vmem:[#allocation5 + $0x44] ss:$16 sps:$4 sm:$0xff]   ;;  %v7698_v21 = vld [vmem:[#allocation5 + $0x4c] ss:$16 sps:$4 sm:$0xff]   ;;  %v7700_v22 = vld [vmem:[#allocation5 + $0x40] ss:$16 sps:$4 sm:$0xff]  }
  0x6b   :  { %v7701_v23 = vld [vmem:[#allocation5 + $0x48] ss:$16 sps:$4 sm:$0xff]   ;;  %v7702_v24 = vld [vmem:[#allocation5 + $0x24] ss:$16 sps:$4 sm:$0xff]   ;;  %v7704_v25 = vld [vmem:[#allocation5 + $0x2c] ss:$16 sps:$4 sm:$0xff]  }
  0x6c   :  { %v7706_v26 = vld [vmem:[#allocation5 + $0x20] ss:$16 sps:$4 sm:$0xff]   ;;  %v7707_v27 = vld [vmem:[#allocation5 + $0x28] ss:$16 sps:$4 sm:$0xff]   ;;  %v7708_v28 = vld [vmem:[#allocation5 + $0x4] ss:$16 sps:$4 sm:$0xff]  }
  0x6d   :  { %702 = vmatpush1.bf16.msra.mxu0 %v7682_v10  ;;  %975 = vmatpush1.bf16.msra.mxu1 %v7683_v11  ;;  %vm611_vm0 = vcmask 97280   ;;  %v7710_v29 = vld [vmem:[#allocation5 + $0xc] ss:$16 sps:$4 sm:$0xff]   ;;  %v7712_v31 = vld [vmem:[#allocation5] ss:$16 sps:$4 sm:$0xff]   ;;  %vm684_vm1 = vcmask 1045504  }
  0x6e   :  { %703 = vmatprep.subr.bf16.mxu0 %v7684_v12  ;;  %976 = vmatprep.subr.bf16.mxu1 %v7686_v13  ;;  %v7722_v30 = vld [vmem:[#allocation2 + $0x4] ss:$8 sps:$4 sm:$0xff]   ;;  %v7713_v32 = vld [vmem:[#allocation5 + $0x8] ss:$16 sps:$4 sm:$0xff]   ;;  %v7723_v40 = vld [vmem:[#allocation2 + $0x14] ss:$8 sps:$4 sm:$0xff]  }
  0x6f   :  { %v7714_v33 = vld [vmem:[#allocation5 + $0x104] ss:$16 sps:$4 sm:$0x3f]   ;;  %v7716_v34 = vld [vmem:[#allocation5 + $0x10c] ss:$16 sps:$4 sm:$0x3f]   ;;  %6921 = vmatprep.mubr.msk.bf16.mxu0 %vm611_vm0, %v7722_v30  ;;  %6946 = vmatprep.mubr.msk.bf16.mxu1 %vm611_vm0, %v7722_v30 }
  0x70   :  { %v7718_v35 = vld [vmem:[#allocation5 + $0x100] ss:$16 sps:$4 sm:$0x3f]   ;;  %v7719_v36 = vld [vmem:[#allocation5 + $0x108] ss:$16 sps:$4 sm:$0x3f]  }
  0x71   :  { %704 = vmatpush1.bf16.msra.mxu0 %v7688_v14  ;;  %977 = vmatpush1.bf16.msra.mxu1 %v7689_v15  ;;  %v686_v37 = vsel %vm684_vm1, %v7718_v35, 0  ;;  %v692_v38 = vsel %vm684_vm1, %v7719_v36, 0  ;;  %v7720_v39 = vld [vmem:[#allocation2] ss:$8 sps:$4 sm:$0xff]   ;;  %v7725_v41 = vld [vmem:[#allocation2 + $0x10] ss:$8 sps:$4 sm:$0xff]  }
  0x72   :  { %705 = vmatprep.subr.bf16.mxu0 %v7690_v16  ;;  %978 = vmatprep.subr.bf16.mxu1 %v7692_v17  ;;  %v7726_v42 = vld [vmem:[#allocation2 + $0x24] ss:$8 sps:$4 sm:$0xff]   ;;  %v7728_v47 = vld [vmem:[#allocation2 + $0x20] ss:$8 sps:$4 sm:$0xff]   ;;  %v7729_v50 = vld [vmem:[#allocation2 + $0x34] ss:$8 sps:$4 sm:$0xff]  }
  0x73   :  { %v7768_v43 = vld [vmem:[#allocation8 + $0x2c0] ss:$16 sps:$4 sm:$0xff]   ;;  %v7770_v44 = vld [vmem:[#allocation8 + $0x2c4] ss:$16 sps:$4 sm:$0xff]   ;;  %v7771_v45 = vld [vmem:[#allocation8 + $0x2c8] ss:$16 sps:$4 sm:$0xff]  }
  0x74   :  { %v7773_v46 = vld [vmem:[#allocation8 + $0x2cc] ss:$16 sps:$4 sm:$0xff]   ;;  %v7777_v48 = vld [vmem:[#allocation8 + $0x2a0] ss:$16 sps:$4 sm:$0xff]   ;;  %v7779_v49 = vld [vmem:[#allocation8 + $0x2a4] ss:$16 sps:$4 sm:$0xff]  }
  0x75   :  { %706 = vmatpush1.bf16.msra.mxu0 %v7694_v18  ;;  %979 = vmatpush1.bf16.msra.mxu1 %v7695_v19  ;;  %v7782_v51 = vld [vmem:[#allocation8 + $0x2ac] ss:$16 sps:$4 sm:$0xff]   ;;  %v7780_v52 = vld [vmem:[#allocation8 + $0x2a8] ss:$16 sps:$4 sm:$0xff]   ;;  %v7789_v53 = vld [vmem:[#allocation8 + $0x280] ss:$16 sps:$4 sm:$0xff]  }
  0x76   :  { %707 = vmatprep.subr.bf16.mxu0 %v7696_v20  ;;  %980 = vmatprep.subr.bf16.mxu1 %v7698_v21  ;;  %v7791_v54 = vld [vmem:[#allocation8 + $0x284] ss:$16 sps:$4 sm:$0xff]   ;;  %v7792_v55 = vld [vmem:[#allocation8 + $0x288] ss:$16 sps:$4 sm:$0xff]   ;;  %v7794_v56 = vld [vmem:[#allocation8 + $0x28c] ss:$16 sps:$4 sm:$0xff]  }
  0x77   :  { %v7731_v57 = vld [vmem:[#allocation2 + $0x30] ss:$8 sps:$4 sm:$0xff]   ;;  %v7732_v58 = vld [vmem:[#allocation2 + $0x44] ss:$8 sps:$4 sm:$0xff]   ;;  %v7734_v59 = vld [vmem:[#allocation2 + $0x40] ss:$8 sps:$4 sm:$0xff]  }
  0x78   :  { %v7735_v60 = vld [vmem:[#allocation2 + $0x54] ss:$8 sps:$4 sm:$0xff]   ;;  %v7737_v1 = vld [vmem:[#allocation2 + $0x50] ss:$8 sps:$4 sm:$0xff]   ;;  %v7738_v2 = vld [vmem:[#allocation2 + $0x64] ss:$8 sps:$4 sm:$0xff]  }
  0x79   :  { %708 = vmatpush1.bf16.msra.mxu0 %v7700_v22  ;;  %981 = vmatpush1.bf16.msra.mxu1 %v7701_v23  ;;  %v7801_v61 = vld [vmem:[#allocation8 + $0x260] ss:$16 sps:$4 sm:$0xff]   ;;  %v7803_v62 = vld [vmem:[#allocation8 + $0x264] ss:$16 sps:$4 sm:$0xff]   ;;  %v7804_v63 = vld [vmem:[#allocation8 + $0x268] ss:$16 sps:$4 sm:$0xff]  }
  0x7a   :  { %709 = vmatprep.subr.bf16.mxu0 %v7702_v24  ;;  %982 = vmatprep.subr.bf16.mxu1 %v7704_v25  ;;  %v7806_v0 = vld [vmem:[#allocation8 + $0x26c] ss:$16 sps:$4 sm:$0xff]   ;;  %v7810_v3 = vld [vmem:[#allocation8 + $0x240] ss:$16 sps:$4 sm:$0xff]   ;;  %v7812_v4 = vld [vmem:[#allocation8 + $0x244] ss:$16 sps:$4 sm:$0xff]  }
  0x7b   :  { %v7813_v5 = vld [vmem:[#allocation8 + $0x248] ss:$16 sps:$4 sm:$0xff]   ;;  %v7815_v6 = vld [vmem:[#allocation8 + $0x24c] ss:$16 sps:$4 sm:$0xff]   ;;  %v7822_v11 = vld [vmem:[#allocation8 + $0x220] ss:$16 sps:$4 sm:$0xff]  }
  0x7c   :  { %v7740_v7 = vld [vmem:[#allocation2 + $0x60] ss:$8 sps:$4 sm:$0xff]   ;;  %v7741_v8 = vld [vmem:[#allocation2 + $0x74] ss:$8 sps:$4 sm:$0xff]   ;;  %v7743_v9 = vld [vmem:[#allocation2 + $0x70] ss:$8 sps:$4 sm:$0xff]  }
  0x7d   :  { %710 = vmatpush1.bf16.msra.mxu0 %v7706_v26  ;;  %983 = vmatpush1.bf16.msra.mxu1 %v7707_v27  ;;  %v7744_v10 = vld [vmem:[#allocation2 + $0x84] ss:$8 sps:$4 sm:$0xff]   ;;  %v7746_v15 = vld [vmem:[#allocation2 + $0x80] ss:$8 sps:$4 sm:$0xff]   ;;  %v7747_v16 = vld [vmem:[#allocation2 + $0x94] ss:$8 sps:$4 sm:$0xff]  }
  0x7e   :  { %711 = vmatprep.subr.bf16.mxu0 %v7708_v28  ;;  %984 = vmatprep.subr.bf16.mxu1 %v7710_v29  ;;  %v7824_v12 = vld [vmem:[#allocation8 + $0x224] ss:$16 sps:$4 sm:$0xff]   ;;  %v7825_v13 = vld [vmem:[#allocation8 + $0x228] ss:$16 sps:$4 sm:$0xff]   ;;  %v7827_v14 = vld [vmem:[#allocation8 + $0x22c] ss:$16 sps:$4 sm:$0xff]  }
  0x7f   :  { %v7749_v17 = vld [vmem:[#allocation2 + $0x90] ss:$8 sps:$4 sm:$0xff]   ;;  %v7750_v18 = vld [vmem:[#allocation2 + $0xa4] ss:$8 sps:$4 sm:$0xff]   ;;  %v7752_v23 = vld [vmem:[#allocation2 + $0xa0] ss:$8 sps:$4 sm:$0xff]  }
  0x80   :  { %v7828_v19 = vld [vmem:[#allocation8 + $0x200] ss:$16 sps:$4 sm:$0xff]   ;;  %v7830_v20 = vld [vmem:[#allocation8 + $0x204] ss:$16 sps:$4 sm:$0xff]   ;;  %v7831_v21 = vld [vmem:[#allocation8 + $0x208] ss:$16 sps:$4 sm:$0xff]  }
  0x81   :  { %712 = vmatpush1.bf16.msra.mxu0 %v7712_v31  ;;  %985 = vmatpush1.bf16.msra.mxu1 %v7713_v32  ;;  %v7833_v22 = vld [vmem:[#allocation8 + $0x20c] ss:$16 sps:$4 sm:$0xff]   ;;  %v7834_v27 = vld [vmem:[#allocation8 + $0x1e0] ss:$16 sps:$4 sm:$0xff]   ;;  %v7836_v28 = vld [vmem:[#allocation8 + $0x1e4] ss:$16 sps:$4 sm:$0xff]  }
  0x82   :  { %6920 = vmatprep.subr.msk.bf16.mxu0 %vm684_vm1, %v7714_v33  ;;  %6945 = vmatprep.subr.msk.bf16.mxu1 %vm684_vm1, %v7716_v34  ;;  %v7753_v24 = vld [vmem:[#allocation2 + $0xb4] ss:$8 sps:$4 sm:$0xff]   ;;  %v7755_v25 = vld [vmem:[#allocation2 + $0xb0] ss:$8 sps:$4 sm:$0xff]   ;;  %v7756_v26 = vld [vmem:[#allocation2 + $0xc4] ss:$8 sps:$4 sm:$0xff]  }
  0x83   :  { %v7837_v29 = vld [vmem:[#allocation8 + $0x1e8] ss:$16 sps:$4 sm:$0xff]   ;;  %v7839_v30 = vld [vmem:[#allocation8 + $0x1ec] ss:$16 sps:$4 sm:$0xff]   ;;  %v7840_v33 = vld [vmem:[#allocation8 + $0x3a0] ss:$16 sps:$4 sm:$0xff]  }
  0x84   :  { %v7758_v31 = vld [vmem:[#allocation2 + $0xc0] ss:$8 sps:$4 sm:$0xff]   ;;  %v7759_v32 = vld [vmem:[#allocation2 + $0xd4] ss:$8 sps:$4 sm:$0xff]   ;;  %v7761_v36 = vld [vmem:[#allocation2 + $0xd0] ss:$8 sps:$4 sm:$0xff]  }
  0x85   :  { %728 = vmatpush2.bf16.msra.mxu0 %v686_v37  ;;  %1001 = vmatpush2.bf16.msra.mxu1 %v692_v38  ;;  %v7842_v34 = vld [vmem:[#allocation8 + $0x3a4] ss:$16 sps:$4 sm:$0xff]   ;;  %v7843_v35 = vld [vmem:[#allocation8 + $0x3a8] ss:$16 sps:$4 sm:$0xff]   ;;  %v7845_v37 = vld [vmem:[#allocation8 + $0x3ac] ss:$16 sps:$4 sm:$0xff]  }
  0x86   :  { %1965 = vmatprep.subr.bf16.mxu0 %v7770_v44  ;;  %2078 = vmatprep.subr.bf16.mxu1 %v7773_v46  ;;  %v7762_v38 = vld [vmem:[#allocation2 + $0xe4] ss:$8 sps:$4 sm:$0xff]   ;;  %vm1940_vm2 = vcmask 916480   ;;  %vm5137_vm3 = vcmask 1043456   ;;  %vm5133_vm4 = vcmask 588800   ;;  %vm6704_vm5 = vcmask 1041408  }
  0x87   :  { %v7851_v44 = vld [vmem:[#allocation8 + $0x38c] ss:$16 sps:$4 sm:$0xff]   ;;  %vm6700_vm6 = vcmask 949248   ;;  %vm6790_vm7 = vcmask 80896  }
  0x88   :  { %730 = vmatmul.mubr.bf16.vlgmr.msra.gmra.mxu0 %v7720_v39  ;;  %1003 = vmatmul.mubr.bf16.vlgmr.msra.gmra.mxu1 %v7720_v39  ;;  %v7764_v39 = vld [vmem:[#allocation2 + $0xe0] ss:$8 sps:$4 sm:$0xff]   ;;  %v7774_v46 = vld [vmem:[#allocation2 + $0x104] ss:$8 sps:$4 sm:$0xff]  }
  0x89   :  { %6922 = vmatprep.mubr.msk.bf16.mxu0 %vm611_vm0, %v7723_v40  ;;  %6947 = vmatprep.mubr.msk.bf16.mxu1 %vm611_vm0, %v7723_v40  ;;  %v7765_v40 = vld [vmem:[#allocation2 + $0xf4] ss:$8 sps:$4 sm:$0xff]  }
  0x8a   :  { %1966 = vmatpush1.bf16.msra.mxu0 %v7768_v43  ;;  %2079 = vmatpush1.bf16.msra.mxu1 %v7771_v45  ;;  %v7849_v43 = vld [vmem:[#allocation8 + $0x388] ss:$16 sps:$4 sm:$0xff]  }
  0x8b   :  { %1967 = vmatprep.subr.bf16.mxu0 %v7779_v49  ;;  %2080 = vmatprep.subr.bf16.mxu1 %v7782_v51  ;;  %v7767_v45 = vld [vmem:[#allocation2 + $0xf0] ss:$8 sps:$4 sm:$0xff]  }
  0x8c   :  { %v7855_v49 = vld [vmem:[#allocation8 + $0x368] ss:$16 sps:$4 sm:$0xff]   ;;  %v7857_v51 = vld [vmem:[#allocation8 + $0x36c] ss:$16 sps:$4 sm:$0xff]  }
  0x8e   :  { %1968 = vmatpush1.bf16.msra.mxu0 %v7777_v48  ;;  %2081 = vmatpush1.bf16.msra.mxu1 %v7780_v52  ;;  %v7854_v48 = vld [vmem:[#allocation8 + $0x364] ss:$16 sps:$4 sm:$0xff]  }
  0x8f   :  { %1969 = vmatprep.subr.bf16.mxu0 %v7791_v54  ;;  %2082 = vmatprep.subr.bf16.mxu1 %v7794_v56  ;;  %v7783_v52 = vld [vmem:[#allocation2 + $0x114] ss:$8 sps:$4 sm:$0xff]   ;;  %v7786_v54 = vld [vmem:[#allocation2 + $0x124] ss:$8 sps:$4 sm:$0xff]  }
  0x90   :  { %740 = vmatmul.mubr.bf16.gmra.mxu0 %v7725_v41  ;;  %1013 = vmatmul.mubr.bf16.gmra.mxu1 %v7725_v41  ;;  %v7846_v41 = vld [vmem:[#allocation8 + $0x380] ss:$16 sps:$4 sm:$0xff]   ;;  %v7860_v56 = vld [vmem:[#allocation8 + $0x344] ss:$16 sps:$4 sm:$0xff]  }
  0x91   :  { %6923 = vmatprep.mubr.msk.bf16.mxu0 %vm611_vm0, %v7726_v42  ;;  %6948 = vmatprep.mubr.msk.bf16.mxu1 %vm611_vm0, %v7726_v42  ;;  %v7848_v42 = vld [vmem:[#allocation8 + $0x384] ss:$16 sps:$4 sm:$0xff]  }
  0x92   :  { %1970 = vmatpush1.bf16.msra.mxu0 %v7789_v53  ;;  %2083 = vmatpush1.bf16.msra.mxu1 %v7792_v55  ;;  %v7785_v53 = vld [vmem:[#allocation2 + $0x110] ss:$8 sps:$4 sm:$0xff]  }
  0x93   :  { %1971 = vmatprep.subr.bf16.mxu0 %v7803_v62  ;;  %2084 = vmatprep.subr.bf16.mxu1 %v7806_v0  ;;  %v7858_v55 = vld [vmem:[#allocation8 + $0x340] ss:$16 sps:$4 sm:$0xff]   ;;  %v7866_v0 = vld [vmem:[#allocation8 + $0x324] ss:$16 sps:$4 sm:$0xff]  }
  0x94   :  { %v7798_v62 = vld [vmem:[#allocation2 + $0x144] ss:$8 sps:$4 sm:$0xff]  }
  0x96   :  { %1972 = vmatpush1.bf16.msra.mxu0 %v7801_v61  ;;  %2085 = vmatpush1.bf16.msra.mxu1 %v7804_v63  ;;  %v7797_v61 = vld [vmem:[#allocation2 + $0x130] ss:$8 sps:$4 sm:$0xff]  }
  0x97   :  { %1973 = vmatprep.subr.bf16.mxu0 %v7812_v4  ;;  %2086 = vmatprep.subr.bf16.mxu1 %v7815_v6  ;;  %v7864_v63 = vld [vmem:[#allocation8 + $0x320] ss:$16 sps:$4 sm:$0xff]  }
  0x98   :  { %750 = vmatmul.mubr.bf16.gmra.mxu0 %v7728_v47  ;;  %1023 = vmatmul.mubr.bf16.gmra.mxu1 %v7728_v47  ;;  %v7852_v47 = vld [vmem:[#allocation8 + $0x360] ss:$16 sps:$4 sm:$0xff]  }
  0x99   :  { %6924 = vmatprep.mubr.msk.bf16.mxu0 %vm611_vm0, %v7729_v50  ;;  %6949 = vmatprep.mubr.msk.bf16.mxu1 %vm611_vm0, %v7729_v50  ;;  %v7776_v50 = vld [vmem:[#allocation2 + $0x100] ss:$8 sps:$4 sm:$0xff]   ;;  %v7807_v4 = vld [vmem:[#allocation2 + $0x154] ss:$8 sps:$4 sm:$0xff]   ;;  %v7816_v6 = vld [vmem:[#allocation2 + $0x164] ss:$8 sps:$4 sm:$0xff]  }
  0x9a   :  { %1974 = vmatpush1.bf16.msra.mxu0 %v7810_v3  ;;  %2087 = vmatpush1.bf16.msra.mxu1 %v7813_v5  ;;  %v7800_v3 = vld [vmem:[#allocation2 + $0x140] ss:$8 sps:$4 sm:$0xff]   ;;  %v7809_v5 = vld [vmem:[#allocation2 + $0x150] ss:$8 sps:$4 sm:$0xff]  }
  0x9b   :  { %1975 = vmatprep.subr.bf16.mxu0 %v7824_v12  ;;  %2088 = vmatprep.subr.bf16.mxu1 %v7827_v14  ;;  %v7819_v12 = vld [vmem:[#allocation2 + $0x174] ss:$8 sps:$4 sm:$0xff]  }
  0x9c   :  { %v7878_v14 = vld [vmem:[#allocation8 + $0x2e4] ss:$16 sps:$4 sm:$0xff]  }
  0x9e   :  { %1976 = vmatpush1.bf16.msra.mxu0 %v7822_v11  ;;  %2089 = vmatpush1.bf16.msra.mxu1 %v7825_v13  ;;  %v7818_v11 = vld [vmem:[#allocation2 + $0x160] ss:$8 sps:$4 sm:$0xff]   ;;  %v7821_v13 = vld [vmem:[#allocation2 + $0x170] ss:$8 sps:$4 sm:$0xff]  }
  0x9f   :  { %1977 = vmatprep.subr.bf16.mxu0 %v7830_v20  ;;  %2090 = vmatprep.subr.bf16.mxu1 %v7833_v22 }
  0xa0   :  { %760 = vmatmul.mubr.bf16.gmra.mxu0 %v7731_v57  ;;  %1033 = vmatmul.mubr.bf16.gmra.mxu1 %v7731_v57  ;;  %v7861_v57 = vld [vmem:[#allocation8 + $0x348] ss:$16 sps:$4 sm:$0xff]  }
  0xa1   :  { %6925 = vmatprep.mubr.msk.bf16.mxu0 %vm611_vm0, %v7732_v58  ;;  %6950 = vmatprep.mubr.msk.bf16.mxu1 %vm611_vm0, %v7732_v58  ;;  %v7863_v58 = vld [vmem:[#allocation8 + $0x34c] ss:$16 sps:$4 sm:$0xff]  }
  0xa2   :  { %1978 = vmatpush1.bf16.msra.mxu0 %v7828_v19  ;;  %2091 = vmatpush1.bf16.msra.mxu1 %v7831_v21  ;;  %v7887_v19 = vld [vmem:[#allocation8 + $0xec] ss:$16 sps:$4 sm:$0xff]  }
  0xa3   :  { %1979 = vmatprep.subr.bf16.mxu0 %v7836_v28  ;;  %2092 = vmatprep.subr.bf16.mxu1 %v7839_v30 }
  0xa6   :  { %1980 = vmatpush1.bf16.msra.mxu0 %v7834_v27  ;;  %2093 = vmatpush1.bf16.msra.mxu1 %v7837_v29 }
  0xa7   :  { %1983 = vmatprep.subr.bf16.mxu0 %v7842_v34  ;;  %2096 = vmatprep.subr.bf16.mxu1 %v7845_v37 }
  0xa8   :  { %770 = vmatmul.mubr.bf16.gmra.mxu0 %v7734_v59  ;;  %1043 = vmatmul.mubr.bf16.gmra.mxu1 %v7734_v59  ;;  %v7788_v59 = vld [vmem:[#allocation2 + $0x120] ss:$8 sps:$4 sm:$0xff]  }
  0xa9   :  { %6926 = vmatprep.mubr.msk.bf16.mxu0 %vm611_vm0, %v7735_v60  ;;  %6951 = vmatprep.mubr.msk.bf16.mxu1 %vm611_vm0, %v7735_v60  ;;  %v7795_v60 = vld [vmem:[#allocation2 + $0x134] ss:$8 sps:$4 sm:$0xff]  }
  0xaa   :  { %1984 = vmatpush2.bf16.msra.mxu0 %v7840_v33  ;;  %2097 = vmatpush2.bf16.msra.mxu1 %v7843_v35 }
  0xab   :  { %1985 = vmatprep.subr.bf16.mxu0 %v7848_v42  ;;  %2098 = vmatprep.subr.bf16.mxu1 %v7851_v44 }
  0xae   :  { %1986 = vmatpush2.bf16.msra.mxu0 %v7846_v41  ;;  %2099 = vmatpush2.bf16.msra.mxu1 %v7849_v43 }
  0xaf   :  { %1987 = vmatprep.subr.bf16.mxu0 %v7854_v48  ;;  %2100 = vmatprep.subr.bf16.mxu1 %v7857_v51 }
  0xb0   :  { %780 = vmatmul.mubr.bf16.gmra.mxu0 %v7737_v1  ;;  %1053 = vmatmul.mubr.bf16.gmra.mxu1 %v7737_v1  ;;  %v7867_v1 = vld [vmem:[#allocation8 + $0x328] ss:$16 sps:$4 sm:$0xff]  }
  0xb1   :  { %6927 = vmatprep.mubr.msk.bf16.mxu0 %vm611_vm0, %v7738_v2  ;;  %6952 = vmatprep.mubr.msk.bf16.mxu1 %vm611_vm0, %v7738_v2  ;;  %v7869_v2 = vld [vmem:[#allocation8 + $0x32c] ss:$16 sps:$4 sm:$0xff]  }
  0xb2   :  { %1988 = vmatpush2.bf16.msra.mxu0 %v7852_v47  ;;  %2101 = vmatpush2.bf16.msra.mxu1 %v7855_v49 }
  0xb3   :  { %1989 = vmatprep.subr.bf16.mxu0 %v7860_v56  ;;  %2102 = vmatprep.subr.bf16.mxu1 %v7863_v58 }
  0xb6   :  { %1990 = vmatpush2.bf16.msra.mxu0 %v7858_v55  ;;  %2103 = vmatpush2.bf16.msra.mxu1 %v7861_v57 }
  0xb7   :  { %1991 = vmatprep.subr.bf16.mxu0 %v7866_v0  ;;  %2104 = vmatprep.subr.bf16.mxu1 %v7869_v2 }
  0xb8   :  { %790 = vmatmul.mubr.bf16.gmra.mxu0 %v7740_v7  ;;  %1063 = vmatmul.mubr.bf16.gmra.mxu1 %v7740_v7  ;;  %v7870_v7 = vld [vmem:[#allocation8 + $0x300] ss:$16 sps:$4 sm:$0xff]  }
  0xb9   :  { %6928 = vmatprep.mubr.msk.bf16.mxu0 %vm611_vm0, %v7741_v8  ;;  %6953 = vmatprep.mubr.msk.bf16.mxu1 %vm611_vm0, %v7741_v8  ;;  %v7872_v8 = vld [vmem:[#allocation8 + $0x304] ss:$16 sps:$4 sm:$0xff]  }
  0xba   :  { %1992 = vmatpush2.bf16.msra.mxu0 %v7864_v63  ;;  %2105 = vmatpush2.bf16.msra.mxu1 %v7867_v1 }
  0xbb   :  { %1993 = vmatprep.subr.bf16.mxu0 %v7872_v8 }
  0xbe   :  { %1994 = vmatpush2.bf16.msra.mxu0 %v7870_v7 }
  0xbf   :  { %1995 = vmatprep.subr.bf16.mxu0 %v7878_v14 }
  0xc0   :  { %800 = vmatmul.mubr.bf16.gmra.mxu0 %v7743_v9  ;;  %1073 = vmatmul.mubr.bf16.gmra.mxu1 %v7743_v9  ;;  %v7873_v9 = vld [vmem:[#allocation8 + $0x308] ss:$16 sps:$4 sm:$0xff]  }
  0xc1   :  { %6929 = vmatprep.mubr.msk.bf16.mxu0 %vm611_vm0, %v7744_v10  ;;  %6954 = vmatprep.mubr.msk.bf16.mxu1 %vm611_vm0, %v7744_v10  ;;  %v7875_v10 = vld [vmem:[#allocation8 + $0x30c] ss:$16 sps:$4 sm:$0xff]  }
  0xc2   :  { %2106 = vmatprep.subr.bf16.mxu1 %v7875_v10 }
  0xc3   :  { %2107 = vmatpush2.bf16.msra.mxu1 %v7873_v9 }
  0xc8   :  { %810 = vmatmul.mubr.bf16.gmra.mxu0 %v7746_v15  ;;  %1083 = vmatmul.mubr.bf16.gmra.mxu1 %v7746_v15  ;;  %v7881_v15 = vld [vmem:[#allocation8 + $0x2ec] ss:$16 sps:$4 sm:$0xff]  }
  0xc9   :  { %6930 = vmatprep.mubr.msk.bf16.mxu0 %vm611_vm0, %v7747_v16  ;;  %6955 = vmatprep.mubr.msk.bf16.mxu1 %vm611_vm0, %v7747_v16  ;;  %v7876_v16 = vld [vmem:[#allocation8 + $0x2e0] ss:$16 sps:$4 sm:$0xff]  }
  0xca   :  { %2108 = vmatprep.subr.bf16.mxu1 %v7881_v15  ;;  %1996 = vmatpush2.bf16.msra.mxu0 %v7876_v16 }
  0xd0   :  { %820 = vmatmul.mubr.bf16.gmra.mxu0 %v7749_v17  ;;  %1093 = vmatmul.mubr.bf16.gmra.mxu1 %v7749_v17  ;;  %v7879_v17 = vld [vmem:[#allocation8 + $0x2e8] ss:$16 sps:$4 sm:$0xff]  }
  0xd1   :  { %6931 = vmatprep.mubr.msk.bf16.mxu0 %vm611_vm0, %v7750_v18  ;;  %6956 = vmatprep.mubr.msk.bf16.mxu1 %vm611_vm0, %v7750_v18  ;;  %v7884_v18 = vld [vmem:[#allocation8 + $0xe4] ss:$16 sps:$4 sm:$0xff]  }
  0xd2   :  { %2109 = vmatpush2.bf16.msra.mxu1 %v7879_v17  ;;  %2494 = vmatprep.subr.bf16.mxu0 %v7884_v18 }
  0xd3   :  { %2607 = vmatprep.subr.bf16.mxu1 %v7887_v19 }
  0xd8   :  { %830 = vmatmul.mubr.bf16.gmra.mxu0 %v7752_v23  ;;  %1103 = vmatmul.mubr.bf16.gmra.mxu1 %v7752_v23 }
  0xd9   :  { %6932 = vmatprep.mubr.msk.bf16.mxu0 %vm611_vm0, %v7753_v24  ;;  %6957 = vmatprep.mubr.msk.bf16.mxu1 %vm611_vm0, %v7753_v24 }
  0xe0   :  { %840 = vmatmul.mubr.bf16.gmra.mxu0 %v7755_v25  ;;  %1113 = vmatmul.mubr.bf16.gmra.mxu1 %v7755_v25 }
  0xe1   :  { %6933 = vmatprep.mubr.msk.bf16.mxu0 %vm611_vm0, %v7756_v26  ;;  %6958 = vmatprep.mubr.msk.bf16.mxu1 %vm611_vm0, %v7756_v26 }
  0xe8   :  { %850 = vmatmul.mubr.bf16.gmra.mxu0 %v7758_v31  ;;  %1123 = vmatmul.mubr.bf16.gmra.mxu1 %v7758_v31 }
  0xe9   :  { %6934 = vmatprep.mubr.msk.bf16.mxu0 %vm611_vm0, %v7759_v32  ;;  %6959 = vmatprep.mubr.msk.bf16.mxu1 %vm611_vm0, %v7759_v32 }
  0xf0   :  { %860 = vmatmul.mubr.bf16.gmra.mxu0 %v7761_v36  ;;  %1133 = vmatmul.mubr.bf16.gmra.mxu1 %v7761_v36 }
  0xf1   :  { %6935 = vmatprep.mubr.msk.bf16.mxu0 %vm611_vm0, %v7762_v38  ;;  %6960 = vmatprep.mubr.msk.bf16.mxu1 %vm611_vm0, %v7762_v38 }
  0xf8   :  { %870 = vmatmul.mubr.bf16.gmra.mxu0 %v7764_v39  ;;  %1143 = vmatmul.mubr.bf16.gmra.mxu1 %v7764_v39 }
  0xf9   :  { %6936 = vmatprep.mubr.msk.bf16.mxu0 %vm611_vm0, %v7765_v40  ;;  %6961 = vmatprep.mubr.msk.bf16.mxu1 %vm611_vm0, %v7765_v40 }
 0x100   :  { %880 = vmatmul.mubr.bf16.gmra.mxu0 %v7767_v45  ;;  %1153 = vmatmul.mubr.bf16.gmra.mxu1 %v7767_v45 }
 0x101   :  { %6937 = vmatprep.mubr.msk.bf16.mxu0 %vm611_vm0, %v7774_v46  ;;  %6962 = vmatprep.mubr.msk.bf16.mxu1 %vm611_vm0, %v7774_v46 }
 0x108   :  { %890 = vmatmul.mubr.bf16.gmra.mxu0 %v7776_v50  ;;  %1163 = vmatmul.mubr.bf16.gmra.mxu1 %v7776_v50 }
 0x109   :  { %6938 = vmatprep.mubr.msk.bf16.mxu0 %vm611_vm0, %v7783_v52  ;;  %6963 = vmatprep.mubr.msk.bf16.mxu1 %vm611_vm0, %v7783_v52 }
 0x110   :  { %900 = vmatmul.mubr.bf16.gmra.mxu0 %v7785_v53  ;;  %1173 = vmatmul.mubr.bf16.gmra.mxu1 %v7785_v53 }
 0x111   :  { %6939 = vmatprep.mubr.msk.bf16.mxu0 %vm611_vm0, %v7786_v54  ;;  %6964 = vmatprep.mubr.msk.bf16.mxu1 %vm611_vm0, %v7786_v54 }
 0x118   :  { %910 = vmatmul.mubr.bf16.gmra.mxu0 %v7788_v59  ;;  %1183 = vmatmul.mubr.bf16.gmra.mxu1 %v7788_v59 }
 0x119   :  { %6940 = vmatprep.mubr.msk.bf16.mxu0 %vm611_vm0, %v7795_v60  ;;  %6965 = vmatprep.mubr.msk.bf16.mxu1 %vm611_vm0, %v7795_v60 }
 0x120   :  { %920 = vmatmul.mubr.bf16.gmra.mxu0 %v7797_v61  ;;  %1193 = vmatmul.mubr.bf16.gmra.mxu1 %v7797_v61 }
 0x121   :  { %6941 = vmatprep.mubr.msk.bf16.mxu0 %vm611_vm0, %v7798_v62  ;;  %6966 = vmatprep.mubr.msk.bf16.mxu1 %vm611_vm0, %v7798_v62 }
 0x128   :  { %930 = vmatmul.mubr.bf16.gmra.mxu0 %v7800_v3  ;;  %1203 = vmatmul.mubr.bf16.gmra.mxu1 %v7800_v3 }
 0x129   :  { %6942 = vmatprep.mubr.msk.bf16.mxu0 %vm611_vm0, %v7807_v4  ;;  %6967 = vmatprep.mubr.msk.bf16.mxu1 %vm611_vm0, %v7807_v4 }
 0x130   :  { %940 = vmatmul.mubr.bf16.gmra.mxu0 %v7809_v5  ;;  %1213 = vmatmul.mubr.bf16.gmra.mxu1 %v7809_v5 }
 0x131   :  { %6943 = vmatprep.mubr.msk.bf16.mxu0 %vm611_vm0, %v7816_v6  ;;  %6968 = vmatprep.mubr.msk.bf16.mxu1 %vm611_vm0, %v7816_v6 }
 0x138   :  { %950 = vmatmul.mubr.bf16.gmra.mxu0 %v7818_v11  ;;  %1223 = vmatmul.mubr.bf16.gmra.mxu1 %v7818_v11 }
 0x139   :  { %6944 = vmatprep.mubr.msk.bf16.mxu0 %vm611_vm0, %v7819_v12  ;;  %6969 = vmatprep.mubr.msk.bf16.mxu1 %vm611_vm0, %v7819_v12 }
 0x140   :  { %960 = vmatmul.mubr.bf16.gmra.mxu0 %v7821_v13  ;;  %1233 = vmatmul.mubr.bf16.gmra.mxu1 %v7821_v13 }
 0x148   :  { %v8916_v20 = vpop.f32.mrf.mxu0  ;;  %v8918_v21 = vpop.f32.mrf.mxu1 }
 0x14a   :  { %v8922_v23 = vpop.f32.mrf.mxu0  ;;  %v8924_v24 = vpop.f32.mrf.mxu1 }
 0x14c   :  { %v8928_v26 = vpop.f32.mrf.mxu0  ;;  %v8930_v27 = vpop.f32.mrf.mxu1 }
 0x14e   :  { %v8934_v29 = vpop.f32.mrf.mxu0  ;;  %v8936_v30 = vpop.f32.mrf.mxu1 }
 0x14f   :  { %10717 = vst [vmem:[#allocation23_spill] sm:$0xff] %v8934_v29  ;;  %10718 = vst [vmem:[#allocation24_spill] sm:$0xff] %v8936_v30 }
 0x150   :  { %v8938_v31 = vpop.f32.mrf.mxu0  ;;  %v8940_v32 = vpop.f32.mrf.mxu1 }
 0x152   :  { %v8944_v34 = vpop.f32.mrf.mxu0  ;;  %v8946_v35 = vpop.f32.mrf.mxu1 }
 0x154   :  { %v8950_v37 = vpop.f32.mrf.mxu0  ;;  %v8952_v38 = vpop.f32.mrf.mxu1 }
 0x156   :  { %v8956_v40 = vpop.f32.mrf.mxu0  ;;  %v8958_v41 = vpop.f32.mrf.mxu1 }
 0x158   :  { %v8960_v42 = vpop.f32.mrf.mxu0  ;;  %v8962_v43 = vpop.f32.mrf.mxu1 }
 0x15a   :  { %v8966_v45 = vpop.f32.mrf.mxu0  ;;  %v8968_v46 = vpop.f32.mrf.mxu1 }
 0x15c   :  { %v8972_v48 = vpop.f32.mrf.mxu0  ;;  %v8974_v49 = vpop.f32.mrf.mxu1 }
 0x15e   :  { %v8978_v51 = vpop.f32.mrf.mxu0  ;;  %v8980_v52 = vpop.f32.mrf.mxu1 }
 0x160   :  { %v8982_v53 = vpop.f32.mrf.mxu0  ;;  %v8984_v54 = vpop.f32.mrf.mxu1 }
 0x162   :  { %v8988_v56 = vpop.f32.mrf.mxu0  ;;  %v8990_v57 = vpop.f32.mrf.mxu1 }
 0x164   :  { %v8994_v59 = vpop.f32.mrf.mxu0  ;;  %v8996_v60 = vpop.f32.mrf.mxu1 }
 0x166   :  { %v9000_v62 = vpop.f32.mrf.mxu0  ;;  %v9002_v63 = vpop.f32.mrf.mxu1 }
 0x168   :  { %v9004_v0 = vpop.f32.mrf.mxu0  ;;  %v9006_v1 = vpop.f32.mrf.mxu1 }
 0x16a   :  { %v9010_v3 = vpop.f32.mrf.mxu0  ;;  %v9012_v4 = vpop.f32.mrf.mxu1 }
 0x16c   :  { %v9016_v6 = vpop.f32.mrf.mxu0  ;;  %v9018_v7 = vpop.f32.mrf.mxu1 }
 0x16e   :  { %v9022_v9 = vpop.f32.mrf.mxu0  ;;  %v9024_v10 = vpop.f32.mrf.mxu1 }
 0x170   :  { %v9026_v11 = vpop.f32.mrf.mxu0  ;;  %v9028_v12 = vpop.f32.mrf.mxu1 }
 0x172   :  { %v9032_v14 = vpop.f32.mrf.mxu0  ;;  %v9034_v15 = vpop.f32.mrf.mxu1 }
 0x174   :  { %v9038_v17 = vpop.f32.mrf.mxu0  ;;  %v9040_v18 = vpop.f32.mrf.mxu1 }
 0x176   :  { %v9044_v8 = vpop.f32.mrf.mxu0  ;;  %v9046_v5 = vpop.f32.mrf.mxu1 }
 0x178   :  { %v9048_v2 = vpop.f32.mrf.mxu0  ;;  %v9050_v13 = vpop.f32.mrf.mxu1 }
 0x179   :  { %10719 = vst [vmem:[#allocation25_spill] sm:$0xff] %v9048_v2  ;;  %10720 = vst [vmem:[#allocation26_spill] sm:$0xff] %v9050_v13 }
 0x17a   :  { %v9054_v58 = vpop.f32.mrf.mxu0  ;;  %v9056_v16 = vpop.f32.mrf.mxu1 }
 0x17b   :  { %10721 = vst [vmem:[#allocation27_spill] sm:$0xff] %v9054_v58  ;;  %10722 = vst [vmem:[#allocation28_spill] sm:$0xff] %v9056_v16 }
 0x17c   :  { %v9060_v50 = vpop.f32.mrf.mxu0  ;;  %v9062_v19 = vpop.f32.mrf.mxu1 }
 0x17d   :  { %10723 = vst [vmem:[#allocation29_spill] sm:$0xff] %v9060_v50  ;;  %10724 = vst [vmem:[#allocation30_spill] sm:$0xff] %v9062_v19 }
 0x17e   :  { %v9066_v44 = vpop.f32.mrf.mxu0  ;;  %v9068_v39 = vpop.f32.mrf.mxu1 }
 0x17f   :  { %10725 = vst [vmem:[#allocation31_spill] sm:$0xff] %v9066_v44  ;;  %10726 = vst [vmem:[#allocation32_spill] sm:$0xff] %v9068_v39  ;;  %v1387_v39 = vld [vmem:[#allocation7] sm:$0x3] }
 0x180   :  { %v9070_v36 = vpop.f32.mrf.mxu0  ;;  %v9072_v61 = vpop.f32.mrf.mxu1 }
 0x181   :  { %10727 = vst [vmem:[#allocation33_spill] sm:$0xff] %v9070_v36  ;;  %10728 = vst [vmem:[#allocation34_spill] sm:$0xff] %v9072_v61 }
 0x182   :  { %v9076_v28 = vpop.f32.mrf.mxu0  ;;  %v9078_v55 = vpop.f32.mrf.mxu1 }
 0x183   :  { %10729 = vst [vmem:[#allocation35_spill] sm:$0xff] %v9076_v28  ;;  %10730 = vst [vmem:[#allocation36_spill] sm:$0xff] %v9078_v55 }
 0x184   :  { %v9082_v22 = vpop.f32.mrf.mxu0  ;;  %v9084_v47 = vpop.f32.mrf.mxu1 }
 0x185   :  { %10731 = vst [vmem:[#allocation37_spill] sm:$0xff] %v9082_v22  ;;  %10732 = vst [vmem:[#allocation38_spill] sm:$0xff] %v9084_v47 }
 0x186   :  { %v9088_v30 = vpop.f32.mrf.mxu0  ;;  %v9090_v19 = vpop.f32.mrf.mxu1 }
 0x187   :  { %10733 = vst [vmem:[#allocation39_spill] sm:$0xff] %v9088_v30  ;;  %10734 = vst [vmem:[#allocation40_spill] sm:$0xff] %v9090_v19 }
 0x188   :  { %v9092_v50 = vpop.f32.mrf.mxu0  ;;  %v9094_v33 = vpop.f32.mrf.mxu1 }
 0x189   :  { %10735 = vst [vmem:[#allocation41_spill] sm:$0xff] %v9092_v50  ;;  %10736 = vst [vmem:[#allocation42_spill] sm:$0xff] %v9094_v33 }
 0x18a   :  { %v9098_v36 = vpop.f32.mrf.mxu0  ;;  %v9100_v25 = vpop.f32.mrf.mxu1 }
 0x18b   :  { %10737 = vst [vmem:[#allocation43_spill] sm:$0xff] %v9098_v36  ;;  %10738 = vst [vmem:[#allocation44_spill] sm:$0xff] %v9100_v25 }
 0x18c   :  { %v9104_v28 = vpop.f32.mrf.mxu0  ;;  %v9106_v29 = vpop.f32.mrf.mxu1 }
 0x18d   :  { %10739 = vst [vmem:[#allocation45_spill] sm:$0xff] %v9104_v28  ;;  %10740 = vst [vmem:[#allocation46_spill] sm:$0xff] %v9106_v29 }
 0x18e   :  { %v9110_v19 = vpop.f32.mrf.mxu0  ;;  %v9112_v47 = vpop.f32.mrf.mxu1 }
 0x18f   :  { %10741 = vst [vmem:[#allocation47_spill] sm:$0xff] %v9110_v19  ;;  %10742 = vst [vmem:[#allocation48_spill] sm:$0xff] %v9112_v47 }
 0x190   :  { %v9114_v22 = vpop.f32.mrf.mxu0  ;;  %v9116_v61 = vpop.f32.mrf.mxu1 }
 0x191   :  { %10743 = vst [vmem:[#allocation49_spill] sm:$0xff] %v9114_v22  ;;  %10744 = vst [vmem:[#allocation50_spill] sm:$0xff] %v9116_v61 }
 0x192   :  { %v9120_v50 = vpop.f32.mrf.mxu0  ;;  %v9122_v55 = vpop.f32.mrf.mxu1 }
 0x193   :  { %10745 = vst [vmem:[#allocation51_spill] sm:$0xff] %v9120_v50  ;;  %10746 = vst [vmem:[#allocation52_spill] sm:$0xff] %v9122_v55 }
 0x194   :  { %v9126_v36 = vpop.f32.mrf.mxu0  ;;  %v9128_v30 = vpop.f32.mrf.mxu1 }
 0x195   :  { %10747 = vst [vmem:[#allocation53_spill] sm:$0xff] %v9126_v36  ;;  %10748 = vst [vmem:[#allocation54_spill] sm:$0xff] %v9128_v30  ;;  %v1389_v36 = vlaneseq }
 0x196   :  { %v9132_v28 = vpop.f32.mrf.mxu0  ;;  %v9134_v19 = vpop.f32.mrf.mxu1 }
 0x197   :  { %10749 = vst [vmem:[#allocation55_spill] sm:$0xff] %v9132_v28  ;;  %10750 = vst [vmem:[#allocation56_spill] sm:$0xff] %v9134_v19  ;;  %v9170_v28 = vshrl.u32 %v1389_v36, 7 }
 0x198   :  { %v9136_v47 = vpop.f32.mrf.mxu0  ;;  %v9138_v33 = vpop.f32.mrf.mxu1 }
 0x199   :  { %10751 = vst [vmem:[#allocation57_spill] sm:$0xff] %v9136_v47  ;;  %10752 = vst [vmem:[#allocation58_spill] sm:$0xff] %v9138_v33  ;;  %v9183_v47 = vsub.s32 0, %v9170_v28 }
 0x19a   :  { %v9142_v22 = vpop.f32.mrf.mxu0  ;;  %v9144_v25 = vpop.f32.mrf.mxu1  ;;  %10763 = vst [vmem:[#allocation69_spill] sm:$0xff] %v9170_v28 }
 0x19b   :  { %10753 = vst [vmem:[#allocation59_spill] sm:$0xff] %v9142_v22  ;;  %10754 = vst [vmem:[#allocation60_spill] sm:$0xff] %v9144_v25  ;;  %v9189_v58 = vrot.slane %v1387_v39, %v9183_v47 }
 0x19c   :  { %v9148_v50 = vpop.f32.mrf.mxu0  ;;  %v9150_v29 = vpop.f32.mrf.mxu1  ;;  %10768 = vst [vmem:[#allocation74_spill] sm:$0xff] %v9183_v47 }
 0x19d   :  { %10755 = vst [vmem:[#allocation61_spill] sm:$0xff] %v9148_v50  ;;  %10756 = vst [vmem:[#allocation62_spill] sm:$0xff] %v9150_v29 }
 0x19e   :  { %v9154_v19 = vpop.f32.mrf.mxu0  ;;  %v9156_v30 = vpop.f32.mrf.mxu1 }
 0x19f   :  { %10757 = vst [vmem:[#allocation63_spill] sm:$0xff] %v9154_v19  ;;  %10758 = vst [vmem:[#allocation64_spill] sm:$0xff] %v9156_v30 }
 0x1a0   :  { %v9158_v61 = vpop.f32.mrf.mxu0  ;;  %v9160_v33 = vpop.f32.mrf.mxu1 }
 0x1a1   :  { %10759 = vst [vmem:[#allocation65_spill] sm:$0xff] %v9158_v61  ;;  %10760 = vst [vmem:[#allocation66_spill] sm:$0xff] %v9160_v33 }
 0x1a2   :  { %v9164_v55 = vpop.f32.mrf.mxu0  ;;  %v9166_v25 = vpop.f32.mrf.mxu1 }
 0x1a3   :  { %10761 = vst [vmem:[#allocation67_spill] sm:$0xff] %v9164_v55  ;;  %10762 = vst [vmem:[#allocation68_spill] sm:$0xff] %v9166_v25  ;;  %v10769_v55 = vmax.f32 %v8916_v20, %v8918_v21  ;;  %v10772_v20 = vmax.f32 %v8928_v26, %v8930_v27 }
 0x1a4   :  { %v9172_v19 = vpop.f32.mrf.mxu0  ;;  %v9174_v30 = vpop.f32.mrf.mxu1 }
 0x1a5   :  { %10764 = vst [vmem:[#allocation70_spill] sm:$0xff] %v9172_v19  ;;  %10765 = vst [vmem:[#allocation71_spill] sm:$0xff] %v9174_v30 }
 0x1a6   :  { %v9178_v50 = vpop.f32.mrf.mxu0  ;;  %v9180_v44 = vpop.f32.mrf.mxu1 }
 0x1a7   :  { %10766 = vst [vmem:[#allocation72_spill] sm:$0xff] %v9178_v50  ;;  %10767 = vst [vmem:[#allocation73_spill] sm:$0xff] %v9180_v44  ;;  %v10770_v44 = vmax.f32 %v8922_v23, %v8924_v24 }
 0x1a8   :  { %v851_v33 = vpop.f32.mrf.mxu0  ;;  %v1124_v61 = vpop.f32.mrf.mxu1 }
 0x1a9   :  { %v1291_v22 = vmax.f32 %v851_v33, %v1124_v61 }
 0x1aa   :  { %v853_v36 = vpop.f32.mrf.mxu0  ;;  %v1126_v25 = vpop.f32.mrf.mxu1 }
 0x1ab   :  { %v1339_v16 = vmax.f32 %v10769_v55, %v1291_v22  ;;  %v1292_v29 = vmax.f32 %v853_v36, %v1126_v25 }
 0x1ac   :  { %v855_v50 = vpop.f32.mrf.mxu0  ;;  %v1128_v30 = vpop.f32.mrf.mxu1 }
 0x1ad   :  { %v9194_v19 = vmax.f32 %v10770_v44, %v1292_v29  ;;  %v1293_v13 = vmax.f32 %v855_v50, %v1128_v30  ;;  %v1399_v61 = vadd.f32 %v9189_v58, %v1339_v16  ;;  %v9206_v44 = vsub.s32 1, %v9170_v28  ;;  %v8200_v28 = vld [vmem:[#allocation8 + $0x940] ss:$16 sps:$4 sm:$0xff]  }
 0x1ae   :  { %v9196_v2 = vpop.f32.mrf.mxu0  ;;  %v9198_v33 = vpop.f32.mrf.mxu1  ;;  %v10774_v50 = vmax.f32 %v8938_v31, %v8940_v32  ;;  %v10776_v32 = vmax.f32 %v8950_v37, %v8952_v38 }
 0x1af   :  { %10771 = vst [vmem:[#allocation75_spill] sm:$0xff] %v9194_v19  ;;  %v1341_v21 = vmax.f32 %v10772_v20, %v1293_v13  ;;  %v1447_v24 = vmax.f32 %v1399_v61, 0.0  ;;  %10773 = vst [vmem:[#allocation76_spill] sm:$0xff] %v9206_v44  ;;  %v10775_v13 = vmax.f32 %v8944_v34, %v8946_v35 }
 0x1b0   :  { %v861_v22 = vpop.f32.mrf.mxu0  ;;  %v1134_v25 = vpop.f32.mrf.mxu1 }
 0x1b1   :  { %v1401_v55 = vadd.f32 %v9189_v58, %v1341_v21  ;;  %v1295_v36 = vmax.f32 %v861_v22, %v1134_v25 }
 0x1b2   :  { %v863_v47 = vpop.f32.mrf.mxu0  ;;  %v1136_v23 = vpop.f32.mrf.mxu1 }
 0x1b3   :  { %v1449_v29 = vmax.f32 %v1401_v55, 0.0  ;;  %v1296_v30 = vmax.f32 %v863_v47, %v1136_v23  ;;  %v1343_v16 = vmax.f32 %v10774_v50, %v1295_v36  ;;  %v1250_v47 = vmax.f32 %v8956_v40, %v8958_v41 }
 0x1b4   :  { %v865_v19 = vpop.f32.mrf.mxu0  ;;  %v1138_v26 = vpop.f32.mrf.mxu1  ;;  %v9219_v55 = vrot.slane %v1387_v39, %v9206_v44  ;;  %v10777_v39 = vmax.f32 %v8960_v42, %v8962_v43  ;;  %v1254_v42 = vmax.f32 %v8978_v51, %v8980_v52  ;;  %v7890_v51 = vld [vmem:[#allocation8 + $0xc4] ss:$16 sps:$4 sm:$0xff]   ;;  %v7893_v52 = vld [vmem:[#allocation8 + $0xcc] ss:$16 sps:$4 sm:$0xff]   ;;  %v8203_v44 = vld [vmem:[#allocation8 + $0x948] ss:$16 sps:$4 sm:$0xff]  }
 0x1b5   :  { %v9211_v27 = vpack.c.bf16 %v1449_v29, %v1447_v24  ;;  %v1344_v20 = vmax.f32 %v10775_v13, %v1296_v30  ;;  %v1297_v21 = vmax.f32 %v865_v19, %v1138_v26  ;;  %v1403_v31 = vadd.f32 %v9189_v58, %v1343_v16 }
 0x1b6   :  { %v867_v22 = vpop.f32.mrf.mxu0  ;;  %v1140_v61 = vpop.f32.mrf.mxu1 }
 0x1b7   :  { %v1298_v25 = vmax.f32 %v867_v22, %v1140_v61  ;;  %v1345_v36 = vmax.f32 %v10776_v32, %v1297_v21  ;;  %v1404_v19 = vadd.f32 %v9219_v55, %v1344_v20  ;;  %v1451_v26 = vmax.f32 %v1403_v31, 0.0 }
 0x1b8   :  { %v871_v23 = vpop.f32.mrf.mxu0  ;;  %v1144_v24 = vpop.f32.mrf.mxu1  ;;  %v10778_v22 = vmax.f32 %v8966_v45, %v8968_v46  ;;  %v10779_v31 = vmax.f32 %v8972_v48, %v8974_v49 }
 0x1b9   :  { %v1346_v34 = vmax.f32 %v1250_v47, %v1298_v25  ;;  %v1299_v35 = vmax.f32 %v871_v23, %v1144_v24  ;;  %v1405_v29 = vadd.f32 %v9189_v58, %v1345_v36  ;;  %v1452_v47 = vmax.f32 %v1404_v19, 0.0  ;;  %v7885_v19 = vld [vmem:[#allocation8 + $0xe8] ss:$16 sps:$4 sm:$0xff]  }
 0x1ba   :  { %v873_v30 = vpop.f32.mrf.mxu0  ;;  %v1146_v40 = vpop.f32.mrf.mxu1 }
 0x1bb   :  { %v1406_v41 = vadd.f32 %v9219_v55, %v1346_v34  ;;  %v1347_v50 = vmax.f32 %v10777_v39, %v1299_v35  ;;  %v1300_v16 = vmax.f32 %v873_v30, %v1146_v40  ;;  %v1453_v37 = vmax.f32 %v1405_v29, 0.0  ;;  %v7882_v35 = vld [vmem:[#allocation8 + $0xe0] ss:$16 sps:$4 sm:$0xff]  }
 0x1bc   :  { %v875_v38 = vpop.f32.mrf.mxu0  ;;  %v1148_v13 = vpop.f32.mrf.mxu1 }
 0x1bd   :  { %v1454_v21 = vmax.f32 %v1406_v41, 0.0  ;;  %v1348_v20 = vmax.f32 %v10778_v22, %v1300_v16  ;;  %v1301_v61 = vmax.f32 %v875_v38, %v1148_v13  ;;  %v9234_v25 = vpack.c.bf16 %v1453_v37, %v1451_v26  ;;  %v7888_v22 = vld [vmem:[#allocation8 + $0xc0] ss:$16 sps:$4 sm:$0xff]  }
 0x1be   :  { %v877_v32 = vpop.f32.mrf.mxu0  ;;  %v1150_v36 = vpop.f32.mrf.mxu1  ;;  %v1407_v43 = vadd.f32 %v9189_v58, %v1347_v50  ;;  %v10780_v37 = vmax.f32 %v8982_v53, %v8984_v54  ;;  %v7896_v54 = vld [vmem:[#allocation8 + $0xa4] ss:$16 sps:$4 sm:$0xff]  }
 0x1bf   :  { %v1349_v23 = vmax.f32 %v10779_v31, %v1301_v61  ;;  %v1302_v24 = vmax.f32 %v877_v32, %v1150_v36  ;;  %v9242_v46 = vpack.c.bf16 %v1454_v21, %v1452_v47  ;;  %v1408_v29 = vadd.f32 %v9219_v55, %v1348_v20  ;;  %v7891_v20 = vld [vmem:[#allocation8 + $0xc8] ss:$16 sps:$4 sm:$0xff]  }
 0x1c0   :  { %v881_v34 = vpop.f32.mrf.mxu0  ;;  %v1154_v45 = vpop.f32.mrf.mxu1  ;;  %v1455_v39 = vmax.f32 %v1407_v43, 0.0  ;;  %v10781_v36 = vmax.f32 %v8988_v56, %v8990_v57 }
 0x1c1   :  { %v1409_v30 = vadd.f32 %v9189_v58, %v1349_v23  ;;  %v1350_v40 = vmax.f32 %v1254_v42, %v1302_v24  ;;  %v1303_v41 = vmax.f32 %v881_v34, %v1154_v45  ;;  %7030 = vmatprep.mubr.msk.bf16.mxu0 %vm1940_vm2, %v9242_v46  ;;  %7038 = vmatprep.mubr.msk.bf16.mxu1 %vm1940_vm2, %v9242_v46  ;;  %v1456_v61 = vmax.f32 %v1408_v29, 0.0  ;;  %v7899_v23 = vld [vmem:[#allocation8 + $0xac] ss:$16 sps:$4 sm:$0xff]  }
 0x1c2   :  { %v883_v48 = vpop.f32.mrf.mxu0  ;;  %v1156_v49 = vpop.f32.mrf.mxu1  ;;  %1998 = vmatmul.mubr.bf16.vlgmr.msra.gmra.mxu0 %v9234_v25  ;;  %2111 = vmatmul.mubr.bf16.vlgmr.msra.gmra.mxu1 %v9234_v25  ;;  %v1258_v24 = vmax.f32 %v9000_v62, %v9002_v63  ;;  %v7902_v62 = vld [vmem:[#allocation8 + $0x84] ss:$16 sps:$4 sm:$0xff]   ;;  %v7905_v63 = vld [vmem:[#allocation8 + $0x8c] ss:$16 sps:$4 sm:$0xff]  }
 0x1c3   :  { %v1457_v50 = vmax.f32 %v1409_v30, 0.0  ;;  %v1410_v16 = vadd.f32 %v9219_v55, %v1350_v40  ;;  %v1304_v26 = vmax.f32 %v883_v48, %v1156_v49  ;;  %v1351_v38 = vmax.f32 %v10780_v37, %v1303_v41  ;;  %2495 = vmatpush1.bf16.msra.mxu0 %v7882_v35  ;;  %2608 = vmatpush1.bf16.msra.mxu1 %v7885_v19  ;;  %v7894_v30 = vld [vmem:[#allocation8 + $0xa0] ss:$16 sps:$4 sm:$0xff]   ;;  %v7897_v40 = vld [vmem:[#allocation8 + $0xa8] ss:$16 sps:$4 sm:$0xff]  }
 0x1c4   :  { %v885_v13 = vpop.f32.mrf.mxu0  ;;  %v1158_v21 = vpop.f32.mrf.mxu1  ;;  %2496 = vmatprep.subr.bf16.mxu0 %v7890_v51  ;;  %2609 = vmatprep.subr.bf16.mxu1 %v7893_v52  ;;  %v10782_v19 = vmax.f32 %v8994_v59, %v8996_v60 }
 0x1c5   :  { %v9256_v47 = vpack.c.bf16 %v1457_v50, %v1455_v39  ;;  %v1458_v32 = vmax.f32 %v1410_v16, 0.0  ;;  %v1352_v42 = vmax.f32 %v10781_v36, %v1304_v26  ;;  %v1305_v43 = vmax.f32 %v885_v13, %v1158_v21  ;;  %v7900_v21 = vld [vmem:[#allocation8 + $0x80] ss:$16 sps:$4 sm:$0xff]  }
 0x1c6   :  { %v887_v31 = vpop.f32.mrf.mxu0  ;;  %v1160_v53 = vpop.f32.mrf.mxu1  ;;  %v1411_v35 = vadd.f32 %v9189_v58, %v1351_v38  ;;  %v10783_v39 = vmax.f32 %v9004_v0, %v9006_v1  ;;  %v10784_v1 = vmax.f32 %v9010_v3, %v9012_v4 }
 0x1c7   :  { %v9263_v34 = vpack.c.bf16 %v1458_v32, %v1456_v61  ;;  %v1306_v45 = vmax.f32 %v887_v31, %v1160_v53  ;;  %v1353_v56 = vmax.f32 %v10782_v19, %v1305_v43  ;;  %2497 = vmatpush1.bf16.msra.mxu0 %v7888_v22  ;;  %2610 = vmatpush1.bf16.msra.mxu1 %v7891_v20  ;;  %v7903_v22 = vld [vmem:[#allocation8 + $0x88] ss:$16 sps:$4 sm:$0xff]   ;;  %v7908_v31 = vld [vmem:[#allocation8 + $0x64] ss:$16 sps:$4 sm:$0xff]   ;;  %v7911_v53 = vld [vmem:[#allocation8 + $0x6c] ss:$16 sps:$4 sm:$0xff]  }
 0x1c8   :  { %v891_v57 = vpop.f32.mrf.mxu0  ;;  %v1164_v29 = vpop.f32.mrf.mxu1  ;;  %v1412_v41 = vadd.f32 %v9219_v55, %v1352_v42  ;;  %2498 = vmatprep.subr.bf16.mxu0 %v7896_v54  ;;  %2611 = vmatprep.subr.bf16.mxu1 %v7899_v23  ;;  %v1459_v26 = vmax.f32 %v1411_v35, 0.0  ;;  %v1262_v35 = vmax.f32 %v9022_v9, %v9024_v10 }
 0x1c9   :  { %v1354_v51 = vmax.f32 %v1258_v24, %v1306_v45  ;;  %v1307_v52 = vmax.f32 %v891_v57, %v1164_v29  ;;  %7031 = vmatprep.mubr.msk.bf16.mxu0 %vm1940_vm2, %v9263_v34  ;;  %7039 = vmatprep.mubr.msk.bf16.mxu1 %vm1940_vm2, %v9263_v34  ;;  %v1413_v59 = vadd.f32 %v9189_v58, %v1353_v56  ;;  %v7906_v56 = vld [vmem:[#allocation8 + $0x60] ss:$16 sps:$4 sm:$0xff]   ;;  %v7909_v57 = vld [vmem:[#allocation8 + $0x68] ss:$16 sps:$4 sm:$0xff]  }
 0x1ca   :  { %v893_v60 = vpop.f32.mrf.mxu0  ;;  %v1166_v48 = vpop.f32.mrf.mxu1  ;;  %2008 = vmatmul.mubr.bf16.gmra.mxu0 %v9256_v47  ;;  %2121 = vmatmul.mubr.bf16.gmra.mxu1 %v9256_v47  ;;  %v1460_v20 = vmax.f32 %v1412_v41, 0.0  ;;  %v10785_v24 = vmax.f32 %v9016_v6, %v9018_v7  ;;  %v7914_v6 = vld [vmem:[#allocation8 + $0x44] ss:$16 sps:$4 sm:$0xff]   ;;  %v7917_v41 = vld [vmem:[#allocation8 + $0x4c] ss:$16 sps:$4 sm:$0xff]  }
 0x1cb   :  { %v1414_v49 = vadd.f32 %v9219_v55, %v1354_v51  ;;  %v1355_v50 = vmax.f32 %v10783_v39, %v1307_v52  ;;  %v1308_v16 = vmax.f32 %v893_v60, %v1166_v48  ;;  %v1461_v37 = vmax.f32 %v1413_v59, 0.0  ;;  %2499 = vmatpush1.bf16.msra.mxu0 %v7894_v30  ;;  %2612 = vmatpush1.bf16.msra.mxu1 %v7897_v40  ;;  %v7912_v39 = vld [vmem:[#allocation8 + $0x40] ss:$16 sps:$4 sm:$0xff]  }
 0x1cc   :  { %v895_v38 = vpop.f32.mrf.mxu0  ;;  %v1168_v13 = vpop.f32.mrf.mxu1  ;;  %2500 = vmatprep.subr.bf16.mxu0 %v7902_v62  ;;  %2613 = vmatprep.subr.bf16.mxu1 %v7905_v63  ;;  %v10786_v62 = vmax.f32 %v9026_v11, %v9028_v12 }
 0x1cd   :  { %v1462_v61 = vmax.f32 %v1414_v49, 0.0  ;;  %v1309_v32 = vmax.f32 %v895_v38, %v1168_v13  ;;  %v9281_v0 = vpack.c.bf16 %v1461_v37, %v1459_v26  ;;  %v1356_v36 = vmax.f32 %v10784_v1, %v1308_v16  ;;  %v7920_v37 = vld [vmem:[#allocation8 + $0x24] ss:$16 sps:$4 sm:$0xff]   ;;  %v7923_v38 = vld [vmem:[#allocation8 + $0x2c] ss:$16 sps:$4 sm:$0xff]  }
 0x1ce   :  { %v897_v42 = vpop.f32.mrf.mxu0  ;;  %v1170_v43 = vpop.f32.mrf.mxu1  ;;  %v1415_v23 = vadd.f32 %v9189_v58, %v1355_v50  ;;  %v7915_v50 = vld [vmem:[#allocation8 + $0x48] ss:$16 sps:$4 sm:$0xff]   ;;  %v10787_v26 = vmax.f32 %v9032_v14, %v9034_v15  ;;  %v10788_v1 = vmax.f32 %v9038_v17, %v9040_v18  ;;  %v7929_v17 = vld [vmem:[#allocation8 + $0xc] ss:$16 sps:$4 sm:$0xff]  }
 0x1cf   :  { %v9286_v54 = vpack.c.bf16 %v1462_v61, %v1460_v20  ;;  %v1357_v45 = vmax.f32 %v10785_v24, %v1309_v32  ;;  %v1310_v19 = vmax.f32 %v897_v42, %v1170_v43  ;;  %2501 = vmatpush1.bf16.msra.mxu0 %v7900_v21  ;;  %2614 = vmatpush1.bf16.msra.mxu1 %v7903_v22 }
 0x1d0   :  { %v901_v3 = vpop.f32.mrf.mxu0  ;;  %v1174_v4 = vpop.f32.mrf.mxu1  ;;  %v1416_v7 = vadd.f32 %v9219_v55, %v1356_v36  ;;  %2502 = vmatprep.subr.bf16.mxu0 %v7908_v31  ;;  %2615 = vmatprep.subr.bf16.mxu1 %v7911_v53  ;;  %v1463_v51 = vmax.f32 %v1415_v23, 0.0  ;;  %v1266_v61 = vmax.f32 %v9044_v8, %v9046_v5  ;;  %v7918_v53 = vld [vmem:[#allocation8 + $0x20] ss:$16 sps:$4 sm:$0xff]   ;;  %v7921_v23 = vld [vmem:[#allocation8 + $0x28] ss:$16 sps:$4 sm:$0xff]  }
 0x1d1   :  { %v1417_v29 = vadd.f32 %v9189_v58, %v1357_v45  ;;  %v1311_v30 = vmax.f32 %v901_v3, %v1174_v4  ;;  %7032 = vmatprep.mubr.msk.bf16.mxu0 %vm1940_vm2, %v9286_v54  ;;  %7040 = vmatprep.mubr.msk.bf16.mxu1 %vm1940_vm2, %v9286_v54  ;;  %v1358_v9 = vmax.f32 %v1262_v35, %v1310_v19  ;;  %v7926_v45 = vld [vmem:[#allocation8 + $0x4] ss:$16 sps:$4 sm:$0xff]  }
 0x1d2   :  { %v903_v10 = vpop.f32.mrf.mxu0  ;;  %v1176_v40 = vpop.f32.mrf.mxu1  ;;  %2018 = vmatmul.mubr.bf16.gmra.mxu0 %v9281_v0  ;;  %2131 = vmatmul.mubr.bf16.gmra.mxu1 %v9281_v0  ;;  %v1464_v13 = vmax.f32 %v1416_v7, 0.0 }
 0x1d3   :  { %v1465_v52 = vmax.f32 %v1417_v29, 0.0  ;;  %v1359_v63 = vmax.f32 %v10786_v62, %v1311_v30  ;;  %v1312_v59 = vmax.f32 %v903_v10, %v1176_v40  ;;  %v1418_v60 = vadd.f32 %v9219_v55, %v1358_v9  ;;  %2503 = vmatpush1.bf16.msra.mxu0 %v7906_v56  ;;  %2616 = vmatpush1.bf16.msra.mxu1 %v7909_v57  ;;  %v10789_v57 = vld [vmem:[#allocation25_spill] sm:$0xff]  ;;  %v10790_v29 = vld [vmem:[#allocation26_spill] sm:$0xff]  ;;  %v10792_v62 = vld [vmem:[#allocation27_spill] sm:$0xff] }
 0x1d4   :  { %v905_v48 = vpop.f32.mrf.mxu0  ;;  %v1178_v49 = vpop.f32.mrf.mxu1  ;;  %2504 = vmatprep.subr.bf16.mxu0 %v7914_v6  ;;  %2617 = vmatprep.subr.bf16.mxu1 %v7917_v41  ;;  %v10791_v30 = vmax.f32 %v10789_v57, %v10790_v29  ;;  %v7924_v10 = vld [vmem:[#allocation8] ss:$16 sps:$4 sm:$0xff]   ;;  %v7927_v40 = vld [vmem:[#allocation8 + $0x8] ss:$16 sps:$4 sm:$0xff]  }
 0x1d5   :  { %v9306_v16 = vpack.c.bf16 %v1465_v52, %v1463_v51  ;;  %v1360_v11 = vmax.f32 %v10787_v26, %v1312_v59  ;;  %v1313_v12 = vmax.f32 %v905_v48, %v1178_v49  ;;  %v1466_v21 = vmax.f32 %v1418_v60, 0.0  ;;  %v7935_v26 = vld [vmem:[#allocation8 + $0x1cc] ss:$16 sps:$4 sm:$0xff]  }
 0x1d6   :  { %v907_v22 = vpop.f32.mrf.mxu0  ;;  %v1180_v20 = vpop.f32.mrf.mxu1  ;;  %v1419_v32 = vadd.f32 %v9189_v58, %v1359_v63  ;;  %v10793_v63 = vld [vmem:[#allocation28_spill] sm:$0xff] }
 0x1d7   :  { %v1361_v36 = vmax.f32 %v10788_v1, %v1313_v12  ;;  %v1314_v14 = vmax.f32 %v907_v22, %v1180_v20  ;;  %v9317_v15 = vpack.c.bf16 %v1466_v21, %v1464_v13  ;;  %v1420_v42 = vadd.f32 %v9219_v55, %v1360_v11  ;;  %2505 = vmatpush1.bf16.msra.mxu0 %v7912_v39  ;;  %v10795_v11 = vld [vmem:[#allocation32_spill] sm:$0xff]  ;;  %v10796_v12 = vld [vmem:[#allocation31_spill] sm:$0xff]  ;;  %v10797_v22 = vld [vmem:[#allocation29_spill] sm:$0xff] }
 0x1d8   :  { %v911_v43 = vpop.f32.mrf.mxu0  ;;  %v1184_v31 = vpop.f32.mrf.mxu1  ;;  %2618 = vmatpush1.bf16.msra.mxu1 %v7915_v50  ;;  %2506 = vmatprep.subr.bf16.mxu0 %v7920_v37  ;;  %v1467_v19 = vmax.f32 %v1419_v32, 0.0  ;;  %v10794_v59 = vmax.f32 %v10792_v62, %v10793_v63  ;;  %v7932_v50 = vld [vmem:[#allocation8 + $0x1c4] ss:$16 sps:$4 sm:$0xff]   ;;  %v1270_v37 = vmax.f32 %v10796_v12, %v10795_v11  ;;  %v10806_v11 = vld [vmem:[#allocation37_spill] sm:$0xff] }
 0x1d9   :  { %v1421_v24 = vadd.f32 %v9189_v58, %v1361_v36  ;;  %v1362_v5 = vmax.f32 %v1266_v61, %v1314_v14  ;;  %v1315_v8 = vmax.f32 %v911_v43, %v1184_v31  ;;  %2619 = vmatprep.subr.bf16.mxu1 %v7923_v38  ;;  %7033 = vmatprep.mubr.msk.bf16.mxu0 %vm1940_vm2, %v9317_v15  ;;  %v1468_v41 = vmax.f32 %v1420_v42, 0.0  ;;  %v10798_v20 = vld [vmem:[#allocation30_spill] sm:$0xff]  ;;  %v7933_v42 = vld [vmem:[#allocation8 + $0x1c8] ss:$16 sps:$4 sm:$0xff]   ;;  %v10804_v62 = vld [vmem:[#allocation36_spill] sm:$0xff] }
 0x1da   :  { %7041 = vmatprep.mubr.msk.bf16.mxu1 %vm1940_vm2, %v9317_v15  ;;  %v913_v18 = vpop.f32.mrf.mxu0  ;;  %v1186_v35 = vpop.f32.mrf.mxu1  ;;  %2028 = vmatmul.mubr.bf16.gmra.mxu0 %v9306_v16  ;;  %v10799_v61 = vmax.f32 %v10797_v22, %v10798_v20  ;;  %v7930_v14 = vld [vmem:[#allocation8 + $0x1c0] ss:$16 sps:$4 sm:$0xff]   ;;  %v10810_v22 = vld [vmem:[#allocation39_spill] sm:$0xff] }
 0x1db   :  { %v1469_v3 = vmax.f32 %v1421_v24, 0.0  ;;  %v1422_v4 = vadd.f32 %v9219_v55, %v1362_v5  ;;  %v1316_v56 = vmax.f32 %v913_v18, %v1186_v35  ;;  %2141 = vmatmul.mubr.bf16.gmra.mxu1 %v9306_v16  ;;  %v1363_v6 = vmax.f32 %v10791_v30, %v1315_v8  ;;  %2507 = vmatpush1.bf16.msra.mxu0 %v7918_v53  ;;  %v7941_v24 = vld [vmem:[#allocation8 + $0x1ac] ss:$16 sps:$4 sm:$0xff]   ;;  %v10801_v35 = vld [vmem:[#allocation34_spill] sm:$0xff] }
 0x1dc   :  { %v915_v7 = vpop.f32.mrf.mxu0  ;;  %v1188_v9 = vpop.f32.mrf.mxu1  ;;  %2620 = vmatpush1.bf16.msra.mxu1 %v7921_v23  ;;  %2508 = vmatprep.subr.bf16.mxu0 %v7926_v45  ;;  %v7938_v23 = vld [vmem:[#allocation8 + $0x1a4] ss:$16 sps:$4 sm:$0xff]   ;;  %v10800_v18 = vld [vmem:[#allocation33_spill] sm:$0xff] }
 0x1dd   :  { %v9331_v51 = vpack.c.bf16 %v1469_v3, %v1467_v19  ;;  %v1470_v52 = vmax.f32 %v1422_v4, 0.0  ;;  %v1364_v60 = vmax.f32 %v10794_v59, %v1316_v56  ;;  %2621 = vmatprep.subr.bf16.mxu1 %v7929_v17  ;;  %v1317_v48 = vmax.f32 %v915_v7, %v1188_v9  ;;  %v7939_v7 = vld [vmem:[#allocation8 + $0x1a8] ss:$16 sps:$4 sm:$0xff]   ;;  %v10807_v12 = vld [vmem:[#allocation38_spill] sm:$0xff] }
 0x1de   :  { %v917_v49 = vpop.f32.mrf.mxu0  ;;  %v1190_v39 = vpop.f32.mrf.mxu1  ;;  %v1423_v21 = vadd.f32 %v9189_v58, %v1363_v6  ;;  %v10802_v19 = vmax.f32 %v10800_v18, %v10801_v35  ;;  %v7936_v6 = vld [vmem:[#allocation8 + $0x1a0] ss:$16 sps:$4 sm:$0xff]   ;;  %v10811_v35 = vld [vmem:[#allocation41_spill] sm:$0xff] }
 0x1df   :  { %v9338_v38 = vpack.c.bf16 %v1470_v52, %v1468_v41  ;;  %v1318_v13 = vmax.f32 %v917_v49, %v1190_v39  ;;  %v1365_v32 = vmax.f32 %v10799_v61, %v1317_v48  ;;  %2509 = vmatpush1.bf16.msra.mxu0 %v7924_v10  ;;  %v1424_v43 = vadd.f32 %v9219_v55, %v1364_v60  ;;  %v10803_v52 = vld [vmem:[#allocation35_spill] sm:$0xff]  ;;  %v7944_v49 = vld [vmem:[#allocation8 + $0x184] ss:$16 sps:$4 sm:$0xff]  }
 0x1e0   :  { %v921_v1 = vpop.f32.mrf.mxu0  ;;  %v1194_v36 = vpop.f32.mrf.mxu1  ;;  %2622 = vmatpush1.bf16.msra.mxu1 %v7927_v40  ;;  %2512 = vmatprep.subr.bf16.mxu0 %v7932_v50  ;;  %v1471_v56 = vmax.f32 %v1423_v21, 0.0  ;;  %v10805_v63 = vmax.f32 %v10803_v52, %v10804_v62  ;;  %v7947_v39 = vld [vmem:[#allocation8 + $0x18c] ss:$16 sps:$4 sm:$0xff]   ;;  %v10809_v21 = vld [vmem:[#allocation40_spill] sm:$0xff] }
 0x1e1   :  { %v1366_v31 = vmax.f32 %v1270_v37, %v1318_v13  ;;  %v1319_v53 = vmax.f32 %v921_v1, %v1194_v36  ;;  %7034 = vmatprep.mubr.msk.bf16.mxu0 %vm1940_vm2, %v9338_v38  ;;  %7042 = vmatprep.mubr.msk.bf16.mxu1 %vm1940_vm2, %v9338_v38  ;;  %v1425_v5 = vadd.f32 %v9189_v58, %v1365_v32  ;;  %v1472_v9 = vmax.f32 %v1424_v43, 0.0  ;;  %v7942_v36 = vld [vmem:[#allocation8 + $0x180] ss:$16 sps:$4 sm:$0xff]  }
 0x1e2   :  { %v923_v8 = vpop.f32.mrf.mxu0  ;;  %v1196_v45 = vpop.f32.mrf.mxu1  ;;  %2625 = vmatprep.subr.bf16.mxu1 %v7935_v26  ;;  %2038 = vmatmul.mubr.bf16.gmra.mxu0 %v9331_v51  ;;  %v10808_v37 = vmax.f32 %v10806_v11, %v10807_v12  ;;  %v1274_v20 = vmax.f32 %v10810_v22, %v10809_v21  ;;  %v10817_v52 = vld [vmem:[#allocation44_spill] sm:$0xff] }
 0x1e3   :  { %v1426_v17 = vadd.f32 %v9219_v55, %v1366_v31  ;;  %v1367_v3 = vmax.f32 %v10802_v19, %v1319_v53  ;;  %v1320_v4 = vmax.f32 %v923_v8, %v1196_v45  ;;  %2151 = vmatmul.mubr.bf16.gmra.mxu1 %v9331_v51  ;;  %v1473_v57 = vmax.f32 %v1425_v5, 0.0  ;;  %2513 = vmatpush2.bf16.msra.mxu0 %v7930_v14  ;;  %v7945_v14 = vld [vmem:[#allocation8 + $0x188] ss:$16 sps:$4 sm:$0xff]   ;;  %v7950_v31 = vld [vmem:[#allocation8 + $0x164] ss:$16 sps:$4 sm:$0xff]  }
 0x1e4   :  { %v925_v29 = vpop.f32.mrf.mxu0  ;;  %v1198_v30 = vpop.f32.mrf.mxu1  ;;  %2626 = vmatpush2.bf16.msra.mxu1 %v7933_v42  ;;  %2514 = vmatprep.subr.bf16.mxu0 %v7938_v23  ;;  %v1294_v53 = vmax.f32 %v9196_v2, %v9198_v33  ;;  %v7953_v45 = vld [vmem:[#allocation8 + $0x16c] ss:$16 sps:$4 sm:$0xff]   ;;  %v10812_v19 = vld [vmem:[#allocation42_spill] sm:$0xff]  ;;  %v10814_v2 = vld [vmem:[#allocation24_spill] sm:$0xff] }
 0x1e5   :  { %v1474_v10 = vmax.f32 %v1426_v17, 0.0  ;;  %v1321_v40 = vmax.f32 %v925_v29, %v1198_v30  ;;  %2627 = vmatprep.subr.bf16.mxu1 %v7941_v24  ;;  %v9356_v41 = vpack.c.bf16 %v1473_v57, %v1471_v56  ;;  %v1368_v59 = vmax.f32 %v10805_v63, %v1320_v4  ;;  %v10815_v33 = vld [vmem:[#allocation23_spill] sm:$0xff] }
 0x1e6   :  { %v927_v60 = vpop.f32.mrf.mxu0  ;;  %v1200_v48 = vpop.f32.mrf.mxu1  ;;  %v1427_v26 = vadd.f32 %v9189_v58, %v1367_v3  ;;  %v10813_v3 = vmax.f32 %v10811_v35, %v10812_v19  ;;  %v1246_v57 = vmax.f32 %v10815_v33, %v10814_v2  ;;  %v10824_v2 = vld [vmem:[#allocation75_spill] sm:$0xff] }
 0x1e7   :  { %v9361_v50 = vpack.c.bf16 %v1474_v10, %v1472_v9  ;;  %v1369_v13 = vmax.f32 %v10808_v37, %v1321_v40  ;;  %v1322_v61 = vmax.f32 %v927_v60, %v1200_v48  ;;  %2515 = vmatpush2.bf16.msra.mxu0 %v7936_v6  ;;  %v1428_v23 = vadd.f32 %v9219_v55, %v1368_v59  ;;  %v7951_v9 = vld [vmem:[#allocation8 + $0x168] ss:$16 sps:$4 sm:$0xff]   ;;  %v7956_v60 = vld [vmem:[#allocation8 + $0x144] ss:$16 sps:$4 sm:$0xff]   ;;  %v7959_v48 = vld [vmem:[#allocation8 + $0x14c] ss:$16 sps:$4 sm:$0xff]  }
 0x1e8   :  { %v931_v32 = vpop.f32.mrf.mxu0  ;;  %v1204_v1 = vpop.f32.mrf.mxu1  ;;  %2628 = vmatpush2.bf16.msra.mxu1 %v7939_v7  ;;  %2516 = vmatprep.subr.bf16.mxu0 %v7944_v49  ;;  %v1475_v17 = vmax.f32 %v1427_v26, 0.0  ;;  %v7948_v7 = vld [vmem:[#allocation8 + $0x160] ss:$16 sps:$4 sm:$0xff]   ;;  %v10816_v40 = vld [vmem:[#allocation43_spill] sm:$0xff]  ;;  %v1342_v49 = vmax.f32 %v1246_v57, %v1294_v53  ;;  %v1400_v33 = vadd.f32 %v9219_v55, %v10824_v2  ;;  %v10825_v57 = vld [vmem:[#allocation49_spill] sm:$0xff] }
 0x1e9   :  { %v1429_v42 = vadd.f32 %v9189_v58, %v1369_v13  ;;  %v1323_v43 = vmax.f32 %v931_v32, %v1204_v1  ;;  %7035 = vmatprep.mubr.msk.bf16.mxu0 %vm1940_vm2, %v9361_v50  ;;  %7043 = vmatprep.mubr.msk.bf16.mxu1 %vm1940_vm2, %v9361_v50  ;;  %v1370_v24 = vmax.f32 %v1274_v20, %v1322_v61  ;;  %v10819_v37 = vld [vmem:[#allocation48_spill] sm:$0xff]  ;;  %v10820_v13 = vld [vmem:[#allocation47_spill] sm:$0xff]  ;;  %v10821_v20 = vld [vmem:[#allocation45_spill] sm:$0xff] }
 0x1ea   :  { %v933_v5 = vpop.f32.mrf.mxu0  ;;  %v1206_v8 = vpop.f32.mrf.mxu1  ;;  %2629 = vmatprep.subr.bf16.mxu1 %v7947_v39  ;;  %2048 = vmatmul.mubr.bf16.gmra.mxu0 %v9356_v41  ;;  %v10818_v62 = vmax.f32 %v10816_v40, %v10817_v52  ;;  %v1476_v39 = vmax.f32 %v1428_v23, 0.0  ;;  %v1278_v21 = vmax.f32 %v10820_v13, %v10819_v37  ;;  %v10822_v61 = vld [vmem:[#allocation46_spill] sm:$0xff]  ;;  %v7957_v23 = vld [vmem:[#allocation8 + $0x148] ss:$16 sps:$4 sm:$0xff]   ;;  %v1448_v37 = vmax.f32 %v1400_v33, 0.0 }
 0x1eb   :  { %v1477_v18 = vmax.f32 %v1429_v42, 0.0  ;;  %v1371_v4 = vmax.f32 %v10813_v3, %v1323_v43  ;;  %v1324_v56 = vmax.f32 %v933_v5, %v1206_v8  ;;  %2161 = vmatmul.mubr.bf16.gmra.mxu1 %v9356_v41  ;;  %v1430_v29 = vadd.f32 %v9219_v55, %v1370_v24  ;;  %2517 = vmatpush2.bf16.msra.mxu0 %v7942_v36  ;;  %v7954_v53 = vld [vmem:[#allocation8 + $0x140] ss:$16 sps:$4 sm:$0xff]   ;;  %v7963_v52 = vld [vmem:[#allocation8 + $0x128] ss:$16 sps:$4 sm:$0xff]  }
 0x1ec   :  { %v935_v30 = vpop.f32.mrf.mxu0  ;;  %v1208_v6 = vpop.f32.mrf.mxu1  ;;  %2630 = vmatpush2.bf16.msra.mxu1 %v7945_v14  ;;  %2518 = vmatprep.subr.bf16.mxu0 %v7950_v31  ;;  %v10823_v32 = vmax.f32 %v10821_v20, %v10822_v61  ;;  %v7960_v40 = vld [vmem:[#allocation8 + $0x120] ss:$16 sps:$4 sm:$0xff]  }
 0x1ed   :  { %v9385_v10 = vpack.c.bf16 %v1477_v18, %v1475_v17  ;;  %v1372_v63 = vmax.f32 %v10818_v62, %v1324_v56  ;;  %v1325_v59 = vmax.f32 %v935_v30, %v1208_v6  ;;  %v1478_v26 = vmax.f32 %v1430_v29, 0.0  ;;  %2631 = vmatprep.subr.bf16.mxu1 %v7953_v45  ;;  %v7962_v45 = vld [vmem:[#allocation8 + $0x124] ss:$16 sps:$4 sm:$0xff]   ;;  %v7965_v17 = vld [vmem:[#allocation8 + $0x12c] ss:$16 sps:$4 sm:$0xff]  }
 0x1ee   :  { %v937_v11 = vpop.f32.mrf.mxu0  ;;  %v1210_v12 = vpop.f32.mrf.mxu1  ;;  %v1431_v22 = vadd.f32 %v9189_v58, %v1371_v4  ;;  %v1402_v18 = vadd.f32 %v9219_v55, %v1342_v49  ;;  %v10826_v29 = vld [vmem:[#allocation50_spill] sm:$0xff] }
 0x1ef   :  { %v1373_v1 = vmax.f32 %v10823_v32, %v1325_v59  ;;  %v1326_v36 = vmax.f32 %v937_v11, %v1210_v12  ;;  %v9396_v14 = vpack.c.bf16 %v1478_v26, %v1476_v39  ;;  %v1432_v42 = vadd.f32 %v9219_v55, %v1372_v63  ;;  %2519 = vmatpush2.bf16.msra.mxu0 %v7948_v7  ;;  %v7968_v26 = vld [vmem:[#allocation8 + $0x104] ss:$16 sps:$4 sm:$0xff]   ;;  %v7971_v11 = vld [vmem:[#allocation8 + $0x10c] ss:$16 sps:$4 sm:$0xff]  }
 0x1f0   :  { %v941_v43 = vpop.f32.mrf.mxu0  ;;  %v1214_v31 = vpop.f32.mrf.mxu1  ;;  %2632 = vmatpush2.bf16.msra.mxu1 %v7951_v9  ;;  %2520 = vmatprep.subr.bf16.mxu0 %v7956_v60  ;;  %v1479_v3 = vmax.f32 %v1431_v22, 0.0  ;;  %v10827_v30 = vmax.f32 %v10825_v57, %v10826_v29  ;;  %v1450_v60 = vmax.f32 %v1402_v18, 0.0  ;;  %v10829_v22 = vld [vmem:[#allocation54_spill] sm:$0xff] }
 0x1f1   :  { %v1433_v24 = vadd.f32 %v9189_v58, %v1373_v1  ;;  %v1374_v5 = vmax.f32 %v1278_v21, %v1326_v36  ;;  %v1327_v8 = vmax.f32 %v941_v43, %v1214_v31  ;;  %2633 = vmatprep.subr.bf16.mxu1 %v7959_v48  ;;  %7036 = vmatprep.mubr.msk.bf16.mxu0 %vm1940_vm2, %v9396_v14  ;;  %v1480_v62 = vmax.f32 %v1432_v42, 0.0  ;;  %v10828_v21 = vld [vmem:[#allocation53_spill] sm:$0xff]  ;;  %v7966_v42 = vld [vmem:[#allocation8 + $0x100] ss:$16 sps:$4 sm:$0xff]  }
 0x1f2   :  { %7044 = vmatprep.mubr.msk.bf16.mxu1 %vm1940_vm2, %v9396_v14  ;;  %v9405_v35 = vpop.f32.mrf.mxu0  ;;  %v9407_v19 = vpop.f32.mrf.mxu1  ;;  %2058 = vmatmul.mubr.bf16.gmra.mxu0 %v9385_v10  ;;  %v10830_v20 = vmax.f32 %v10828_v21, %v10829_v22  ;;  %v7969_v43 = vld [vmem:[#allocation8 + $0x108] ss:$16 sps:$4 sm:$0xff]   ;;  %v7980_v22 = vld [vmem:[#allocation8 + $0x484] ss:$16 sps:$4 sm:$0xff]  }
 0x1f3   :  { %v1481_v4 = vmax.f32 %v1433_v24, 0.0  ;;  %v1434_v56 = vadd.f32 %v9219_v55, %v1374_v5  ;;  %2171 = vmatmul.mubr.bf16.gmra.mxu1 %v9385_v10  ;;  %v1375_v6 = vmax.f32 %v10827_v30, %v1327_v8  ;;  %2521 = vmatpush2.bf16.msra.mxu0 %v7954_v53  ;;  %v1496_v24 = vpack.c.bf16 %v1450_v60, %v1448_v37  ;;  %v7974_v5 = vld [vmem:[#allocation8 + $0x4a4] ss:$16 sps:$4 sm:$0xff]   ;;  %v7977_v8 = vld [vmem:[#allocation8 + $0x4ac] ss:$16 sps:$4 sm:$0xff]  }
 0x1f4   :  { %v945_v7 = vpop.f32.mrf.mxu0  ;;  %v1218_v9 = vpop.f32.mrf.mxu1  ;;  %2634 = vmatpush2.bf16.msra.mxu1 %v7957_v23  ;;  %2522 = vmatprep.subr.bf16.mxu0 %v7962_v45  ;;  %v10831_v45 = vld [vmem:[#allocation57_spill] sm:$0xff] }
 0x1f5   :  { %v9417_v63 = vpack.c.bf16 %v1481_v4, %v1479_v3  ;;  %v1482_v59 = vmax.f32 %v1434_v56, 0.0  ;;  %2635 = vmatprep.subr.bf16.mxu1 %v7965_v17  ;;  %v1329_v48 = vmax.f32 %v945_v7, %v1218_v9  ;;  %v1435_v13 = vadd.f32 %v9189_v58, %v1375_v6  ;;  %v10832_v17 = vld [vmem:[#allocation58_spill] sm:$0xff]  ;;  %v10834_v9 = vld [vmem:[#allocation61_spill] sm:$0xff] }
 0x1f6   :  { %v9419_v49 = vpop.f32.mrf.mxu0  ;;  %v9421_v39 = vpop.f32.mrf.mxu1  ;;  %v10833_v18 = vmax.f32 %v10831_v45, %v10832_v17  ;;  %v7981_v45 = vld [vmem:[#allocation8 + $0x488] ss:$16 sps:$4 sm:$0xff]  }
 0x1f7   :  { %v9423_v12 = vpack.c.bf16 %v1482_v59, %v1480_v62  ;;  %v1377_v61 = vmax.f32 %v10830_v20, %v1329_v48  ;;  %2523 = vmatpush2.bf16.msra.mxu0 %v7960_v40  ;;  %v1483_v4 = vmax.f32 %v1435_v13, 0.0  ;;  %v10835_v40 = vld [vmem:[#allocation62_spill] sm:$0xff]  ;;  %v7983_v20 = vld [vmem:[#allocation8 + $0x48c] ss:$16 sps:$4 sm:$0xff]  }
 0x1f8   :  { %v951_v32 = vpop.f32.mrf.mxu0  ;;  %v1224_v1 = vpop.f32.mrf.mxu1  ;;  %2636 = vmatpush2.bf16.msra.mxu1 %v7963_v52  ;;  %2524 = vmatprep.subr.bf16.mxu0 %v7968_v26  ;;  %v10836_v52 = vmax.f32 %v10834_v9, %v10835_v40  ;;  %v7972_v48 = vld [vmem:[#allocation8 + $0x4a0] ss:$16 sps:$4 sm:$0xff]   ;;  %v7975_v26 = vld [vmem:[#allocation8 + $0x4a8] ss:$16 sps:$4 sm:$0xff]  }
 0x1f9   :  { %v1331_v36 = vmax.f32 %v951_v32, %v1224_v1  ;;  %7037 = vmatprep.mubr.msk.bf16.mxu0 %vm1940_vm2, %v9423_v12  ;;  %7045 = vmatprep.mubr.msk.bf16.mxu1 %vm1940_vm2, %v9423_v12  ;;  %v1437_v31 = vadd.f32 %v9189_v58, %v1377_v61  ;;  %v10837_v1 = vld [vmem:[#allocation65_spill] sm:$0xff]  ;;  %v10845_v9 = vld [vmem:[#allocation71_spill] sm:$0xff] }
 0x1fa   :  { %v9434_v53 = vpop.f32.mrf.mxu0  ;;  %v9436_v23 = vpop.f32.mrf.mxu1  ;;  %2637 = vmatprep.subr.bf16.mxu1 %v7971_v11  ;;  %2068 = vmatmul.mubr.bf16.gmra.mxu0 %v9417_v63 }
 0x1fb   :  { %v1379_v3 = vmax.f32 %v10833_v18, %v1331_v36  ;;  %2181 = vmatmul.mubr.bf16.gmra.mxu1 %v9417_v63  ;;  %v1485_v56 = vmax.f32 %v1437_v31, 0.0  ;;  %7106 = vmatprep.mubr.msk.bf16.mxu0 %vm1940_vm2, %v1496_v24  ;;  %v10838_v36 = vld [vmem:[#allocation66_spill] sm:$0xff]  ;;  %v10840_v18 = vld [vmem:[#allocation67_spill] sm:$0xff] }
 0x1fc   :  { %7114 = vmatprep.mubr.msk.bf16.mxu1 %vm1940_vm2, %v1496_v24  ;;  %v955_v2 = vpop.f32.mrf.mxu0  ;;  %v1228_v33 = vpop.f32.mrf.mxu1  ;;  %2525 = vmatpush2.bf16.msra.mxu0 %v7966_v42  ;;  %v10839_v42 = vmax.f32 %v10837_v1, %v10838_v36  ;;  %v8002_v1 = vld [vmem:[#allocation8 + $0x400] ss:$16 sps:$4 sm:$0xff]   ;;  %v8005_v36 = vld [vmem:[#allocation8 + $0x408] ss:$16 sps:$4 sm:$0xff]  }
 0x1fd   :  { %v1333_v57 = vmax.f32 %v955_v2, %v1228_v33  ;;  %2638 = vmatpush2.bf16.msra.mxu1 %v7969_v43  ;;  %v9445_v29 = vpack.c.bf16 %v1485_v56, %v1483_v4  ;;  %3084 = vmatprep.subr.bf16.mxu0 %v7974_v5  ;;  %v1439_v7 = vadd.f32 %v9189_v58, %v1379_v3  ;;  %v10841_v3 = vld [vmem:[#allocation68_spill] sm:$0xff]  ;;  %v7989_v2 = vld [vmem:[#allocation8 + $0x46c] ss:$16 sps:$4 sm:$0xff]  }
 0x1fe   :  { %v9447_v30 = vpop.f32.mrf.mxu0  ;;  %v9449_v6 = vpop.f32.mrf.mxu1  ;;  %3197 = vmatprep.subr.bf16.mxu1 %v7977_v8  ;;  %v7978_v8 = vld [vmem:[#allocation8 + $0x480] ss:$16 sps:$4 sm:$0xff]   ;;  %v10842_v4 = vmax.f32 %v10840_v18, %v10841_v3  ;;  %v8017_v18 = vld [vmem:[#allocation8 + $0x3c8] ss:$16 sps:$4 sm:$0xff]   ;;  %v8022_v3 = vld [vmem:[#allocation8 + $0x584] ss:$16 sps:$4 sm:$0xff]  }
 0x1ff   :  { %v1381_v62 = vmax.f32 %v10836_v52, %v1333_v57  ;;  %v1487_v61 = vmax.f32 %v1439_v7, 0.0  ;;  %v10844_v7 = vld [vmem:[#allocation70_spill] sm:$0xff] }
 0x200   :  { %v961_v59 = vpop.f32.mrf.mxu0  ;;  %v1234_v60 = vpop.f32.mrf.mxu1  ;;  %v10846_v40 = vmax.f32 %v10844_v7, %v10845_v9  ;;  %v8026_v7 = vld [vmem:[#allocation8 + $0x560] ss:$16 sps:$4 sm:$0xff]   ;;  %v8029_v9 = vld [vmem:[#allocation8 + $0x568] ss:$16 sps:$4 sm:$0xff]  }
 0x201   :  { %v1441_v11 = vadd.f32 %v9189_v58, %v1381_v62  ;;  %v1335_v37 = vmax.f32 %v961_v59, %v1234_v60  ;;  %v7984_v62 = vld [vmem:[#allocation8 + $0x460] ss:$16 sps:$4 sm:$0xff]   ;;  %v7987_v59 = vld [vmem:[#allocation8 + $0x468] ss:$16 sps:$4 sm:$0xff]  }
 0x202   :  { %v963_v13 = vpop.f32.mrf.mxu0  ;;  %v1236_v21 = vpop.f32.mrf.mxu1  ;;  %2527 = vmatmul.mubr.bf16.vlgmr.msra.gmra.mxu0 %v9211_v27 }
 0x203   :  { %v1489_v32 = vmax.f32 %v1441_v11, 0.0  ;;  %v1383_v43 = vmax.f32 %v10839_v42, %v1335_v37  ;;  %v1336_v31 = vmax.f32 %v963_v13, %v1236_v21  ;;  %2640 = vmatmul.mubr.bf16.vlgmr.msra.gmra.mxu1 %v9211_v27  ;;  %3085 = vmatpush1.bf16.msra.mxu0 %v7972_v48  ;;  %v7986_v27 = vld [vmem:[#allocation8 + $0x464] ss:$16 sps:$4 sm:$0xff]   ;;  %v7995_v48 = vld [vmem:[#allocation8 + $0x44c] ss:$16 sps:$4 sm:$0xff]  }
 0x204   :  { %3198 = vmatpush1.bf16.msra.mxu1 %v7975_v26  ;;  %v965_v24 = vpop.f32.mrf.mxu0  ;;  %v1238_v5 = vpop.f32.mrf.mxu1  ;;  %7107 = vmatprep.mubr.msk.bf16.mxu0 %vm1940_vm2, %v9242_v46  ;;  %v7990_v37 = vld [vmem:[#allocation8 + $0x440] ss:$16 sps:$4 sm:$0xff]   ;;  %v7993_v13 = vld [vmem:[#allocation8 + $0x448] ss:$16 sps:$4 sm:$0xff]   ;;  %v8010_v42 = vld [vmem:[#allocation8 + $0x3e4] ss:$16 sps:$4 sm:$0xff]  }
 0x205   :  { %v9461_v17 = vpack.c.bf16 %v1489_v32, %v1487_v61  ;;  %v9466_v56 = vmax.f32 %v10842_v4, %v1336_v31  ;;  %7115 = vmatprep.mubr.msk.bf16.mxu1 %vm1940_vm2, %v9242_v46  ;;  %v1337_v33 = vmax.f32 %v965_v24, %v1238_v5  ;;  %3086 = vmatprep.subr.bf16.mxu0 %v7980_v22  ;;  %v7992_v46 = vld [vmem:[#allocation8 + $0x444] ss:$16 sps:$4 sm:$0xff]   ;;  %v8001_v22 = vld [vmem:[#allocation8 + $0x42c] ss:$16 sps:$4 sm:$0xff]   ;;  %v8008_v31 = vld [vmem:[#allocation8 + $0x3e0] ss:$16 sps:$4 sm:$0xff]  }
 0x206   :  { %3199 = vmatprep.subr.bf16.mxu1 %v7983_v20  ;;  %v1443_v57 = vadd.f32 %v9189_v58, %v1383_v43  ;;  %v7999_v20 = vld [vmem:[#allocation8 + $0x428] ss:$16 sps:$4 sm:$0xff]   ;;  %v8004_v61 = vld [vmem:[#allocation8 + $0x404] ss:$16 sps:$4 sm:$0xff]   ;;  %v8007_v32 = vld [vmem:[#allocation8 + $0x40c] ss:$16 sps:$4 sm:$0xff]  }
 0x207   :  { %10843 = vst [vmem:[#allocation25_spill] sm:$0xff] %v9466_v56  ;;  %v1385_v52 = vmax.f32 %v10846_v40, %v1337_v33  ;;  %3087 = vmatpush1.bf16.msra.mxu0 %v7978_v8  ;;  %v8013_v43 = vld [vmem:[#allocation8 + $0x3ec] ss:$16 sps:$4 sm:$0xff]   ;;  %v8011_v24 = vld [vmem:[#allocation8 + $0x3e8] ss:$16 sps:$4 sm:$0xff]   ;;  %v10859_v56 = vld [vmem:[#allocation64_spill] sm:$0xff] }
 0x208   :  { %3200 = vmatpush1.bf16.msra.mxu1 %v7981_v45  ;;  %3088 = vmatprep.subr.bf16.mxu0 %v7986_v27  ;;  %v1491_v26 = vmax.f32 %v1443_v57, 0.0  ;;  %v8016_v5 = vld [vmem:[#allocation8 + $0x3c4] ss:$16 sps:$4 sm:$0xff]   ;;  %v8019_v8 = vld [vmem:[#allocation8 + $0x3cc] ss:$16 sps:$4 sm:$0xff]  }
 0x209   :  { %3201 = vmatprep.subr.bf16.mxu1 %v7989_v2  ;;  %v1445_v60 = vadd.f32 %v9189_v58, %v1385_v52  ;;  %v7998_v58 = vld [vmem:[#allocation8 + $0x424] ss:$16 sps:$4 sm:$0xff]   ;;  %v8014_v45 = vld [vmem:[#allocation8 + $0x3c0] ss:$16 sps:$4 sm:$0xff]   ;;  %v8025_v4 = vld [vmem:[#allocation8 + $0x58c] ss:$16 sps:$4 sm:$0xff]  }
 0x20a   :  { %2537 = vmatmul.mubr.bf16.gmra.mxu0 %v9234_v25  ;;  %v8020_v27 = vld [vmem:[#allocation8 + $0x580] ss:$16 sps:$4 sm:$0xff]   ;;  %v8023_v2 = vld [vmem:[#allocation8 + $0x588] ss:$16 sps:$4 sm:$0xff]   ;;  %v8028_v33 = vld [vmem:[#allocation8 + $0x564] ss:$16 sps:$4 sm:$0xff]  }
 0x20b   :  { %2650 = vmatmul.mubr.bf16.gmra.mxu1 %v9234_v25  ;;  %v1493_v11 = vmax.f32 %v1445_v60, 0.0  ;;  %7108 = vmatprep.mubr.msk.bf16.mxu0 %vm1940_vm2, %v9263_v34  ;;  %v7996_v25 = vld [vmem:[#allocation8 + $0x420] ss:$16 sps:$4 sm:$0xff]   ;;  %v8031_v57 = vld [vmem:[#allocation8 + $0x56c] ss:$16 sps:$4 sm:$0xff]  }
 0x20c   :  { %7116 = vmatprep.mubr.msk.bf16.mxu1 %vm1940_vm2, %v9263_v34  ;;  %3089 = vmatpush1.bf16.msra.mxu0 %v7984_v62  ;;  %v8034_v40 = vld [vmem:[#allocation8 + $0x544] ss:$16 sps:$4 sm:$0xff]   ;;  %v8037_v52 = vld [vmem:[#allocation8 + $0x54c] ss:$16 sps:$4 sm:$0xff]   ;;  %v8032_v62 = vld [vmem:[#allocation8 + $0x540] ss:$16 sps:$4 sm:$0xff]  }
 0x20d   :  { %3202 = vmatpush1.bf16.msra.mxu1 %v7987_v59  ;;  %v9483_v21 = vpack.c.bf16 %v1493_v11, %v1491_v26  ;;  %3090 = vmatprep.subr.bf16.mxu0 %v7992_v46  ;;  %v8035_v59 = vld [vmem:[#allocation8 + $0x548] ss:$16 sps:$4 sm:$0xff]   ;;  %v8040_v60 = vld [vmem:[#allocation8 + $0x524] ss:$16 sps:$4 sm:$0xff]   ;;  %v8043_v46 = vld [vmem:[#allocation8 + $0x52c] ss:$16 sps:$4 sm:$0xff]  }
 0x20e   :  { %3203 = vmatprep.subr.bf16.mxu1 %v7995_v48  ;;  %v8038_v48 = vld [vmem:[#allocation8 + $0x520] ss:$16 sps:$4 sm:$0xff]   ;;  %v8041_v26 = vld [vmem:[#allocation8 + $0x528] ss:$16 sps:$4 sm:$0xff]   ;;  %v8046_v11 = vld [vmem:[#allocation8 + $0x504] ss:$16 sps:$4 sm:$0xff]  }
 0x20f   :  { %10847 = vst [vmem:[#allocation26_spill] sm:$0xff] %v9483_v21 }
 0x210   :  { %3091 = vmatpush1.bf16.msra.mxu0 %v7990_v37  ;;  %v8049_v37 = vld [vmem:[#allocation8 + $0x50c] ss:$16 sps:$4 sm:$0xff]  }
 0x211   :  { %3204 = vmatpush1.bf16.msra.mxu1 %v7993_v13  ;;  %3092 = vmatprep.subr.bf16.mxu0 %v7998_v58  ;;  %v8044_v13 = vld [vmem:[#allocation8 + $0x500] ss:$16 sps:$4 sm:$0xff]   ;;  %v8047_v58 = vld [vmem:[#allocation8 + $0x508] ss:$16 sps:$4 sm:$0xff]  }
 0x212   :  { %3205 = vmatprep.subr.bf16.mxu1 %v8001_v22  ;;  %2547 = vmatmul.mubr.bf16.gmra.mxu0 %v9256_v47  ;;  %v8052_v22 = vld [vmem:[#allocation8 + $0x4e4] ss:$16 sps:$4 sm:$0xff]  }
 0x213   :  { %2660 = vmatmul.mubr.bf16.gmra.mxu1 %v9256_v47  ;;  %7109 = vmatprep.mubr.msk.bf16.mxu0 %vm1940_vm2, %v9286_v54 }
 0x214   :  { %7117 = vmatprep.mubr.msk.bf16.mxu1 %vm1940_vm2, %v9286_v54  ;;  %3093 = vmatpush1.bf16.msra.mxu0 %v7996_v25  ;;  %v8055_v25 = vld [vmem:[#allocation8 + $0x4ec] ss:$16 sps:$4 sm:$0xff]  }
 0x215   :  { %3206 = vmatpush1.bf16.msra.mxu1 %v7999_v20  ;;  %3094 = vmatprep.subr.bf16.mxu0 %v8004_v61  ;;  %v8050_v20 = vld [vmem:[#allocation8 + $0x4e0] ss:$16 sps:$4 sm:$0xff]   ;;  %v8053_v61 = vld [vmem:[#allocation8 + $0x4e8] ss:$16 sps:$4 sm:$0xff]  }
 0x216   :  { %3207 = vmatprep.subr.bf16.mxu1 %v8007_v32  ;;  %v8058_v32 = vld [vmem:[#allocation8 + $0x4c4] ss:$16 sps:$4 sm:$0xff]  }
 0x218   :  { %3095 = vmatpush1.bf16.msra.mxu0 %v8002_v1  ;;  %v8061_v1 = vld [vmem:[#allocation8 + $0x4cc] ss:$16 sps:$4 sm:$0xff]  }
 0x219   :  { %3208 = vmatpush1.bf16.msra.mxu1 %v8005_v36  ;;  %3096 = vmatprep.subr.bf16.mxu0 %v8010_v42  ;;  %v8056_v36 = vld [vmem:[#allocation8 + $0x4c0] ss:$16 sps:$4 sm:$0xff]   ;;  %v8059_v42 = vld [vmem:[#allocation8 + $0x4c8] ss:$16 sps:$4 sm:$0xff]  }
 0x21a   :  { %3209 = vmatprep.subr.bf16.mxu1 %v8013_v43  ;;  %2557 = vmatmul.mubr.bf16.gmra.mxu0 %v9281_v0  ;;  %v8064_v43 = vld [vmem:[#allocation8 + $0x684] ss:$16 sps:$4 sm:$0xff]  }
 0x21b   :  { %2670 = vmatmul.mubr.bf16.gmra.mxu1 %v9281_v0  ;;  %7110 = vmatprep.mubr.msk.bf16.mxu0 %vm1940_vm2, %v9317_v15 }
 0x21c   :  { %7118 = vmatprep.mubr.msk.bf16.mxu1 %vm1940_vm2, %v9317_v15  ;;  %3097 = vmatpush1.bf16.msra.mxu0 %v8008_v31  ;;  %v8067_v31 = vld [vmem:[#allocation8 + $0x68c] ss:$16 sps:$4 sm:$0xff]  }
 0x21d   :  { %3210 = vmatpush1.bf16.msra.mxu1 %v8011_v24  ;;  %3098 = vmatprep.subr.bf16.mxu0 %v8016_v5  ;;  %v8062_v24 = vld [vmem:[#allocation8 + $0x680] ss:$16 sps:$4 sm:$0xff]   ;;  %v8065_v5 = vld [vmem:[#allocation8 + $0x688] ss:$16 sps:$4 sm:$0xff]  }
 0x21e   :  { %3211 = vmatprep.subr.bf16.mxu1 %v8019_v8  ;;  %v8070_v8 = vld [vmem:[#allocation8 + $0x664] ss:$16 sps:$4 sm:$0xff]  }
 0x220   :  { %3099 = vmatpush1.bf16.msra.mxu0 %v8014_v45  ;;  %v8073_v45 = vld [vmem:[#allocation8 + $0x66c] ss:$16 sps:$4 sm:$0xff]  }
 0x221   :  { %3212 = vmatpush1.bf16.msra.mxu1 %v8017_v18  ;;  %3102 = vmatprep.subr.bf16.mxu0 %v8022_v3  ;;  %v8068_v18 = vld [vmem:[#allocation8 + $0x660] ss:$16 sps:$4 sm:$0xff]   ;;  %v8071_v3 = vld [vmem:[#allocation8 + $0x668] ss:$16 sps:$4 sm:$0xff]  }
 0x222   :  { %3215 = vmatprep.subr.bf16.mxu1 %v8025_v4  ;;  %2567 = vmatmul.mubr.bf16.gmra.mxu0 %v9306_v16  ;;  %v8079_v4 = vld [vmem:[#allocation8 + $0x64c] ss:$16 sps:$4 sm:$0xff]  }
 0x223   :  { %2680 = vmatmul.mubr.bf16.gmra.mxu1 %v9306_v16  ;;  %7111 = vmatprep.mubr.msk.bf16.mxu0 %vm1940_vm2, %v9338_v38 }
 0x224   :  { %7119 = vmatprep.mubr.msk.bf16.mxu1 %vm1940_vm2, %v9338_v38  ;;  %3103 = vmatpush2.bf16.msra.mxu0 %v8020_v27  ;;  %v8074_v27 = vld [vmem:[#allocation8 + $0x640] ss:$16 sps:$4 sm:$0xff]  }
 0x225   :  { %3216 = vmatpush2.bf16.msra.mxu1 %v8023_v2  ;;  %3104 = vmatprep.subr.bf16.mxu0 %v8028_v33  ;;  %v8077_v2 = vld [vmem:[#allocation8 + $0x648] ss:$16 sps:$4 sm:$0xff]   ;;  %v8085_v33 = vld [vmem:[#allocation8 + $0x62c] ss:$16 sps:$4 sm:$0xff]  }
 0x226   :  { %3217 = vmatprep.subr.bf16.mxu1 %v8031_v57  ;;  %v8080_v57 = vld [vmem:[#allocation8 + $0x620] ss:$16 sps:$4 sm:$0xff]  }
 0x228   :  { %3105 = vmatpush2.bf16.msra.mxu0 %v8026_v7  ;;  %v8083_v7 = vld [vmem:[#allocation8 + $0x628] ss:$16 sps:$4 sm:$0xff]  }
 0x229   :  { %3218 = vmatpush2.bf16.msra.mxu1 %v8029_v9  ;;  %3106 = vmatprep.subr.bf16.mxu0 %v8034_v40  ;;  %v8088_v9 = vld [vmem:[#allocation8 + $0x604] ss:$16 sps:$4 sm:$0xff]   ;;  %v8091_v40 = vld [vmem:[#allocation8 + $0x60c] ss:$16 sps:$4 sm:$0xff]  }
 0x22a   :  { %3219 = vmatprep.subr.bf16.mxu1 %v8037_v52  ;;  %2577 = vmatmul.mubr.bf16.gmra.mxu0 %v9331_v51  ;;  %v8086_v52 = vld [vmem:[#allocation8 + $0x600] ss:$16 sps:$4 sm:$0xff]  }
 0x22b   :  { %2690 = vmatmul.mubr.bf16.gmra.mxu1 %v9331_v51  ;;  %7112 = vmatprep.mubr.msk.bf16.mxu0 %vm1940_vm2, %v9361_v50 }
 0x22c   :  { %7120 = vmatprep.mubr.msk.bf16.mxu1 %vm1940_vm2, %v9361_v50  ;;  %3107 = vmatpush2.bf16.msra.mxu0 %v8032_v62  ;;  %v8089_v62 = vld [vmem:[#allocation8 + $0x608] ss:$16 sps:$4 sm:$0xff]  }
 0x22d   :  { %3220 = vmatpush2.bf16.msra.mxu1 %v8035_v59  ;;  %3108 = vmatprep.subr.bf16.mxu0 %v8040_v60  ;;  %v8094_v59 = vld [vmem:[#allocation8 + $0x5e4] ss:$16 sps:$4 sm:$0xff]   ;;  %v8097_v60 = vld [vmem:[#allocation8 + $0x5ec] ss:$16 sps:$4 sm:$0xff]  }
 0x22e   :  { %3221 = vmatprep.subr.bf16.mxu1 %v8043_v46  ;;  %v8092_v46 = vld [vmem:[#allocation8 + $0x5e0] ss:$16 sps:$4 sm:$0xff]  }
 0x230   :  { %3109 = vmatpush2.bf16.msra.mxu0 %v8038_v48  ;;  %v8095_v48 = vld [vmem:[#allocation8 + $0x5e8] ss:$16 sps:$4 sm:$0xff]  }
 0x231   :  { %3222 = vmatpush2.bf16.msra.mxu1 %v8041_v26  ;;  %3110 = vmatprep.subr.bf16.mxu0 %v8046_v11  ;;  %v8100_v26 = vld [vmem:[#allocation8 + $0x5c4] ss:$16 sps:$4 sm:$0xff]   ;;  %v8103_v11 = vld [vmem:[#allocation8 + $0x5cc] ss:$16 sps:$4 sm:$0xff]  }
 0x232   :  { %3223 = vmatprep.subr.bf16.mxu1 %v8049_v37  ;;  %2587 = vmatmul.mubr.bf16.gmra.mxu0 %v9356_v41  ;;  %v8098_v37 = vld [vmem:[#allocation8 + $0x5c0] ss:$16 sps:$4 sm:$0xff]  }
 0x233   :  { %2700 = vmatmul.mubr.bf16.gmra.mxu1 %v9356_v41  ;;  %7113 = vmatprep.mubr.msk.bf16.mxu0 %vm1940_vm2, %v9396_v14 }
 0x234   :  { %7121 = vmatprep.mubr.msk.bf16.mxu1 %vm1940_vm2, %v9396_v14  ;;  %3111 = vmatpush2.bf16.msra.mxu0 %v8044_v13  ;;  %v8101_v13 = vld [vmem:[#allocation8 + $0x5c8] ss:$16 sps:$4 sm:$0xff]  }
 0x235   :  { %3224 = vmatpush2.bf16.msra.mxu1 %v8047_v58  ;;  %3112 = vmatprep.subr.bf16.mxu0 %v8052_v22  ;;  %v8106_v58 = vld [vmem:[#allocation8 + $0x5a4] ss:$16 sps:$4 sm:$0xff]   ;;  %v8109_v22 = vld [vmem:[#allocation8 + $0x5ac] ss:$16 sps:$4 sm:$0xff]  }
 0x236   :  { %3225 = vmatprep.subr.bf16.mxu1 %v8055_v25  ;;  %v8104_v25 = vld [vmem:[#allocation8 + $0x5a0] ss:$16 sps:$4 sm:$0xff]  }
 0x238   :  { %3113 = vmatpush2.bf16.msra.mxu0 %v8050_v20  ;;  %v8107_v20 = vld [vmem:[#allocation8 + $0x5a8] ss:$16 sps:$4 sm:$0xff]  }
 0x239   :  { %3226 = vmatpush2.bf16.msra.mxu1 %v8053_v61  ;;  %3114 = vmatprep.subr.bf16.mxu0 %v8058_v32  ;;  %v8112_v61 = vld [vmem:[#allocation8 + $0x764] ss:$16 sps:$4 sm:$0xff]   ;;  %v8115_v32 = vld [vmem:[#allocation8 + $0x76c] ss:$16 sps:$4 sm:$0xff]  }
 0x23a   :  { %3227 = vmatprep.subr.bf16.mxu1 %v8061_v1  ;;  %2597 = vmatmul.mubr.bf16.gmra.mxu0 %v9385_v10  ;;  %v8110_v1 = vld [vmem:[#allocation8 + $0x760] ss:$16 sps:$4 sm:$0xff]  }
 0x23b   :  { %2710 = vmatmul.mubr.bf16.gmra.mxu1 %v9385_v10  ;;  %7182 = vmatprep.mubr.msk.bf16.mxu0 %vm1940_vm2, %v9263_v34 }
 0x23c   :  { %7190 = vmatprep.mubr.msk.bf16.mxu1 %vm1940_vm2, %v9263_v34  ;;  %3115 = vmatpush2.bf16.msra.mxu0 %v8056_v36  ;;  %v8076_v34 = vld [vmem:[#allocation8 + $0x644] ss:$16 sps:$4 sm:$0xff]   ;;  %v8113_v36 = vld [vmem:[#allocation8 + $0x768] ss:$16 sps:$4 sm:$0xff]  }
 0x23d   :  { %3228 = vmatpush2.bf16.msra.mxu1 %v8059_v42  ;;  %3738 = vmatprep.subr.bf16.mxu0 %v8064_v43  ;;  %v1330_v42 = vmax.f32 %v9419_v49, %v9421_v39  ;;  %v8118_v43 = vld [vmem:[#allocation8 + $0x744] ss:$16 sps:$4 sm:$0xff]   ;;  %v8116_v49 = vld [vmem:[#allocation8 + $0x740] ss:$16 sps:$4 sm:$0xff]   ;;  %v8119_v39 = vld [vmem:[#allocation8 + $0x748] ss:$16 sps:$4 sm:$0xff]  }
 0x23e   :  { %3851 = vmatprep.subr.bf16.mxu1 %v8067_v31  ;;  %v8121_v31 = vld [vmem:[#allocation8 + $0x74c] ss:$16 sps:$4 sm:$0xff]  }
 0x242   :  { %3117 = vmatmul.mubr.bf16.vlgmr.msra.gmra.mxu0 %v9256_v47 }
 0x243   :  { %3230 = vmatmul.mubr.bf16.vlgmr.msra.gmra.mxu1 %v9256_v47  ;;  %3739 = vmatpush1.bf16.msra.mxu0 %v8062_v24  ;;  %v8082_v47 = vld [vmem:[#allocation8 + $0x624] ss:$16 sps:$4 sm:$0xff]  }
 0x244   :  { %3852 = vmatpush1.bf16.msra.mxu1 %v8065_v5  ;;  %7183 = vmatprep.mubr.msk.bf16.mxu0 %vm1940_vm2, %v9286_v54  ;;  %v10848_v24 = vld [vmem:[#allocation56_spill] sm:$0xff]  ;;  %v10849_v5 = vld [vmem:[#allocation55_spill] sm:$0xff] }
 0x245   :  { %7191 = vmatprep.mubr.msk.bf16.mxu1 %vm1940_vm2, %v9286_v54  ;;  %3740 = vmatprep.subr.bf16.mxu0 %v8070_v8  ;;  %v1282_v8 = vmax.f32 %v10849_v5, %v10848_v24  ;;  %v9584_v24 = vpop.f32.mrf.mxu1  ;;  %v8160_v5 = vld [vmem:[#allocation8 + $0x844] ss:$16 sps:$4 sm:$0xff]  }
 0x246   :  { %3853 = vmatprep.subr.bf16.mxu1 %v8073_v45  ;;  %v1328_v45 = vmax.f32 %v9405_v35, %v9407_v19  ;;  %v8122_v35 = vld [vmem:[#allocation8 + $0x720] ss:$16 sps:$4 sm:$0xff]   ;;  %v8125_v19 = vld [vmem:[#allocation8 + $0x728] ss:$16 sps:$4 sm:$0xff]   ;;  %10854 = vst [vmem:[#allocation28_spill] sm:$0xff] %v9584_v24 }
 0x247   :  { %3741 = vmatpush1.bf16.msra.mxu0 %v8068_v18  ;;  %v1378_v18 = vmax.f32 %v1282_v8, %v1330_v42  ;;  %v8152_v42 = vld [vmem:[#allocation8 + $0x860] ss:$16 sps:$4 sm:$0xff]   ;;  %v8163_v8 = vld [vmem:[#allocation8 + $0x84c] ss:$16 sps:$4 sm:$0xff]  }
 0x248   :  { %3854 = vmatpush1.bf16.msra.mxu1 %v8071_v3  ;;  %3742 = vmatprep.subr.bf16.mxu0 %v8076_v34  ;;  %v8124_v3 = vld [vmem:[#allocation8 + $0x724] ss:$16 sps:$4 sm:$0xff]   ;;  %v8127_v34 = vld [vmem:[#allocation8 + $0x72c] ss:$16 sps:$4 sm:$0xff]  }
 0x249   :  { %3855 = vmatprep.subr.bf16.mxu1 %v8079_v4  ;;  %v10850_v4 = vld [vmem:[#allocation51_spill] sm:$0xff] }
 0x24a   :  { %3127 = vmatmul.mubr.bf16.gmra.mxu0 %v9281_v0 }
 0x24b   :  { %3240 = vmatmul.mubr.bf16.gmra.mxu1 %v9281_v0  ;;  %7184 = vmatprep.mubr.msk.bf16.mxu0 %vm1940_vm2, %v9317_v15 }
 0x24c   :  { %7192 = vmatprep.mubr.msk.bf16.mxu1 %vm1940_vm2, %v9317_v15  ;;  %3743 = vmatpush1.bf16.msra.mxu0 %v8074_v27  ;;  %v10851_v27 = vld [vmem:[#allocation52_spill] sm:$0xff] }
 0x24d   :  { %3856 = vmatpush1.bf16.msra.mxu1 %v8077_v2  ;;  %3744 = vmatprep.subr.bf16.mxu0 %v8082_v47  ;;  %v10852_v2 = vmax.f32 %v10850_v4, %v10851_v27  ;;  %v8169_v4 = vld [vmem:[#allocation8 + $0x82c] ss:$16 sps:$4 sm:$0xff]  }
 0x24e   :  { %3857 = vmatprep.subr.bf16.mxu1 %v8085_v33  ;;  %v1438_v33 = vadd.f32 %v9219_v55, %v1378_v18 }
 0x24f   :  { %v1376_v47 = vmax.f32 %v10852_v2, %v1328_v45 }
 0x250   :  { %3745 = vmatpush1.bf16.msra.mxu0 %v8080_v57  ;;  %v8130_v57 = vld [vmem:[#allocation8 + $0x704] ss:$16 sps:$4 sm:$0xff]  }
 0x251   :  { %3858 = vmatpush1.bf16.msra.mxu1 %v8083_v7  ;;  %3746 = vmatprep.subr.bf16.mxu0 %v8088_v9  ;;  %v8133_v7 = vld [vmem:[#allocation8 + $0x70c] ss:$16 sps:$4 sm:$0xff]   ;;  %v1436_v9 = vadd.f32 %v9219_v55, %v1376_v47 }
 0x252   :  { %3859 = vmatprep.subr.bf16.mxu1 %v8091_v40  ;;  %3137 = vmatmul.mubr.bf16.gmra.mxu0 %v9306_v16  ;;  %v8128_v40 = vld [vmem:[#allocation8 + $0x700] ss:$16 sps:$4 sm:$0xff]  }
 0x253   :  { %3250 = vmatmul.mubr.bf16.gmra.mxu1 %v9306_v16  ;;  %7185 = vmatprep.mubr.msk.bf16.mxu0 %vm1940_vm2, %v9338_v38 }
 0x254   :  { %7193 = vmatprep.mubr.msk.bf16.mxu1 %vm1940_vm2, %v9338_v38  ;;  %3747 = vmatpush1.bf16.msra.mxu0 %v8086_v52  ;;  %v8131_v52 = vld [vmem:[#allocation8 + $0x708] ss:$16 sps:$4 sm:$0xff]  }
 0x255   :  { %3860 = vmatpush1.bf16.msra.mxu1 %v8089_v62  ;;  %3748 = vmatprep.subr.bf16.mxu0 %v8094_v59  ;;  %v1486_v62 = vmax.f32 %v1438_v33, 0.0  ;;  %v8136_v59 = vld [vmem:[#allocation8 + $0x6e4] ss:$16 sps:$4 sm:$0xff]  }
 0x256   :  { %3861 = vmatprep.subr.bf16.mxu1 %v8097_v60  ;;  %v8139_v60 = vld [vmem:[#allocation8 + $0x6ec] ss:$16 sps:$4 sm:$0xff]   ;;  %v8172_v33 = vld [vmem:[#allocation8 + $0x804] ss:$16 sps:$4 sm:$0xff]  }
 0x258   :  { %3749 = vmatpush1.bf16.msra.mxu0 %v8092_v46  ;;  %v1484_v46 = vmax.f32 %v1436_v9, 0.0 }
 0x259   :  { %3862 = vmatpush1.bf16.msra.mxu1 %v8095_v48  ;;  %3750 = vmatprep.subr.bf16.mxu0 %v8100_v26  ;;  %v8134_v48 = vld [vmem:[#allocation8 + $0x6e0] ss:$16 sps:$4 sm:$0xff]   ;;  %v8137_v26 = vld [vmem:[#allocation8 + $0x6e8] ss:$16 sps:$4 sm:$0xff]  }
 0x25a   :  { %3863 = vmatprep.subr.bf16.mxu1 %v8103_v11  ;;  %3147 = vmatmul.mubr.bf16.gmra.mxu0 %v9331_v51  ;;  %v9568_v11 = vpack.c.bf16 %v1486_v62, %v1484_v46  ;;  %v8170_v62 = vld [vmem:[#allocation8 + $0x800] ss:$16 sps:$4 sm:$0xff]   ;;  %v8181_v46 = vld [vmem:[#allocation8 + $0x7ec] ss:$16 sps:$4 sm:$0xff]  }
 0x25b   :  { %3260 = vmatmul.mubr.bf16.gmra.mxu1 %v9331_v51  ;;  %7186 = vmatprep.mubr.msk.bf16.mxu0 %vm1940_vm2, %v9361_v50 }
 0x25c   :  { %7194 = vmatprep.mubr.msk.bf16.mxu1 %vm1940_vm2, %v9361_v50  ;;  %3751 = vmatpush1.bf16.msra.mxu0 %v8098_v37  ;;  %v8142_v37 = vld [vmem:[#allocation8 + $0x6c4] ss:$16 sps:$4 sm:$0xff]  }
 0x25d   :  { %3864 = vmatpush1.bf16.msra.mxu1 %v8101_v13  ;;  %3752 = vmatprep.subr.bf16.mxu0 %v8106_v58  ;;  %v8145_v13 = vld [vmem:[#allocation8 + $0x6cc] ss:$16 sps:$4 sm:$0xff]   ;;  %v8140_v58 = vld [vmem:[#allocation8 + $0x6c0] ss:$16 sps:$4 sm:$0xff]  }
 0x25e   :  { %3865 = vmatprep.subr.bf16.mxu1 %v8109_v22  ;;  %v8143_v22 = vld [vmem:[#allocation8 + $0x6c8] ss:$16 sps:$4 sm:$0xff]  }
 0x260   :  { %3753 = vmatpush1.bf16.msra.mxu0 %v8104_v25  ;;  %v8148_v25 = vld [vmem:[#allocation8 + $0x6a4] ss:$16 sps:$4 sm:$0xff]  }
 0x261   :  { %3866 = vmatpush1.bf16.msra.mxu1 %v8107_v20  ;;  %3756 = vmatprep.subr.bf16.mxu0 %v8112_v61  ;;  %v8151_v20 = vld [vmem:[#allocation8 + $0x6ac] ss:$16 sps:$4 sm:$0xff]   ;;  %v8146_v61 = vld [vmem:[#allocation8 + $0x6a0] ss:$16 sps:$4 sm:$0xff]  }
 0x262   :  { %3869 = vmatprep.subr.bf16.mxu1 %v8115_v32  ;;  %3157 = vmatmul.mubr.bf16.gmra.mxu0 %v9356_v41  ;;  %v8149_v32 = vld [vmem:[#allocation8 + $0x6a8] ss:$16 sps:$4 sm:$0xff]  }
 0x263   :  { %3270 = vmatmul.mubr.bf16.gmra.mxu1 %v9356_v41  ;;  %7187 = vmatprep.mubr.msk.bf16.mxu0 %vm1940_vm2, %v9396_v14 }
 0x264   :  { %7195 = vmatprep.mubr.msk.bf16.mxu1 %vm1940_vm2, %v9396_v14  ;;  %3757 = vmatpush2.bf16.msra.mxu0 %v8110_v1  ;;  %v8154_v1 = vld [vmem:[#allocation8 + $0x864] ss:$16 sps:$4 sm:$0xff]  }
 0x265   :  { %3870 = vmatpush2.bf16.msra.mxu1 %v8113_v36  ;;  %3758 = vmatprep.subr.bf16.mxu0 %v8118_v43  ;;  %v8157_v36 = vld [vmem:[#allocation8 + $0x86c] ss:$16 sps:$4 sm:$0xff]   ;;  %v8155_v43 = vld [vmem:[#allocation8 + $0x868] ss:$16 sps:$4 sm:$0xff]  }
 0x266   :  { %3871 = vmatprep.subr.bf16.mxu1 %v8121_v31  ;;  %v9582_v31 = vpop.f32.mrf.mxu0 }
 0x267   :  { %10853 = vst [vmem:[#allocation27_spill] sm:$0xff] %v9582_v31 }
 0x268   :  { %3759 = vmatpush2.bf16.msra.mxu0 %v8116_v49 }
 0x269   :  { %3872 = vmatpush2.bf16.msra.mxu1 %v8119_v39  ;;  %3760 = vmatprep.subr.bf16.mxu0 %v8124_v3  ;;  %v8161_v39 = vld [vmem:[#allocation8 + $0x848] ss:$16 sps:$4 sm:$0xff]  }
 0x26a   :  { %3873 = vmatprep.subr.bf16.mxu1 %v8127_v34  ;;  %3167 = vmatmul.mubr.bf16.gmra.mxu0 %v9385_v10  ;;  %v8166_v34 = vld [vmem:[#allocation8 + $0x824] ss:$16 sps:$4 sm:$0xff]  }
 0x26b   :  { %3280 = vmatmul.mubr.bf16.gmra.mxu1 %v9385_v10  ;;  %7188 = vmatprep.mubr.msk.bf16.mxu0 %vm1940_vm2, %v9423_v12 }
 0x26c   :  { %7196 = vmatprep.mubr.msk.bf16.mxu1 %vm1940_vm2, %v9423_v12  ;;  %3761 = vmatpush2.bf16.msra.mxu0 %v8122_v35  ;;  %v8164_v35 = vld [vmem:[#allocation8 + $0x820] ss:$16 sps:$4 sm:$0xff]  }
 0x26d   :  { %3874 = vmatpush2.bf16.msra.mxu1 %v8125_v19  ;;  %3762 = vmatprep.subr.bf16.mxu0 %v8130_v57  ;;  %v8167_v19 = vld [vmem:[#allocation8 + $0x828] ss:$16 sps:$4 sm:$0xff]   ;;  %v8175_v57 = vld [vmem:[#allocation8 + $0x80c] ss:$16 sps:$4 sm:$0xff]  }
 0x26e   :  { %3875 = vmatprep.subr.bf16.mxu1 %v8133_v7 }
 0x270   :  { %3763 = vmatpush2.bf16.msra.mxu0 %v8128_v40 }
 0x271   :  { %3876 = vmatpush2.bf16.msra.mxu1 %v8131_v52  ;;  %3764 = vmatprep.subr.bf16.mxu0 %v8136_v59  ;;  %v8173_v59 = vld [vmem:[#allocation8 + $0x808] ss:$16 sps:$4 sm:$0xff]  }
 0x272   :  { %3877 = vmatprep.subr.bf16.mxu1 %v8139_v60  ;;  %3177 = vmatmul.mubr.bf16.gmra.mxu0 %v9417_v63  ;;  %v8178_v60 = vld [vmem:[#allocation8 + $0x7e4] ss:$16 sps:$4 sm:$0xff]  }
 0x273   :  { %3290 = vmatmul.mubr.bf16.gmra.mxu1 %v9417_v63  ;;  %7189 = vmatprep.mubr.msk.bf16.mxu0 %vm1940_vm2, %v9568_v11 }
 0x274   :  { %7197 = vmatprep.mubr.msk.bf16.mxu1 %vm1940_vm2, %v9568_v11  ;;  %3765 = vmatpush2.bf16.msra.mxu0 %v8134_v48 }
 0x275   :  { %3878 = vmatpush2.bf16.msra.mxu1 %v8137_v26  ;;  %3766 = vmatprep.subr.bf16.mxu0 %v8142_v37 }
 0x276   :  { %3879 = vmatprep.subr.bf16.mxu1 %v8145_v13 }
 0x278   :  { %3767 = vmatpush2.bf16.msra.mxu0 %v8140_v58  ;;  %v8176_v58 = vld [vmem:[#allocation8 + $0x7e0] ss:$16 sps:$4 sm:$0xff]  }
 0x279   :  { %3880 = vmatpush2.bf16.msra.mxu1 %v8143_v22  ;;  %3768 = vmatprep.subr.bf16.mxu0 %v8148_v25  ;;  %v8179_v22 = vld [vmem:[#allocation8 + $0x7e8] ss:$16 sps:$4 sm:$0xff]   ;;  %v8184_v25 = vld [vmem:[#allocation8 + $0x7c4] ss:$16 sps:$4 sm:$0xff]  }
 0x27a   :  { %3881 = vmatprep.subr.bf16.mxu1 %v8151_v20  ;;  %3187 = vmatmul.mubr.bf16.gmra.mxu0 %v9445_v29  ;;  %v8187_v20 = vld [vmem:[#allocation8 + $0x7cc] ss:$16 sps:$4 sm:$0xff]  }
 0x27b   :  { %3300 = vmatmul.mubr.bf16.gmra.mxu1 %v9445_v29  ;;  %7258 = vmatprep.mubr.msk.bf16.mxu0 %vm1940_vm2, %v9286_v54 }
 0x27c   :  { %7266 = vmatprep.mubr.msk.bf16.mxu1 %vm1940_vm2, %v9286_v54  ;;  %3769 = vmatpush2.bf16.msra.mxu0 %v8146_v61  ;;  %v8158_v54 = vld [vmem:[#allocation8 + $0x840] ss:$16 sps:$4 sm:$0xff]  }
 0x27d   :  { %3882 = vmatpush2.bf16.msra.mxu1 %v8149_v32  ;;  %4392 = vmatprep.subr.bf16.mxu0 %v8154_v1 }
 0x27e   :  { %4505 = vmatprep.subr.bf16.mxu1 %v8157_v36 }
 0x282   :  { %v9586_v45 = vpop.f32.mrf.mxu0  ;;  %v9588_v49 = vpop.f32.mrf.mxu1  ;;  %3771 = vmatmul.mubr.bf16.vlgmr.msra.gmra.mxu0 %v9281_v0 }
 0x283   :  { %3884 = vmatmul.mubr.bf16.vlgmr.msra.gmra.mxu1 %v9281_v0  ;;  %4393 = vmatpush1.bf16.msra.mxu0 %v8152_v42  ;;  %v8182_v42 = vld [vmem:[#allocation8 + $0x7c0] ss:$16 sps:$4 sm:$0xff]  }
 0x284   :  { %4506 = vmatpush1.bf16.msra.mxu1 %v8155_v43  ;;  %7259 = vmatprep.mubr.msk.bf16.mxu0 %vm1940_vm2, %v9317_v15  ;;  %v9596_v18 = vpop.f32.mrf.mxu0  ;;  %v9598_v3 = vpop.f32.mrf.mxu1  ;;  %v8185_v43 = vld [vmem:[#allocation8 + $0x7c8] ss:$16 sps:$4 sm:$0xff]  }
 0x285   :  { %7267 = vmatprep.mubr.msk.bf16.mxu1 %vm1940_vm2, %v9317_v15  ;;  %4394 = vmatprep.subr.bf16.mxu0 %v8160_v5  ;;  %v8190_v5 = vld [vmem:[#allocation8 + $0x7a4] ss:$16 sps:$4 sm:$0xff]  }
 0x286   :  { %4507 = vmatprep.subr.bf16.mxu1 %v8163_v8  ;;  %v9600_v27 = vpop.f32.mrf.mxu0  ;;  %v9602_v0 = vpop.f32.mrf.mxu1  ;;  %v8193_v8 = vld [vmem:[#allocation8 + $0x7ac] ss:$16 sps:$4 sm:$0xff]  }
 0x287   :  { %4395 = vmatpush1.bf16.msra.mxu0 %v8158_v54 }
 0x288   :  { %4508 = vmatpush1.bf16.msra.mxu1 %v8161_v39  ;;  %v9604_v2 = vpop.f32.mrf.mxu0  ;;  %v9606_v47 = vpop.f32.mrf.mxu1  ;;  %4396 = vmatprep.subr.bf16.mxu0 %v8166_v34 }
 0x289   :  { %4509 = vmatprep.subr.bf16.mxu1 %v8169_v4 }
 0x28a   :  { %v9608_v7 = vpop.f32.mrf.mxu0  ;;  %v9610_v9 = vpop.f32.mrf.mxu1  ;;  %3781 = vmatmul.mubr.bf16.gmra.mxu0 %v9306_v16 }
 0x28b   :  { %3894 = vmatmul.mubr.bf16.gmra.mxu1 %v9306_v16  ;;  %7260 = vmatprep.mubr.msk.bf16.mxu0 %vm1940_vm2, %v9338_v38 }
 0x28c   :  { %7268 = vmatprep.mubr.msk.bf16.mxu1 %vm1940_vm2, %v9338_v38  ;;  %4397 = vmatpush1.bf16.msra.mxu0 %v8164_v35  ;;  %v9618_v40 = vpop.f32.mrf.mxu0  ;;  %v9620_v52 = vpop.f32.mrf.mxu1  ;;  %v8188_v35 = vld [vmem:[#allocation8 + $0x7a0] ss:$16 sps:$4 sm:$0xff]  }
 0x28d   :  { %4510 = vmatpush1.bf16.msra.mxu1 %v8167_v19  ;;  %4398 = vmatprep.subr.bf16.mxu0 %v8172_v33  ;;  %v8191_v19 = vld [vmem:[#allocation8 + $0x7a8] ss:$16 sps:$4 sm:$0xff]   ;;  %v8196_v33 = vld [vmem:[#allocation8 + $0x784] ss:$16 sps:$4 sm:$0xff]  }
 0x28e   :  { %4511 = vmatprep.subr.bf16.mxu1 %v8175_v57  ;;  %v9622_v48 = vpop.f32.mrf.mxu0  ;;  %v9624_v26 = vpop.f32.mrf.mxu1  ;;  %v8199_v57 = vld [vmem:[#allocation8 + $0x78c] ss:$16 sps:$4 sm:$0xff]  }
 0x290   :  { %4399 = vmatpush1.bf16.msra.mxu0 %v8170_v62  ;;  %v9626_v37 = vpop.f32.mrf.mxu0  ;;  %v9628_v13 = vpop.f32.mrf.mxu1 }
 0x291   :  { %4512 = vmatpush1.bf16.msra.mxu1 %v8173_v59  ;;  %4400 = vmatprep.subr.bf16.mxu0 %v8178_v60 }
 0x292   :  { %4513 = vmatprep.subr.bf16.mxu1 %v8181_v46  ;;  %v9630_v61 = vpop.f32.mrf.mxu0  ;;  %v9632_v32 = vpop.f32.mrf.mxu1  ;;  %3791 = vmatmul.mubr.bf16.gmra.mxu0 %v9331_v51 }
 0x293   :  { %3904 = vmatmul.mubr.bf16.gmra.mxu1 %v9331_v51  ;;  %7261 = vmatprep.mubr.msk.bf16.mxu0 %vm1940_vm2, %v9361_v50 }
 0x294   :  { %7269 = vmatprep.mubr.msk.bf16.mxu1 %vm1940_vm2, %v9361_v50  ;;  %v9640_v1 = vpop.f32.mrf.mxu0  ;;  %v9642_v36 = vpop.f32.mrf.mxu1  ;;  %4401 = vmatpush1.bf16.msra.mxu0 %v8176_v58  ;;  %v8194_v58 = vld [vmem:[#allocation8 + $0x780] ss:$16 sps:$4 sm:$0xff]  }
 0x295   :  { %4514 = vmatpush1.bf16.msra.mxu1 %v8179_v22  ;;  %4402 = vmatprep.subr.bf16.mxu0 %v8184_v25  ;;  %v8197_v22 = vld [vmem:[#allocation8 + $0x788] ss:$16 sps:$4 sm:$0xff]   ;;  %v8202_v25 = vld [vmem:[#allocation8 + $0x944] ss:$16 sps:$4 sm:$0xff]  }
 0x296   :  { %4515 = vmatprep.subr.bf16.mxu1 %v8187_v20  ;;  %v9644_v54 = vpop.f32.mrf.mxu0  ;;  %v9646_v39 = vpop.f32.mrf.mxu1  ;;  %v8205_v20 = vld [vmem:[#allocation8 + $0x94c] ss:$16 sps:$4 sm:$0xff]  }
 0x298   :  { %v9648_v34 = vpop.f32.mrf.mxu0  ;;  %v9650_v4 = vpop.f32.mrf.mxu1  ;;  %4403 = vmatpush1.bf16.msra.mxu0 %v8182_v42 }
 0x299   :  { %4516 = vmatpush1.bf16.msra.mxu1 %v8185_v43  ;;  %4404 = vmatprep.subr.bf16.mxu0 %v8190_v5 }
 0x29a   :  { %4517 = vmatprep.subr.bf16.mxu1 %v8193_v8  ;;  %v9652_v62 = vpop.f32.mrf.mxu0  ;;  %3801 = vmatmul.mubr.bf16.gmra.mxu0 %v9356_v41 }
 0x29b   :  { %v9654_v59 = vpop.f32.mrf.mxu1  ;;  %3914 = vmatmul.mubr.bf16.gmra.mxu1 %v9356_v41  ;;  %7262 = vmatprep.mubr.msk.bf16.mxu0 %vm1940_vm2, %v9396_v14 }
 0x29c   :  { %7270 = vmatprep.mubr.msk.bf16.mxu1 %vm1940_vm2, %v9396_v14  ;;  %v9662_v60 = vpop.f32.mrf.mxu0  ;;  %4405 = vmatpush1.bf16.msra.mxu0 %v8188_v35  ;;  %v1334_v35 = vmax.f32 %v9447_v30, %v9449_v6 }
 0x29d   :  { %v9664_v46 = vpop.f32.mrf.mxu1  ;;  %4518 = vmatpush1.bf16.msra.mxu1 %v8191_v19  ;;  %4406 = vmatprep.subr.bf16.mxu0 %v8196_v33  ;;  %v8208_v19 = vld [vmem:[#allocation8 + $0x924] ss:$16 sps:$4 sm:$0xff]   ;;  %v8211_v33 = vld [vmem:[#allocation8 + $0x92c] ss:$16 sps:$4 sm:$0xff]  }
 0x29e   :  { %4519 = vmatprep.subr.bf16.mxu1 %v8199_v57  ;;  %v9666_v42 = vpop.f32.mrf.mxu0 }
 0x29f   :  { %v9668_v43 = vpop.f32.mrf.mxu1 }
 0x2a0   :  { %v9670_v5 = vpop.f32.mrf.mxu0  ;;  %4407 = vmatpush1.bf16.msra.mxu0 %v8194_v58  ;;  %v10860_v58 = vld [vmem:[#allocation63_spill] sm:$0xff] }
 0x2a1   :  { %10855 = vst [vmem:[#allocation32_spill] sm:$0xff] %v9670_v5  ;;  %v9672_v8 = vpop.f32.mrf.mxu1  ;;  %4520 = vmatpush1.bf16.msra.mxu1 %v8197_v22  ;;  %4410 = vmatprep.subr.bf16.mxu0 %v8202_v25  ;;  %v1286_v22 = vmax.f32 %v10860_v58, %v10859_v56  ;;  %v8206_v25 = vld [vmem:[#allocation8 + $0x920] ss:$16 sps:$4 sm:$0xff]   ;;  %v8214_v56 = vld [vmem:[#allocation8 + $0x904] ss:$16 sps:$4 sm:$0xff]  }
 0x2a2   :  { %10856 = vst [vmem:[#allocation31_spill] sm:$0xff] %v9672_v8  ;;  %4523 = vmatprep.subr.bf16.mxu1 %v8205_v20  ;;  %v9676_v57 = vpop.f32.mrf.mxu0  ;;  %3811 = vmatmul.mubr.bf16.gmra.mxu0 %v9385_v10  ;;  %v1332_v8 = vmax.f32 %v9434_v53, %v9436_v23  ;;  %v8209_v20 = vld [vmem:[#allocation8 + $0x928] ss:$16 sps:$4 sm:$0xff]   ;;  %v8217_v58 = vld [vmem:[#allocation8 + $0x90c] ss:$16 sps:$4 sm:$0xff]   ;;  %v10865_v5 = vld [vmem:[#allocation60_spill] sm:$0xff] }
 0x2a3   :  { %10857 = vst [vmem:[#allocation29_spill] sm:$0xff] %v9676_v57  ;;  %v9678_v21 = vpop.f32.mrf.mxu1  ;;  %3924 = vmatmul.mubr.bf16.gmra.mxu1 %v9385_v10  ;;  %7263 = vmatprep.mubr.msk.bf16.mxu0 %vm1940_vm2, %v9423_v12  ;;  %v10864_v57 = vld [vmem:[#allocation59_spill] sm:$0xff] }
 0x2a4   :  { %10858 = vst [vmem:[#allocation30_spill] sm:$0xff] %v9678_v21  ;;  %7271 = vmatprep.mubr.msk.bf16.mxu1 %vm1940_vm2, %v9423_v12  ;;  %v9690_v30 = vpop.f32.mrf.mxu0  ;;  %4411 = vmatpush2.bf16.msra.mxu0 %v8200_v28  ;;  %v1382_v21 = vmax.f32 %v1286_v22, %v1334_v35  ;;  %v10866_v31 = vmax.f32 %v10864_v57, %v10865_v5  ;;  %v8212_v28 = vld [vmem:[#allocation8 + $0x900] ss:$16 sps:$4 sm:$0xff]   ;;  %v8221_v57 = vld [vmem:[#allocation8 + $0x8e8] ss:$16 sps:$4 sm:$0xff]  }
 0x2a5   :  { %10861 = vst [vmem:[#allocation33_spill] sm:$0xff] %v9690_v30  ;;  %v9692_v6 = vpop.f32.mrf.mxu1  ;;  %4524 = vmatpush2.bf16.msra.mxu1 %v8203_v44  ;;  %4412 = vmatprep.subr.bf16.mxu0 %v8208_v19  ;;  %v8215_v44 = vld [vmem:[#allocation8 + $0x908] ss:$16 sps:$4 sm:$0xff]   ;;  %v8220_v19 = vld [vmem:[#allocation8 + $0x8e4] ss:$16 sps:$4 sm:$0xff]  }
 0x2a6   :  { %10862 = vst [vmem:[#allocation34_spill] sm:$0xff] %v9692_v6  ;;  %4525 = vmatprep.subr.bf16.mxu1 %v8211_v33  ;;  %v9694_v53 = vpop.f32.mrf.mxu0  ;;  %v1380_v24 = vmax.f32 %v10866_v31, %v1332_v8  ;;  %v1442_v35 = vadd.f32 %v9219_v55, %v1382_v21  ;;  %v8223_v33 = vld [vmem:[#allocation8 + $0x8ec] ss:$16 sps:$4 sm:$0xff]   ;;  %v8218_v8 = vld [vmem:[#allocation8 + $0x8e0] ss:$16 sps:$4 sm:$0xff]  }
 0x2a7   :  { %v9696_v23 = vpop.f32.mrf.mxu1 }
 0x2a8   :  { %10863 = vst [vmem:[#allocation35_spill] sm:$0xff] %v9696_v23  ;;  %v9701_v30 = vpop.f32.mrf.mxu0  ;;  %4413 = vmatpush2.bf16.msra.mxu0 %v8206_v25  ;;  %v1440_v31 = vadd.f32 %v9219_v55, %v1380_v24  ;;  %v1490_v25 = vmax.f32 %v1442_v35, 0.0  ;;  %v8232_v35 = vld [vmem:[#allocation8 + $0x8a4] ss:$16 sps:$4 sm:$0xff]  }
 0x2a9   :  { %10867 = vst [vmem:[#allocation36_spill] sm:$0xff] %v9701_v30  ;;  %v9703_v6 = vpop.f32.mrf.mxu1  ;;  %4526 = vmatpush2.bf16.msra.mxu1 %v8209_v20  ;;  %4414 = vmatprep.subr.bf16.mxu0 %v8214_v56  ;;  %v8226_v20 = vld [vmem:[#allocation8 + $0x8c4] ss:$16 sps:$4 sm:$0xff]   ;;  %v8229_v56 = vld [vmem:[#allocation8 + $0x8cc] ss:$16 sps:$4 sm:$0xff]  }
 0x2aa   :  { %10868 = vst [vmem:[#allocation37_spill] sm:$0xff] %v9703_v6  ;;  %4527 = vmatprep.subr.bf16.mxu1 %v8217_v58  ;;  %v9706_v22 = vpop.f32.mrf.mxu0  ;;  %3821 = vmatmul.mubr.bf16.gmra.mxu0 %v9417_v63  ;;  %v1488_v6 = vmax.f32 %v1440_v31, 0.0 }
 0x2ab   :  { %v9708_v23 = vpop.f32.mrf.mxu1  ;;  %3934 = vmatmul.mubr.bf16.gmra.mxu1 %v9417_v63  ;;  %7264 = vmatprep.mubr.msk.bf16.mxu0 %vm1940_vm2, %v9568_v11 }
 0x2ac   :  { %10869 = vst [vmem:[#allocation38_spill] sm:$0xff] %v9708_v23  ;;  %7272 = vmatprep.mubr.msk.bf16.mxu1 %vm1940_vm2, %v9568_v11  ;;  %v9717_v21 = vpop.f32.mrf.mxu0  ;;  %4415 = vmatpush2.bf16.msra.mxu0 %v8212_v28  ;;  %v8224_v28 = vld [vmem:[#allocation8 + $0x8c0] ss:$16 sps:$4 sm:$0xff]  }
 0x2ad   :  { %v9719_v5 = vpop.f32.mrf.mxu1  ;;  %4528 = vmatpush2.bf16.msra.mxu1 %v8215_v44  ;;  %4416 = vmatprep.subr.bf16.mxu0 %v8220_v19  ;;  %v8227_v44 = vld [vmem:[#allocation8 + $0x8c8] ss:$16 sps:$4 sm:$0xff]   ;;  %v8235_v19 = vld [vmem:[#allocation8 + $0x8ac] ss:$16 sps:$4 sm:$0xff]  }
 0x2ae   :  { %10870 = vst [vmem:[#allocation40_spill] sm:$0xff] %v9719_v5  ;;  %4529 = vmatprep.subr.bf16.mxu1 %v8223_v33  ;;  %v9721_v24 = vpop.f32.mrf.mxu0  ;;  %v9729_v5 = vpack.c.bf16 %v1490_v25, %v1488_v6  ;;  %v8238_v25 = vld [vmem:[#allocation8 + $0x884] ss:$16 sps:$4 sm:$0xff]  }
 0x2af   :  { %10871 = vst [vmem:[#allocation39_spill] sm:$0xff] %v9721_v24  ;;  %v9723_v58 = vpop.f32.mrf.mxu1 }
 0x2b0   :  { %v9725_v30 = vpop.f32.mrf.mxu0  ;;  %4417 = vmatpush2.bf16.msra.mxu0 %v8218_v8  ;;  %v8230_v8 = vld [vmem:[#allocation8 + $0x8a0] ss:$16 sps:$4 sm:$0xff]  }
 0x2b1   :  { %10872 = vst [vmem:[#allocation41_spill] sm:$0xff] %v9725_v30  ;;  %v9727_v23 = vpop.f32.mrf.mxu1  ;;  %4530 = vmatpush2.bf16.msra.mxu1 %v8221_v57  ;;  %4418 = vmatprep.subr.bf16.mxu0 %v8226_v20  ;;  %v8233_v57 = vld [vmem:[#allocation8 + $0x8a8] ss:$16 sps:$4 sm:$0xff]   ;;  %v8241_v20 = vld [vmem:[#allocation8 + $0x88c] ss:$16 sps:$4 sm:$0xff]  }
 0x2b2   :  { %10873 = vst [vmem:[#allocation42_spill] sm:$0xff] %v9727_v23  ;;  %4531 = vmatprep.subr.bf16.mxu1 %v8229_v56  ;;  %v9731_v33 = vpop.f32.mrf.mxu0  ;;  %3831 = vmatmul.mubr.bf16.gmra.mxu0 %v9445_v29 }
 0x2b3   :  { %v9733_v24 = vpop.f32.mrf.mxu1  ;;  %3944 = vmatmul.mubr.bf16.gmra.mxu1 %v9445_v29  ;;  %7265 = vmatprep.mubr.msk.bf16.mxu0 %vm1940_vm2, %v9729_v5 }
 0x2b4   :  { %10874 = vst [vmem:[#allocation24_spill] sm:$0xff] %v9733_v24  ;;  %7273 = vmatprep.mubr.msk.bf16.mxu1 %vm1940_vm2, %v9729_v5  ;;  %v9741_v6 = vpop.f32.mrf.mxu0  ;;  %4419 = vmatpush2.bf16.msra.mxu0 %v8224_v28 }
 0x2b5   :  { %10875 = vst [vmem:[#allocation23_spill] sm:$0xff] %v9741_v6  ;;  %v9743_v31 = vpop.f32.mrf.mxu1  ;;  %4532 = vmatpush2.bf16.msra.mxu1 %v8227_v44  ;;  %4420 = vmatprep.subr.bf16.mxu0 %v8232_v35  ;;  %v8236_v6 = vld [vmem:[#allocation8 + $0x880] ss:$16 sps:$4 sm:$0xff]  }
 0x2b6   :  { %10876 = vst [vmem:[#allocation43_spill] sm:$0xff] %v9743_v31  ;;  %4533 = vmatprep.subr.bf16.mxu1 %v8235_v19  ;;  %v9745_v56 = vpop.f32.mrf.mxu0  ;;  %v8239_v31 = vld [vmem:[#allocation8 + $0x888] ss:$16 sps:$4 sm:$0xff]  }
 0x2b7   :  { %v9747_v23 = vpop.f32.mrf.mxu1 }
 0x2b8   :  { %v9749_v30 = vpop.f32.mrf.mxu0  ;;  %4421 = vmatpush2.bf16.msra.mxu0 %v8230_v8 }
 0x2b9   :  { %10877 = vst [vmem:[#allocation44_spill] sm:$0xff] %v9749_v30  ;;  %v9751_v24 = vpop.f32.mrf.mxu1  ;;  %4534 = vmatpush2.bf16.msra.mxu1 %v8233_v57  ;;  %4422 = vmatprep.subr.bf16.mxu0 %v8238_v25 }
 0x2ba   :  { %10878 = vst [vmem:[#allocation48_spill] sm:$0xff] %v9751_v24  ;;  %4535 = vmatprep.subr.bf16.mxu1 %v8241_v20  ;;  %v9753_v28 = vpop.f32.mrf.mxu0  ;;  %3841 = vmatmul.mubr.bf16.gmra.mxu0 %v9461_v17 }
 0x2bb   :  { %v9755_v44 = vpop.f32.mrf.mxu1  ;;  %3954 = vmatmul.mubr.bf16.gmra.mxu1 %v9461_v17  ;;  %7334 = vmatprep.mubr.msk.bf16.mxu0 %vm1940_vm2, %v9317_v15 }
 0x2bc   :  { %7342 = vmatprep.mubr.msk.bf16.mxu1 %vm1940_vm2, %v9317_v15  ;;  %v9763_v35 = vpop.f32.mrf.mxu0  ;;  %4423 = vmatpush2.bf16.msra.mxu0 %v8236_v6 }
 0x2bd   :  { %v9765_v19 = vpop.f32.mrf.mxu1  ;;  %4536 = vmatpush2.bf16.msra.mxu1 %v8239_v31 }
 0x2be   :  { %v9767_v8 = vpop.f32.mrf.mxu0 }
 0x2bf   :  { %v9769_v57 = vpop.f32.mrf.mxu1 }
 0x2c0   :  { %10879 = vst [vmem:[#allocation47_spill] sm:$0xff] %v9769_v57  ;;  %v9771_v25 = vpop.f32.mrf.mxu0 }
 0x2c1   :  { %10880 = vst [vmem:[#allocation45_spill] sm:$0xff] %v9771_v25  ;;  %v9773_v20 = vpop.f32.mrf.mxu1 }
 0x2c2   :  { %10881 = vst [vmem:[#allocation46_spill] sm:$0xff] %v9773_v20  ;;  %v2528_v24 = vpop.f32.mrf.mxu0  ;;  %4425 = vmatmul.mubr.bf16.vlgmr.msra.gmra.mxu0 %v9306_v16 }
 0x2c3   :  { %v2641_v30 = vpop.f32.mrf.mxu1  ;;  %4538 = vmatmul.mubr.bf16.vlgmr.msra.gmra.mxu1 %v9306_v16  ;;  %v9778_v15 = vadd.f32 %v2528_v24, %v9586_v45  ;;  %7335 = vmatprep.mubr.msk.bf16.mxu0 %vm1940_vm2, %v9338_v38 }
 0x2c4   :  { %v9781_v6 = vadd.f32 %v2641_v30, %v9588_v49  ;;  %7343 = vmatprep.mubr.msk.bf16.mxu1 %vm1940_vm2, %v9338_v38  ;;  %v2530_v31 = vpop.f32.mrf.mxu0 }
 0x2c5   :  { %10882 = vst [vmem:[#allocation75_spill] sm:$0xff] %v9778_v15  ;;  %v2643_v20 = vpop.f32.mrf.mxu1  ;;  %v9788_v25 = vadd.f32 %v2530_v31, %v9596_v18 }
 0x2c6   :  { %10883 = vst [vmem:[#allocation49_spill] sm:$0xff] %v9781_v6  ;;  %v9791_v57 = vadd.f32 %v2643_v20, %v9598_v3  ;;  %v2532_v16 = vpop.f32.mrf.mxu0 }
 0x2c7   :  { %v2645_v45 = vpop.f32.mrf.mxu1  ;;  %v9794_v24 = vadd.f32 %v2532_v16, %v9600_v27 }
 0x2c8   :  { %v9797_v49 = vadd.f32 %v2645_v45, %v9602_v0  ;;  %v2534_v30 = vpop.f32.mrf.mxu0 }
 0x2c9   :  { %v2647_v6 = vpop.f32.mrf.mxu1  ;;  %v9800_v38 = vadd.f32 %v2534_v30, %v9604_v2 }
 0x2ca   :  { %v9803_v15 = vadd.f32 %v2647_v6, %v9606_v47  ;;  %v2538_v18 = vpop.f32.mrf.mxu0  ;;  %4435 = vmatmul.mubr.bf16.gmra.mxu0 %v9331_v51 }
 0x2cb   :  { %10884 = vst [vmem:[#allocation50_spill] sm:$0xff] %v9800_v38  ;;  %v2651_v31 = vpop.f32.mrf.mxu1  ;;  %4548 = vmatmul.mubr.bf16.gmra.mxu1 %v9331_v51  ;;  %v9808_v3 = vadd.f32 %v2538_v18, %v9608_v7  ;;  %7336 = vmatprep.mubr.msk.bf16.mxu0 %vm1940_vm2, %v9361_v50  ;;  %v10903_v38 = vld [vmem:[#allocation39_spill] sm:$0xff] }
 0x2cc   :  { %10885 = vst [vmem:[#allocation53_spill] sm:$0xff] %v9803_v15  ;;  %v9811_v27 = vadd.f32 %v2651_v31, %v9610_v9  ;;  %7344 = vmatprep.mubr.msk.bf16.mxu1 %vm1940_vm2, %v9361_v50  ;;  %v2540_v0 = vpop.f32.mrf.mxu0  ;;  %v10901_v15 = vld [vmem:[#allocation40_spill] sm:$0xff] }
 0x2cd   :  { %v2653_v2 = vpop.f32.mrf.mxu1  ;;  %v9818_v47 = vadd.f32 %v2540_v0, %v9618_v40 }
 0x2ce   :  { %v9821_v20 = vadd.f32 %v2653_v2, %v9620_v52  ;;  %v2542_v51 = vpop.f32.mrf.mxu0 }
 0x2cf   :  { %v2655_v7 = vpop.f32.mrf.mxu1  ;;  %v9824_v6 = vadd.f32 %v2542_v51, %v9622_v48 }
 0x2d0   :  { %v9827_v9 = vadd.f32 %v2655_v7, %v9624_v26  ;;  %v2544_v16 = vpop.f32.mrf.mxu0 }
 0x2d1   :  { %v2657_v45 = vpop.f32.mrf.mxu1  ;;  %v9830_v50 = vadd.f32 %v2544_v16, %v9626_v37 }
 0x2d2   :  { %v9833_v30 = vadd.f32 %v2657_v45, %v9628_v13  ;;  %v2548_v40 = vpop.f32.mrf.mxu0  ;;  %4445 = vmatmul.mubr.bf16.gmra.mxu0 %v9356_v41 }
 0x2d3   :  { %v2661_v18 = vpop.f32.mrf.mxu1  ;;  %4558 = vmatmul.mubr.bf16.gmra.mxu1 %v9356_v41  ;;  %v9838_v52 = vadd.f32 %v2548_v40, %v9630_v61  ;;  %7337 = vmatprep.mubr.msk.bf16.mxu0 %vm1940_vm2, %v9396_v14 }
 0x2d4   :  { %v9841_v48 = vadd.f32 %v2661_v18, %v9632_v32  ;;  %7345 = vmatprep.mubr.msk.bf16.mxu1 %vm1940_vm2, %v9396_v14  ;;  %v2550_v26 = vpop.f32.mrf.mxu0 }
 0x2d5   :  { %v2663_v37 = vpop.f32.mrf.mxu1  ;;  %v9848_v13 = vadd.f32 %v2550_v26, %v9640_v1 }
 0x2d6   :  { %v9851_v31 = vadd.f32 %v2663_v37, %v9642_v36  ;;  %v2552_v41 = vpop.f32.mrf.mxu0  ;;  %v10886_v37 = vld [vmem:[#allocation28_spill] sm:$0xff] }
 0x2d7   :  { %v2665_v61 = vpop.f32.mrf.mxu1  ;;  %v9854_v0 = vadd.f32 %v2552_v41, %v9644_v54 }
 0x2d8   :  { %v9857_v32 = vadd.f32 %v2665_v61, %v9646_v39  ;;  %v2554_v2 = vpop.f32.mrf.mxu0  ;;  %v10888_v61 = vld [vmem:[#allocation32_spill] sm:$0xff] }
 0x2d9   :  { %v2667_v51 = vpop.f32.mrf.mxu1  ;;  %v9860_v14 = vadd.f32 %v2554_v2, %v9648_v34 }
 0x2da   :  { %v9863_v7 = vadd.f32 %v2667_v51, %v9650_v4  ;;  %v2558_v1 = vpop.f32.mrf.mxu0  ;;  %4455 = vmatmul.mubr.bf16.gmra.mxu0 %v9385_v10 }
 0x2db   :  { %v2671_v16 = vpop.f32.mrf.mxu1  ;;  %4568 = vmatmul.mubr.bf16.gmra.mxu1 %v9385_v10  ;;  %v9868_v36 = vadd.f32 %v2558_v1, %v9652_v62  ;;  %7338 = vmatprep.mubr.msk.bf16.mxu0 %vm1940_vm2, %v9423_v12 }
 0x2dc   :  { %v9871_v54 = vadd.f32 %v2671_v16, %v9654_v59  ;;  %7346 = vmatprep.mubr.msk.bf16.mxu1 %vm1940_vm2, %v9423_v12  ;;  %v2560_v39 = vpop.f32.mrf.mxu0  ;;  %v10887_v12 = vld [vmem:[#allocation27_spill] sm:$0xff] }
 0x2dd   :  { %v2673_v34 = vpop.f32.mrf.mxu1  ;;  %v9878_v4 = vadd.f32 %v2560_v39, %v9662_v60  ;;  %v1338_v41 = vmax.f32 %v10887_v12, %v10886_v37  ;;  %v10889_v60 = vld [vmem:[#allocation31_spill] sm:$0xff]  ;;  %v10892_v39 = vld [vmem:[#allocation29_spill] sm:$0xff] }
 0x2de   :  { %v9881_v45 = vadd.f32 %v2673_v34, %v9664_v46  ;;  %v2562_v10 = vpop.f32.mrf.mxu0  ;;  %v10894_v12 = vld [vmem:[#allocation33_spill] sm:$0xff] }
 0x2df   :  { %v2675_v62 = vpop.f32.mrf.mxu1  ;;  %v9884_v40 = vadd.f32 %v2562_v10, %v9666_v42  ;;  %v10890_v42 = vld [vmem:[#allocation73_spill] sm:$0xff]  ;;  %v10893_v10 = vld [vmem:[#allocation30_spill] sm:$0xff] }
 0x2e0   :  { %v9887_v59 = vadd.f32 %v2675_v62, %v9668_v43  ;;  %v2564_v18 = vpop.f32.mrf.mxu0  ;;  %v10891_v43 = vld [vmem:[#allocation72_spill] sm:$0xff] }
 0x2e1   :  { %v2677_v26 = vpop.f32.mrf.mxu1  ;;  %v9892_v2 = vadd.f32 %v2564_v18, %v10888_v61  ;;  %v1290_v16 = vmax.f32 %v10891_v43, %v10890_v42  ;;  %v10895_v61 = vld [vmem:[#allocation34_spill] sm:$0xff]  ;;  %v10896_v43 = vld [vmem:[#allocation35_spill] sm:$0xff] }
 0x2e2   :  { %v9895_v51 = vadd.f32 %v2677_v26, %v10889_v60  ;;  %v2568_v46 = vpop.f32.mrf.mxu0  ;;  %4465 = vmatmul.mubr.bf16.gmra.mxu0 %v9417_v63 }
 0x2e3   :  { %v2681_v1 = vpop.f32.mrf.mxu1  ;;  %4578 = vmatmul.mubr.bf16.gmra.mxu1 %v9417_v63  ;;  %v9902_v34 = vadd.f32 %v2568_v46, %v10892_v39  ;;  %7339 = vmatprep.mubr.msk.bf16.mxu0 %vm1940_vm2, %v9568_v11  ;;  %v1386_v37 = vmax.f32 %v1290_v16, %v1338_v41 }
 0x2e4   :  { %v9905_v62 = vadd.f32 %v2681_v1, %v10893_v10  ;;  %7347 = vmatprep.mubr.msk.bf16.mxu1 %vm1940_vm2, %v9568_v11  ;;  %v2570_v18 = vpop.f32.mrf.mxu0 }
 0x2e5   :  { %v2683_v26 = vpop.f32.mrf.mxu1  ;;  %v9912_v63 = vadd.f32 %v2570_v18, %v10894_v12  ;;  %v1446_v41 = vadd.f32 %v9219_v55, %v1386_v37 }
 0x2e6   :  { %v9915_v60 = vadd.f32 %v2683_v26, %v10895_v61  ;;  %v2572_v46 = vpop.f32.mrf.mxu0  ;;  %v10897_v26 = vld [vmem:[#allocation25_spill] sm:$0xff]  ;;  %v10899_v61 = vld [vmem:[#allocation38_spill] sm:$0xff] }
 0x2e7   :  { %v2685_v42 = vpop.f32.mrf.mxu1  ;;  %v9918_v1 = vadd.f32 %v2572_v46, %v9694_v53  ;;  %v1444_v12 = vadd.f32 %v9219_v55, %v10897_v26 }
 0x2e8   :  { %v9921_v39 = vadd.f32 %v2685_v42, %v10896_v43  ;;  %v9923_v10 = vpop.f32.mrf.mxu0  ;;  %v1494_v43 = vmax.f32 %v1446_v41, 0.0 }
 0x2e9   :  { %v9925_v11 = vpop.f32.mrf.mxu1 }
 0x2ea   :  { %v2578_v16 = vpop.f32.mrf.mxu0  ;;  %4475 = vmatmul.mubr.bf16.gmra.mxu0 %v9445_v29 }
 0x2eb   :  { %v2691_v18 = vpop.f32.mrf.mxu1  ;;  %4588 = vmatmul.mubr.bf16.gmra.mxu1 %v9445_v29  ;;  %v9933_v53 = vadd.f32 %v2578_v16, %v9706_v22  ;;  %7340 = vmatprep.mubr.msk.bf16.mxu0 %vm1940_vm2, %v9729_v5  ;;  %v8242_v22 = vld [vmem:[#allocation11 + $0x270] ss:$16 sps:$4 sm:$0xff]   ;;  %v8244_v16 = vld [vmem:[#allocation11 + $0x274] ss:$16 sps:$4 sm:$0xff]  }
 0x2ec   :  { %v9936_v46 = vadd.f32 %v2691_v18, %v10899_v61  ;;  %7348 = vmatprep.mubr.msk.bf16.mxu1 %vm1940_vm2, %v9729_v5  ;;  %v2580_v37 = vpop.f32.mrf.mxu0  ;;  %v1492_v61 = vmax.f32 %v1444_v12, 0.0  ;;  %5150 = vmatprep.subr.bf16.mxu0 %v8244_v16  ;;  %v8247_v5 = vld [vmem:[#allocation11 + $0x27c] ss:$16 sps:$4 sm:$0xff]   ;;  %v8250_v16 = vld [vmem:[#allocation11 + $0x254] ss:$16 sps:$4 sm:$0xff]  }
 0x2ed   :  { %10898 = vst [vmem:[#allocation54_spill] sm:$0xff] %v9933_v53  ;;  %v2693_v42 = vpop.f32.mrf.mxu1  ;;  %v9943_v29 = vadd.f32 %v2580_v37, %v9717_v21  ;;  %5151 = vmatpush1.bf16.msra.mxu0 %v8242_v22  ;;  %5193 = vmatprep.subr.bf16.mxu1 %v8247_v5  ;;  %v8248_v22 = vld [vmem:[#allocation11 + $0x250] ss:$16 sps:$4 sm:$0xff]   ;;  %v10908_v5 = vld [vmem:[#allocation43_spill] sm:$0xff] }
 0x2ee   :  { %10900 = vst [vmem:[#allocation57_spill] sm:$0xff] %v9936_v46  ;;  %v9946_v55 = vadd.f32 %v2693_v42, %v10901_v15  ;;  %v2582_v26 = vpop.f32.mrf.mxu0  ;;  %v8245_v15 = vld [vmem:[#allocation11 + $0x278] ss:$16 sps:$4 sm:$0xff]   ;;  %v1518_v37 = vpack.c.bf16 %v1494_v43, %v1492_v61  ;;  %5152 = vmatprep.subr.bf16.mxu0 %v8250_v16 }
 0x2ef   :  { %v2695_v18 = vpop.f32.mrf.mxu1  ;;  %v9949_v46 = vadd.f32 %v2582_v26, %v10903_v38  ;;  %5194 = vmatpush1.bf16.msra.mxu1 %v8245_v15  ;;  %v8254_v15 = vld [vmem:[#allocation11 + $0x230] ss:$16 sps:$4 sm:$0xff]   ;;  %v8257_v16 = vld [vmem:[#allocation11 + $0x238] ss:$16 sps:$4 sm:$0xff]  }
 0x2f0   :  { %10902 = vst [vmem:[#allocation58_spill] sm:$0xff] %v9946_v55  ;;  %v9952_v53 = vadd.f32 %v2695_v18, %v9723_v58  ;;  %v9954_v41 = vpop.f32.mrf.mxu0  ;;  %v10905_v58 = vld [vmem:[#allocation24_spill] sm:$0xff]  ;;  %v10907_v18 = vld [vmem:[#allocation23_spill] sm:$0xff] }
 0x2f1   :  { %v9956_v21 = vpop.f32.mrf.mxu1  ;;  %5153 = vmatpush1.bf16.msra.mxu0 %v8248_v22  ;;  %v10912_v22 = vld [vmem:[#allocation26_spill] sm:$0xff] }
 0x2f2   :  { %v2588_v42 = vpop.f32.mrf.mxu0  ;;  %4485 = vmatmul.mubr.bf16.gmra.mxu0 %v9461_v17 }
 0x2f3   :  { %v2701_v55 = vpop.f32.mrf.mxu1  ;;  %4598 = vmatmul.mubr.bf16.gmra.mxu1 %v9461_v17  ;;  %v9961_v38 = vadd.f32 %v2588_v42, %v9731_v33  ;;  %7341 = vmatprep.mubr.msk.bf16.mxu0 %vm1940_vm2, %v1518_v37  ;;  %v8251_v33 = vld [vmem:[#allocation11 + $0x258] ss:$16 sps:$4 sm:$0xff]   ;;  %v8253_v42 = vld [vmem:[#allocation11 + $0x25c] ss:$16 sps:$4 sm:$0xff]  }
 0x2f4   :  { %v9964_v12 = vadd.f32 %v2701_v55, %v10905_v58  ;;  %7349 = vmatprep.mubr.msk.bf16.mxu1 %vm1940_vm2, %v1518_v37  ;;  %v2590_v43 = vpop.f32.mrf.mxu0  ;;  %5195 = vmatprep.subr.bf16.mxu1 %v8253_v42 }
 0x2f5   :  { %10904 = vst [vmem:[#allocation61_spill] sm:$0xff] %v9961_v38  ;;  %v2703_v26 = vpop.f32.mrf.mxu1  ;;  %v9969_v61 = vadd.f32 %v2590_v43, %v10907_v18  ;;  %v8256_v38 = vld [vmem:[#allocation11 + $0x234] ss:$16 sps:$4 sm:$0xff]   ;;  %5196 = vmatpush1.bf16.msra.mxu1 %v8251_v33 }
 0x2f6   :  { %10906 = vst [vmem:[#allocation62_spill] sm:$0xff] %v9964_v12  ;;  %v9972_v17 = vadd.f32 %v2703_v26, %v10908_v5  ;;  %v2592_v55 = vpop.f32.mrf.mxu0  ;;  %5154 = vmatprep.subr.bf16.mxu0 %v8256_v38  ;;  %v8259_v26 = vld [vmem:[#allocation11 + $0x23c] ss:$16 sps:$4 sm:$0xff]  }
 0x2f7   :  { %v2705_v58 = vpop.f32.mrf.mxu1  ;;  %v9975_v12 = vadd.f32 %v2592_v55, %v9745_v56  ;;  %5155 = vmatpush1.bf16.msra.mxu0 %v8254_v15  ;;  %5197 = vmatprep.subr.bf16.mxu1 %v8259_v26  ;;  %v8263_v15 = vld [vmem:[#allocation11 + $0x218] ss:$16 sps:$4 sm:$0xff]   ;;  %v8265_v26 = vld [vmem:[#allocation11 + $0x21c] ss:$16 sps:$4 sm:$0xff]  }
 0x2f8   :  { %10909 = vst [vmem:[#allocation65_spill] sm:$0xff] %v9972_v17  ;;  %v9978_v37 = vadd.f32 %v2705_v58, %v9747_v23  ;;  %v9980_v43 = vpop.f32.mrf.mxu0  ;;  %v8260_v58 = vld [vmem:[#allocation11 + $0x210] ss:$16 sps:$4 sm:$0xff]  }
 0x2f9   :  { %10910 = vst [vmem:[#allocation66_spill] sm:$0xff] %v9975_v12  ;;  %v9982_v18 = vpop.f32.mrf.mxu1  ;;  %5198 = vmatpush1.bf16.msra.mxu1 %v8257_v16 }
 0x2fa   :  { %10911 = vst [vmem:[#allocation67_spill] sm:$0xff] %v9978_v37  ;;  %v2598_v5 = vpop.f32.mrf.mxu0  ;;  %4495 = vmatmul.mubr.bf16.gmra.mxu0 %v10912_v22  ;;  %v8262_v37 = vld [vmem:[#allocation11 + $0x214] ss:$16 sps:$4 sm:$0xff]   ;;  %5199 = vmatprep.subr.bf16.mxu1 %v8265_v26  ;;  %v8269_v26 = vld [vmem:[#allocation11 + $0x1f8] ss:$16 sps:$4 sm:$0xff]  }
 0x2fb   :  { %v2711_v17 = vpop.f32.mrf.mxu1  ;;  %4608 = vmatmul.mubr.bf16.gmra.mxu1 %v10912_v22  ;;  %v9987_v23 = vadd.f32 %v2598_v5, %v9753_v28  ;;  %5156 = vmatprep.subr.bf16.mxu0 %v8262_v37  ;;  %v8268_v5 = vld [vmem:[#allocation11 + $0x1f4] ss:$16 sps:$4 sm:$0xff]  }
 0x2fc   :  { %v9990_v56 = vadd.f32 %v2711_v17, %v9755_v44  ;;  %v2600_v42 = vpop.f32.mrf.mxu0  ;;  %v10915_v44 = vld [vmem:[#allocation47_spill] sm:$0xff]  ;;  %5157 = vmatpush1.bf16.msra.mxu0 %v8260_v58 }
 0x2fd   :  { %v2713_v55 = vpop.f32.mrf.mxu1  ;;  %v9993_v38 = vadd.f32 %v2600_v42, %v9763_v35  ;;  %5200 = vmatpush1.bf16.msra.mxu1 %v8263_v15  ;;  %5158 = vmatprep.subr.bf16.mxu0 %v8268_v5 }
 0x2fe   :  { %v9996_v33 = vadd.f32 %v2713_v55, %v9765_v19  ;;  %v2602_v22 = vpop.f32.mrf.mxu0  ;;  %v8266_v19 = vld [vmem:[#allocation11 + $0x1f0] ss:$16 sps:$4 sm:$0xff]  }
 0x2ff   :  { %v2715_v12 = vpop.f32.mrf.mxu1  ;;  %v9999_v28 = vadd.f32 %v2602_v22, %v9767_v8  ;;  %v10919_v22 = vld [vmem:[#allocation49_spill] sm:$0xff] }
 0x300   :  { %10913 = vst [vmem:[#allocation68_spill] sm:$0xff] %v9996_v33  ;;  %v10002_v17 = vadd.f32 %v2715_v12, %v10915_v44  ;;  %v10004_v16 = vpop.f32.mrf.mxu0  ;;  %v10918_v33 = vld [vmem:[#allocation75_spill] sm:$0xff]  ;;  %5159 = vmatpush1.bf16.msra.mxu0 %v8266_v19 }
 0x301   :  { %10914 = vst [vmem:[#allocation70_spill] sm:$0xff] %v9999_v28  ;;  %v10006_v35 = vpop.f32.mrf.mxu1  ;;  %v8271_v28 = vld [vmem:[#allocation11 + $0x1fc] ss:$16 sps:$4 sm:$0xff]  }
 0x302   :  { %10916 = vst [vmem:[#allocation71_spill] sm:$0xff] %v10002_v17  ;;  %10917 = vst [vmem:[#allocation56_spill] sm:$0xff] %v10006_v35  ;;  %v3118_v42 = vpop.f32.mrf.mxu0  ;;  %5201 = vmatprep.subr.bf16.mxu1 %v8271_v28 }
 0x303   :  { %v3231_v55 = vpop.f32.mrf.mxu1  ;;  %v10009_v8 = vadd.f32 %v3118_v42, %v10918_v33  ;;  %5202 = vmatpush1.bf16.msra.mxu1 %v8269_v26 }
 0x304   :  { %v10012_v12 = vadd.f32 %v3231_v55, %v10919_v22  ;;  %v3120_v37 = vpop.f32.mrf.mxu0  ;;  %v8274_v55 = vld [vmem:[#allocation11 + $0x1d4] ss:$16 sps:$4 sm:$0xff]  }
 0x305   :  { %v3233_v44 = vpop.f32.mrf.mxu1  ;;  %v10015_v17 = vadd.f32 %v3120_v37, %v9788_v25  ;;  %v8272_v25 = vld [vmem:[#allocation11 + $0x1d0] ss:$16 sps:$4 sm:$0xff]   ;;  %5160 = vmatprep.subr.bf16.mxu0 %v8274_v55 }
 0x306   :  { %v10018_v58 = vadd.f32 %v3233_v44, %v9791_v57  ;;  %v3122_v35 = vpop.f32.mrf.mxu0  ;;  %5161 = vmatpush1.bf16.msra.mxu0 %v8272_v25  ;;  %v8283_v25 = vld [vmem:[#allocation11 + $0x1bc] ss:$16 sps:$4 sm:$0xff]  }
 0x307   :  { %v3235_v15 = vpop.f32.mrf.mxu1  ;;  %v10021_v33 = vadd.f32 %v3122_v35, %v9794_v24  ;;  %v8275_v24 = vld [vmem:[#allocation11 + $0x1d8] ss:$16 sps:$4 sm:$0xff]  }
 0x308   :  { %v10024_v42 = vadd.f32 %v3235_v15, %v9797_v49  ;;  %v10026_v5 = vpop.f32.mrf.mxu0  ;;  %v8277_v49 = vld [vmem:[#allocation11 + $0x1dc] ss:$16 sps:$4 sm:$0xff]  }
 0x309   :  { %10920 = vst [vmem:[#allocation55_spill] sm:$0xff] %v10021_v33  ;;  %v10028_v19 = vpop.f32.mrf.mxu1  ;;  %5203 = vmatprep.subr.bf16.mxu1 %v8277_v49  ;;  %v8278_v49 = vld [vmem:[#allocation11 + $0x1b0] ss:$16 sps:$4 sm:$0xff]  }
 0x30a   :  { %10921 = vst [vmem:[#allocation51_spill] sm:$0xff] %v10024_v42  ;;  %v3128_v57 = vpop.f32.mrf.mxu0  ;;  %5204 = vmatpush1.bf16.msra.mxu1 %v8275_v24 }
 0x30b   :  { %v3241_v22 = vpop.f32.mrf.mxu1  ;;  %v10031_v37 = vadd.f32 %v3128_v57, %v9808_v3  ;;  %5205 = vmatprep.subr.bf16.mxu1 %v8283_v25  ;;  %v8287_v25 = vld [vmem:[#allocation11 + $0x198] ss:$16 sps:$4 sm:$0xff]  }
 0x30c   :  { %v10034_v44 = vadd.f32 %v3241_v22, %v9811_v27  ;;  %v3130_v35 = vpop.f32.mrf.mxu0  ;;  %v8280_v22 = vld [vmem:[#allocation11 + $0x1b4] ss:$16 sps:$4 sm:$0xff]  }
 0x30d   :  { %v3243_v28 = vpop.f32.mrf.mxu1  ;;  %v10037_v15 = vadd.f32 %v3130_v35, %v9818_v47  ;;  %v8281_v35 = vld [vmem:[#allocation11 + $0x1b8] ss:$16 sps:$4 sm:$0xff]   ;;  %5162 = vmatprep.subr.bf16.mxu0 %v8280_v22  ;;  %v8284_v22 = vld [vmem:[#allocation11 + $0x190] ss:$16 sps:$4 sm:$0xff]  }
 0x30e   :  { %v10040_v26 = vadd.f32 %v3243_v28, %v9821_v20  ;;  %v3132_v42 = vpop.f32.mrf.mxu0  ;;  %5163 = vmatpush1.bf16.msra.mxu0 %v8278_v49  ;;  %5206 = vmatpush1.bf16.msra.mxu1 %v8281_v35  ;;  %v4881_v35 = vld [vmem:[#allocation11 + $0x310] sm:$0xff] }
 0x30f   :  { %v3245_v33 = vpop.f32.mrf.mxu1  ;;  %v10043_v3 = vadd.f32 %v3132_v42, %v9824_v6  ;;  %v8286_v42 = vld [vmem:[#allocation11 + $0x194] ss:$16 sps:$4 sm:$0xff]  }
 0x310   :  { %v10046_v27 = vadd.f32 %v3245_v33, %v9827_v9  ;;  %v3134_v55 = vpop.f32.mrf.mxu0  ;;  %5164 = vmatprep.subr.bf16.mxu0 %v8286_v42 }
 0x311   :  { %v3247_v57 = vpop.f32.mrf.mxu1  ;;  %v10049_v47 = vadd.f32 %v3134_v55, %v9830_v50  ;;  %v8289_v55 = vld [vmem:[#allocation11 + $0x19c] ss:$16 sps:$4 sm:$0xff]  }
 0x312   :  { %v10052_v20 = vadd.f32 %v3247_v57, %v9833_v30  ;;  %v3138_v28 = vpop.f32.mrf.mxu0  ;;  %5207 = vmatprep.subr.bf16.mxu1 %v8289_v55  ;;  %5165 = vmatpush1.bf16.msra.mxu0 %v8284_v22 }
 0x313   :  { %v3251_v24 = vpop.f32.mrf.mxu1  ;;  %v10055_v6 = vadd.f32 %v3138_v28, %v9838_v52  ;;  %5208 = vmatpush1.bf16.msra.mxu1 %v8287_v25 }
 0x314   :  { %10922 = vst [vmem:[#allocation52_spill] sm:$0xff] %v10052_v20  ;;  %v10058_v9 = vadd.f32 %v3251_v24, %v9841_v48  ;;  %v3140_v33 = vpop.f32.mrf.mxu0 }
 0x315   :  { %v3253_v50 = vpop.f32.mrf.mxu1  ;;  %v10061_v30 = vadd.f32 %v3140_v33, %v9848_v13  ;;  %v4882_v13 = vld [vmem:[#allocation11 + $0x318] sm:$0xff]  ;;  %v7398_v33 = vcombine.low %v4881_v35, %v4881_v35 }
 0x316   :  { %v10064_v57 = vadd.f32 %v3253_v50, %v9851_v31  ;;  %v3142_v20 = vpop.f32.mrf.mxu0  ;;  %v7399_v31 = vcombine.high %v4881_v35, %v4881_v35  ;;  %v7401_v50 = vcombine.high %v4882_v13, %v4882_v13  ;;  %v8299_v35 = vld [vmem:[#allocation11 + $0x2fc] ss:$16 sps:$4 sm:$0xff]  }
 0x317   :  { %10923 = vst [vmem:[#allocation64_spill] sm:$0xff] %v10061_v30  ;;  %v3255_v52 = vpop.f32.mrf.mxu1  ;;  %v10067_v48 = vadd.f32 %v3142_v20, %v9854_v0  ;;  %v5139_v20 = vsel %vm5137_vm3, %v7398_v33, 0 }
 0x318   :  { %10924 = vst [vmem:[#allocation63_spill] sm:$0xff] %v10064_v57  ;;  %v10070_v49 = vadd.f32 %v3255_v52, %v9857_v32  ;;  %v3144_v28 = vpop.f32.mrf.mxu0  ;;  %v7400_v57 = vcombine.low %v4882_v13, %v4882_v13  ;;  %7402 = vmatprep.subr.msk.bf16.mxu0 %vm5137_vm3, %v7399_v31  ;;  %7404 = vmatprep.subr.msk.bf16.mxu1 %vm5137_vm3, %v7401_v50  ;;  %v8296_v52 = vld [vmem:[#allocation11 + $0x2f4] ss:$16 sps:$4 sm:$0xff]  }
 0x319   :  { %v3257_v24 = vpop.f32.mrf.mxu1  ;;  %v10073_v30 = vadd.f32 %v3144_v28, %v9860_v14  ;;  %5173 = vmatpush2.bf16.msra.mxu0 %v5139_v20 }
 0x31a   :  { %v10076_v42 = vadd.f32 %v3257_v24, %v9863_v7  ;;  %v3148_v0 = vpop.f32.mrf.mxu0  ;;  %v5145_v55 = vsel %vm5137_vm3, %v7400_v57, 0  ;;  %v8294_v24 = vld [vmem:[#allocation11 + $0x2f0] ss:$16 sps:$4 sm:$0xff]   ;;  %v8297_v57 = vld [vmem:[#allocation11 + $0x2f8] ss:$16 sps:$4 sm:$0xff]   ;;  %5174 = vmatprep.subr.bf16.mxu0 %v8296_v52 }
 0x31b   :  { %v3261_v32 = vpop.f32.mrf.mxu1  ;;  %v10083_v22 = vadd.f32 %v3148_v0, %v9868_v36  ;;  %5216 = vmatpush2.bf16.msra.mxu1 %v5145_v55  ;;  %v8302_v0 = vld [vmem:[#allocation11 + $0x2d4] ss:$16 sps:$4 sm:$0xff]   ;;  %v8300_v55 = vld [vmem:[#allocation11 + $0x2d0] ss:$16 sps:$4 sm:$0xff]  }
 0x31c   :  { %v10086_v14 = vadd.f32 %v3261_v32, %v9871_v54  ;;  %v3150_v7 = vpop.f32.mrf.mxu0  ;;  %5217 = vmatprep.subr.bf16.mxu1 %v8299_v35  ;;  %v8305_v32 = vld [vmem:[#allocation11 + $0x2dc] ss:$16 sps:$4 sm:$0xff]  }
 0x31d   :  { %v3263_v25 = vpop.f32.mrf.mxu1  ;;  %v10089_v13 = vadd.f32 %v3150_v7, %v9878_v4  ;;  %5175 = vmatpush2.bf16.msra.mxu0 %v8294_v24  ;;  %v8303_v7 = vld [vmem:[#allocation11 + $0x2d8] ss:$16 sps:$4 sm:$0xff]   ;;  %v8308_v24 = vld [vmem:[#allocation11 + $0x2b4] ss:$16 sps:$4 sm:$0xff]  }
 0x31e   :  { %v10092_v28 = vadd.f32 %v3263_v25, %v9881_v45  ;;  %v3152_v31 = vpop.f32.mrf.mxu0  ;;  %5176 = vmatprep.subr.bf16.mxu0 %v8302_v0 }
 0x31f   :  { %v3265_v36 = vpop.f32.mrf.mxu1  ;;  %v10095_v54 = vadd.f32 %v3152_v31, %v9884_v40  ;;  %5218 = vmatpush2.bf16.msra.mxu1 %v8297_v57  ;;  %v8311_v57 = vld [vmem:[#allocation11 + $0x2bc] ss:$16 sps:$4 sm:$0xff]  }
 0x320   :  { %v10098_v33 = vadd.f32 %v3265_v36, %v9887_v59  ;;  %v3154_v50 = vpop.f32.mrf.mxu0  ;;  %5219 = vmatprep.subr.bf16.mxu1 %v8305_v32  ;;  %v8306_v36 = vld [vmem:[#allocation11 + $0x2b0] ss:$16 sps:$4 sm:$0xff]   ;;  %v10928_v32 = vld [vmem:[#allocation37_spill] sm:$0xff] }
 0x321   :  { %v3267_v4 = vpop.f32.mrf.mxu1  ;;  %v10101_v45 = vadd.f32 %v3154_v50, %v9892_v2  ;;  %5177 = vmatpush2.bf16.msra.mxu0 %v8300_v55  ;;  %v8309_v50 = vld [vmem:[#allocation11 + $0x2b8] ss:$16 sps:$4 sm:$0xff]   ;;  %v2688_v55 = vadd.f32 %v9925_v11, %v10928_v32  ;;  %v8323_v32 = vld [vmem:[#allocation11 + $0xec] ss:$16 sps:$4 sm:$0xff]  }
 0x322   :  { %v10104_v20 = vadd.f32 %v3267_v4, %v9895_v51  ;;  %v3158_v25 = vpop.f32.mrf.mxu0  ;;  %v10927_v4 = vld [vmem:[#allocation36_spill] sm:$0xff]  ;;  %5178 = vmatprep.subr.bf16.mxu0 %v8308_v24 }
 0x323   :  { %10925 = vst [vmem:[#allocation59_spill] sm:$0xff] %v10101_v45  ;;  %v3271_v40 = vpop.f32.mrf.mxu1  ;;  %v10107_v59 = vadd.f32 %v3158_v25, %v9902_v34  ;;  %5220 = vmatpush2.bf16.msra.mxu1 %v8303_v7  ;;  %v2575_v34 = vadd.f32 %v9923_v10, %v10927_v4  ;;  %v8312_v24 = vld [vmem:[#allocation11 + $0x290] ss:$16 sps:$4 sm:$0xff]  }
 0x324   :  { %10926 = vst [vmem:[#allocation60_spill] sm:$0xff] %v10104_v20  ;;  %v10110_v52 = vadd.f32 %v3271_v40, %v9905_v62  ;;  %v3160_v35 = vpop.f32.mrf.mxu0  ;;  %5221 = vmatprep.subr.bf16.mxu1 %v8311_v57  ;;  %v8314_v40 = vld [vmem:[#allocation11 + $0x294] ss:$16 sps:$4 sm:$0xff]   ;;  %v8315_v57 = vld [vmem:[#allocation11 + $0x298] ss:$16 sps:$4 sm:$0xff]  }
 0x325   :  { %v3273_v2 = vpop.f32.mrf.mxu1  ;;  %v10113_v51 = vadd.f32 %v3160_v35, %v9912_v63  ;;  %5179 = vmatpush2.bf16.msra.mxu0 %v8306_v36  ;;  %v8317_v35 = vld [vmem:[#allocation11 + $0x29c] ss:$16 sps:$4 sm:$0xff]  }
 0x326   :  { %v10116_v31 = vadd.f32 %v3273_v2, %v9915_v60  ;;  %v3162_v0 = vpop.f32.mrf.mxu0  ;;  %5180 = vmatprep.subr.bf16.mxu0 %v8314_v40  ;;  %v10934_v20 = vld [vmem:[#allocation61_spill] sm:$0xff] }
 0x327   :  { %v3275_v62 = vpop.f32.mrf.mxu1  ;;  %v10123_v7 = vadd.f32 %v3162_v0, %v9918_v1  ;;  %5222 = vmatpush2.bf16.msra.mxu1 %v8309_v50  ;;  %v10929_v1 = vld [vmem:[#allocation54_spill] sm:$0xff] }
 0x328   :  { %v10126_v63 = vadd.f32 %v3275_v62, %v9921_v39  ;;  %v3164_v60 = vpop.f32.mrf.mxu0  ;;  %5223 = vmatprep.subr.bf16.mxu1 %v8317_v35  ;;  %v10930_v39 = vld [vmem:[#allocation57_spill] sm:$0xff] }
 0x329   :  { %v3277_v25 = vpop.f32.mrf.mxu1  ;;  %v10128_v10 = vadd.f32 %v3164_v60, %v2575_v34  ;;  %5181 = vmatpush2.bf16.msra.mxu0 %v8312_v24  ;;  %v8320_v34 = vld [vmem:[#allocation11 + $0xe4] ss:$16 sps:$4 sm:$0xff]  }
 0x32a   :  { %v10130_v2 = vadd.f32 %v3277_v25, %v2688_v55  ;;  %v3168_v4 = vpop.f32.mrf.mxu0  ;;  %v10931_v60 = vld [vmem:[#allocation58_spill] sm:$0xff]  ;;  %5501 = vmatprep.subr.bf16.mxu0 %v8320_v34 }
 0x32b   :  { %v3281_v11 = vpop.f32.mrf.mxu1  ;;  %v10133_v0 = vadd.f32 %v3168_v4, %v10929_v1  ;;  %5224 = vmatpush2.bf16.msra.mxu1 %v8315_v57  ;;  %v10932_v4 = vld [vmem:[#allocation41_spill] sm:$0xff]  ;;  %v10933_v1 = vld [vmem:[#allocation42_spill] sm:$0xff] }
 0x32c   :  { %v10136_v36 = vadd.f32 %v3281_v11, %v10930_v39  ;;  %v3170_v50 = vpop.f32.mrf.mxu0  ;;  %5544 = vmatprep.subr.bf16.mxu1 %v8323_v32  ;;  %v2585_v11 = vadd.f32 %v9954_v41, %v10932_v4  ;;  %v2698_v24 = vadd.f32 %v9956_v21, %v10933_v1  ;;  %v10936_v41 = vld [vmem:[#allocation62_spill] sm:$0xff] }
 0x32d   :  { %v3283_v62 = vpop.f32.mrf.mxu1  ;;  %v10139_v55 = vadd.f32 %v3170_v50, %v9943_v29 }
 0x32e   :  { %v10142_v25 = vadd.f32 %v3283_v62, %v10931_v60  ;;  %v3172_v40 = vpop.f32.mrf.mxu0 }
 0x32f   :  { %v3285_v35 = vpop.f32.mrf.mxu1  ;;  %v10149_v57 = vadd.f32 %v3172_v40, %v9949_v46 }
 0x330   :  { %v10152_v39 = vadd.f32 %v3285_v35, %v9952_v53  ;;  %v3174_v29 = vpop.f32.mrf.mxu0  ;;  %v10939_v53 = vld [vmem:[#allocation65_spill] sm:$0xff] }
 0x331   :  { %v3287_v50 = vpop.f32.mrf.mxu1  ;;  %v10154_v62 = vadd.f32 %v3174_v29, %v2585_v11 }
 0x332   :  { %v10156_v60 = vadd.f32 %v3287_v50, %v2698_v24  ;;  %v3178_v34 = vpop.f32.mrf.mxu0  ;;  %v10941_v24 = vld [vmem:[#allocation44_spill] sm:$0xff] }
 0x333   :  { %v3291_v32 = vpop.f32.mrf.mxu1  ;;  %v10159_v45 = vadd.f32 %v3178_v34, %v10934_v20  ;;  %v2595_v29 = vadd.f32 %v9980_v43, %v10941_v24  ;;  %v10942_v50 = vld [vmem:[#allocation48_spill] sm:$0xff]  ;;  %v10943_v34 = vld [vmem:[#allocation66_spill] sm:$0xff] }
 0x334   :  { %v10162_v4 = vadd.f32 %v3291_v32, %v10936_v41  ;;  %v3180_v21 = vpop.f32.mrf.mxu0  ;;  %v2708_v20 = vadd.f32 %v9982_v18, %v10942_v50  ;;  %v10944_v32 = vld [vmem:[#allocation67_spill] sm:$0xff] }
 0x335   :  { %10935 = vst [vmem:[#allocation28_spill] sm:$0xff] %v10159_v45  ;;  %v3293_v46 = vpop.f32.mrf.mxu1  ;;  %v10165_v40 = vadd.f32 %v3180_v21, %v9969_v61 }
 0x336   :  { %10937 = vst [vmem:[#allocation27_spill] sm:$0xff] %v10162_v4  ;;  %v10168_v35 = vadd.f32 %v3293_v46, %v10939_v53  ;;  %v3182_v11 = vpop.f32.mrf.mxu0 }
 0x337   :  { %10938 = vst [vmem:[#allocation32_spill] sm:$0xff] %v10165_v40  ;;  %v3295_v1 = vpop.f32.mrf.mxu1  ;;  %v10175_v45 = vadd.f32 %v3182_v11, %v10943_v34 }
 0x338   :  { %10940 = vst [vmem:[#allocation31_spill] sm:$0xff] %v10168_v35  ;;  %v10178_v41 = vadd.f32 %v3295_v1, %v10944_v32  ;;  %v3184_v4 = vpop.f32.mrf.mxu0  ;;  %v10948_v1 = vld [vmem:[#allocation68_spill] sm:$0xff]  ;;  %v10951_v32 = vld [vmem:[#allocation46_spill] sm:$0xff] }
 0x339   :  { %v3297_v61 = vpop.f32.mrf.mxu1  ;;  %v10180_v21 = vadd.f32 %v3184_v4, %v2595_v29 }
 0x33a   :  { %v10182_v46 = vadd.f32 %v3297_v61, %v2708_v20  ;;  %v3188_v53 = vpop.f32.mrf.mxu0  ;;  %v10950_v20 = vld [vmem:[#allocation45_spill] sm:$0xff]  ;;  %v10952_v61 = vld [vmem:[#allocation56_spill] sm:$0xff] }
 0x33b   :  { %v3301_v35 = vpop.f32.mrf.mxu1  ;;  %v10185_v40 = vadd.f32 %v3188_v53, %v9987_v23  ;;  %v2605_v34 = vadd.f32 %v10004_v16, %v10950_v20  ;;  %v2718_v23 = vadd.f32 %v10952_v61, %v10951_v32  ;;  %v10953_v53 = vld [vmem:[#allocation70_spill] sm:$0xff] }
 0x33c   :  { %v10188_v43 = vadd.f32 %v3301_v35, %v9990_v56  ;;  %v3190_v18 = vpop.f32.mrf.mxu0  ;;  %v10954_v56 = vld [vmem:[#allocation71_spill] sm:$0xff]  ;;  %v10957_v61 = vld [vmem:[#allocation50_spill] sm:$0xff] }
 0x33d   :  { %10945 = vst [vmem:[#allocation73_spill] sm:$0xff] %v10185_v40  ;;  %v3303_v11 = vpop.f32.mrf.mxu1  ;;  %v10191_v24 = vadd.f32 %v3190_v18, %v9993_v38 }
 0x33e   :  { %10946 = vst [vmem:[#allocation72_spill] sm:$0xff] %v10188_v43  ;;  %v10194_v50 = vadd.f32 %v3303_v11, %v10948_v1  ;;  %v3192_v4 = vpop.f32.mrf.mxu0 }
 0x33f   :  { %10947 = vst [vmem:[#allocation29_spill] sm:$0xff] %v10191_v24  ;;  %v3305_v29 = vpop.f32.mrf.mxu1  ;;  %v10201_v40 = vadd.f32 %v3192_v4, %v10953_v53  ;;  %v10958_v53 = vld [vmem:[#allocation53_spill] sm:$0xff] }
 0x340   :  { %10949 = vst [vmem:[#allocation30_spill] sm:$0xff] %v10194_v50  ;;  %v10204_v35 = vadd.f32 %v3305_v29, %v10954_v56  ;;  %v3194_v43 = vpop.f32.mrf.mxu0  ;;  %v10959_v56 = vld [vmem:[#allocation55_spill] sm:$0xff] }
 0x341   :  { %v3307_v38 = vpop.f32.mrf.mxu1  ;;  %v10206_v18 = vadd.f32 %v3194_v43, %v2605_v34 }
 0x342   :  { %v10208_v11 = vadd.f32 %v3307_v38, %v2718_v23  ;;  %v3772_v1 = vpop.f32.mrf.mxu0  ;;  %v3315_v23 = vadd.f32 %v10026_v5, %v10957_v61 }
 0x343   :  { %v3885_v50 = vpop.f32.mrf.mxu1  ;;  %v10211_v24 = vadd.f32 %v3772_v1, %v10009_v8  ;;  %v3317_v8 = vadd.f32 %v10028_v19, %v10958_v53 }
 0x344   :  { %v10214_v16 = vadd.f32 %v3885_v50, %v10012_v12  ;;  %v3774_v20 = vpop.f32.mrf.mxu0  ;;  %v10960_v12 = vld [vmem:[#allocation51_spill] sm:$0xff] }
 0x345   :  { %v3887_v4 = vpop.f32.mrf.mxu1  ;;  %v10217_v32 = vadd.f32 %v3774_v20, %v10015_v17 }
 0x346   :  { %v10220_v29 = vadd.f32 %v3887_v4, %v10018_v58  ;;  %v3776_v43 = vpop.f32.mrf.mxu0 }
 0x347   :  { %10955 = vst [vmem:[#allocation33_spill] sm:$0xff] %v10217_v32  ;;  %v3889_v34 = vpop.f32.mrf.mxu1  ;;  %v10227_v38 = vadd.f32 %v3776_v43, %v10959_v56 }
 0x348   :  { %10956 = vst [vmem:[#allocation34_spill] sm:$0xff] %v10220_v29  ;;  %v10230_v50 = vadd.f32 %v3889_v34, %v10960_v12  ;;  %v3778_v1 = vpop.f32.mrf.mxu0 }
 0x349   :  { %v3891_v17 = vpop.f32.mrf.mxu1  ;;  %v10232_v20 = vadd.f32 %v3778_v1, %v3315_v23 }
 0x34a   :  { %v10234_v58 = vadd.f32 %v3891_v17, %v3317_v8  ;;  %v3782_v4 = vpop.f32.mrf.mxu0 }
 0x34b   :  { %v3895_v29 = vpop.f32.mrf.mxu1  ;;  %v10237_v32 = vadd.f32 %v3782_v4, %v10031_v37 }
 0x34c   :  { %v10240_v5 = vadd.f32 %v3895_v29, %v10034_v44  ;;  %v3784_v19 = vpop.f32.mrf.mxu0  ;;  %v10961_v29 = vld [vmem:[#allocation52_spill] sm:$0xff] }
 0x34d   :  { %v3897_v43 = vpop.f32.mrf.mxu1  ;;  %v10243_v61 = vadd.f32 %v3784_v19, %v10037_v15 }
 0x34e   :  { %v10246_v34 = vadd.f32 %v3897_v43, %v10040_v26  ;;  %v3786_v23 = vpop.f32.mrf.mxu0 }
 0x34f   :  { %v3899_v53 = vpop.f32.mrf.mxu1  ;;  %v10249_v8 = vadd.f32 %v3786_v23, %v10043_v3  ;;  %v10963_v23 = vld [vmem:[#allocation63_spill] sm:$0xff] }
 0x350   :  { %v10252_v56 = vadd.f32 %v3899_v53, %v10046_v27  ;;  %v3788_v37 = vpop.f32.mrf.mxu0  ;;  %v10962_v27 = vld [vmem:[#allocation64_spill] sm:$0xff] }
 0x351   :  { %v3901_v12 = vpop.f32.mrf.mxu1  ;;  %v10255_v44 = vadd.f32 %v3788_v37, %v10049_v47 }
 0x352   :  { %v10258_v1 = vadd.f32 %v3901_v12, %v10961_v29  ;;  %v3792_v15 = vpop.f32.mrf.mxu0 }
 0x353   :  { %v3905_v17 = vpop.f32.mrf.mxu1  ;;  %v10261_v26 = vadd.f32 %v3792_v15, %v10055_v6 }
 0x354   :  { %v10264_v4 = vadd.f32 %v3905_v17, %v10058_v9  ;;  %v3794_v3 = vpop.f32.mrf.mxu0 }
 0x355   :  { %v3907_v19 = vpop.f32.mrf.mxu1  ;;  %v10267_v43 = vadd.f32 %v3794_v3, %v10962_v27 }
 0x356   :  { %v10270_v53 = vadd.f32 %v3907_v19, %v10963_v23  ;;  %v3796_v47 = vpop.f32.mrf.mxu0 }
 0x357   :  { %v3909_v37 = vpop.f32.mrf.mxu1  ;;  %v10273_v12 = vadd.f32 %v3796_v47, %v10067_v48 }
 0x358   :  { %v10276_v29 = vadd.f32 %v3909_v37, %v10070_v49  ;;  %v3798_v6 = vpop.f32.mrf.mxu0 }
 0x359   :  { %v3911_v15 = vpop.f32.mrf.mxu1  ;;  %v10279_v9 = vadd.f32 %v3798_v6, %v10073_v30 }
 0x35a   :  { %v10282_v17 = vadd.f32 %v3911_v15, %v10076_v42  ;;  %v3802_v3 = vpop.f32.mrf.mxu0 }
 0x35b   :  { %v3915_v27 = vpop.f32.mrf.mxu1  ;;  %v10285_v19 = vadd.f32 %v3802_v3, %v10083_v22 }
 0x35c   :  { %v10288_v23 = vadd.f32 %v3915_v27, %v10086_v14  ;;  %v3804_v48 = vpop.f32.mrf.mxu0 }
 0x35d   :  { %v3917_v47 = vpop.f32.mrf.mxu1  ;;  %v10291_v49 = vadd.f32 %v3804_v48, %v10089_v13 }
 0x35e   :  { %v10294_v37 = vadd.f32 %v3917_v47, %v10092_v28  ;;  %v3806_v30 = vpop.f32.mrf.mxu0 }
 0x35f   :  { %v3919_v6 = vpop.f32.mrf.mxu1  ;;  %v10297_v42 = vadd.f32 %v3806_v30, %v10095_v54 }
 0x360   :  { %v10300_v15 = vadd.f32 %v3919_v6, %v10098_v33  ;;  %v10302_v22 = vpop.f32.mrf.mxu0 }
 0x361   :  { %v10304_v14 = vpop.f32.mrf.mxu1 }
 0x362   :  { %10964 = vst [vmem:[#allocation35_spill] sm:$0xff] %v10300_v15  ;;  %10965 = vst [vmem:[#allocation25_spill] sm:$0xff] %v10304_v14  ;;  %v3812_v3 = vpop.f32.mrf.mxu0 }
 0x363   :  { %v3925_v27 = vpop.f32.mrf.mxu1  ;;  %v10307_v13 = vadd.f32 %v3812_v3, %v10107_v59 }
 0x364   :  { %v10310_v28 = vadd.f32 %v3925_v27, %v10110_v52  ;;  %v3814_v48 = vpop.f32.mrf.mxu0 }
 0x365   :  { %v3927_v47 = vpop.f32.mrf.mxu1  ;;  %v10313_v54 = vadd.f32 %v3814_v48, %v10113_v51 }
 0x366   :  { %v10316_v33 = vadd.f32 %v3927_v47, %v10116_v31  ;;  %v3816_v30 = vpop.f32.mrf.mxu0 }
 0x367   :  { %v3929_v6 = vpop.f32.mrf.mxu1  ;;  %v10319_v14 = vadd.f32 %v3816_v30, %v10123_v7 }
 0x368   :  { %v10322_v15 = vadd.f32 %v3929_v6, %v10126_v63  ;;  %v3818_v59 = vpop.f32.mrf.mxu0 }
 0x369   :  { %v3931_v3 = vpop.f32.mrf.mxu1  ;;  %v10325_v52 = vadd.f32 %v3818_v59, %v10128_v10 }
 0x36a   :  { %v10328_v27 = vadd.f32 %v3931_v3, %v10130_v2  ;;  %v3822_v51 = vpop.f32.mrf.mxu0 }
 0x36b   :  { %v3935_v48 = vpop.f32.mrf.mxu1  ;;  %v10331_v31 = vadd.f32 %v3822_v51, %v10133_v0 }
 0x36c   :  { %v10334_v47 = vadd.f32 %v3935_v48, %v10136_v36  ;;  %v3824_v7 = vpop.f32.mrf.mxu0 }
 0x36d   :  { %v3937_v30 = vpop.f32.mrf.mxu1  ;;  %v10337_v63 = vadd.f32 %v3824_v7, %v10139_v55 }
 0x36e   :  { %v10340_v6 = vadd.f32 %v3937_v30, %v10142_v25  ;;  %v3826_v10 = vpop.f32.mrf.mxu0  ;;  %v10970_v25 = vld [vmem:[#allocation28_spill] sm:$0xff] }
 0x36f   :  { %10966 = vst [vmem:[#allocation38_spill] sm:$0xff] %v10337_v63  ;;  %v3939_v59 = vpop.f32.mrf.mxu1  ;;  %v10343_v2 = vadd.f32 %v3826_v10, %v10149_v57 }
 0x370   :  { %10967 = vst [vmem:[#allocation40_spill] sm:$0xff] %v10340_v6  ;;  %v10346_v3 = vadd.f32 %v3939_v59, %v10152_v39  ;;  %v3828_v0 = vpop.f32.mrf.mxu0  ;;  %v10971_v6 = vld [vmem:[#allocation27_spill] sm:$0xff]  ;;  %v10972_v39 = vld [vmem:[#allocation32_spill] sm:$0xff] }
 0x371   :  { %10968 = vst [vmem:[#allocation39_spill] sm:$0xff] %v10343_v2  ;;  %v3941_v51 = vpop.f32.mrf.mxu1  ;;  %v10349_v36 = vadd.f32 %v3828_v0, %v10154_v62 }
 0x372   :  { %10969 = vst [vmem:[#allocation24_spill] sm:$0xff] %v10346_v3  ;;  %v10352_v48 = vadd.f32 %v3941_v51, %v10156_v60  ;;  %v3832_v55 = vpop.f32.mrf.mxu0  ;;  %v10974_v3 = vld [vmem:[#allocation31_spill] sm:$0xff] }
 0x373   :  { %v3945_v7 = vpop.f32.mrf.mxu1  ;;  %v10355_v30 = vadd.f32 %v3832_v55, %v10970_v25 }
 0x374   :  { %v10358_v63 = vadd.f32 %v3945_v7, %v10971_v6  ;;  %v3834_v57 = vpop.f32.mrf.mxu0 }
 0x375   :  { %v3947_v10 = vpop.f32.mrf.mxu1  ;;  %v10361_v59 = vadd.f32 %v3834_v57, %v10972_v39 }
 0x376   :  { %v10364_v2 = vadd.f32 %v3947_v10, %v10974_v3  ;;  %v3836_v62 = vpop.f32.mrf.mxu0  ;;  %v10978_v3 = vld [vmem:[#allocation73_spill] sm:$0xff] }
 0x377   :  { %10973 = vst [vmem:[#allocation23_spill] sm:$0xff] %v10361_v59  ;;  %v3949_v0 = vpop.f32.mrf.mxu1  ;;  %v10367_v60 = vadd.f32 %v3836_v62, %v10175_v45 }
 0x378   :  { %10975 = vst [vmem:[#allocation43_spill] sm:$0xff] %v10364_v2  ;;  %v10370_v51 = vadd.f32 %v3949_v0, %v10178_v41  ;;  %v3838_v55 = vpop.f32.mrf.mxu0  ;;  %v10979_v2 = vld [vmem:[#allocation72_spill] sm:$0xff]  ;;  %v10981_v41 = vld [vmem:[#allocation29_spill] sm:$0xff] }
 0x379   :  { %10976 = vst [vmem:[#allocation26_spill] sm:$0xff] %v10367_v60  ;;  %v3951_v25 = vpop.f32.mrf.mxu1  ;;  %v10373_v6 = vadd.f32 %v3838_v55, %v10180_v21 }
 0x37a   :  { %10977 = vst [vmem:[#allocation47_spill] sm:$0xff] %v10370_v51  ;;  %v10376_v7 = vadd.f32 %v3951_v25, %v10182_v46  ;;  %v3842_v57 = vpop.f32.mrf.mxu0  ;;  %v10983_v51 = vld [vmem:[#allocation30_spill] sm:$0xff] }
 0x37b   :  { %v3955_v39 = vpop.f32.mrf.mxu1  ;;  %v10379_v10 = vadd.f32 %v3842_v57, %v10978_v3 }
 0x37c   :  { %v10382_v59 = vadd.f32 %v3955_v39, %v10979_v2  ;;  %v3844_v45 = vpop.f32.mrf.mxu0 }
 0x37d   :  { %v3957_v62 = vpop.f32.mrf.mxu1  ;;  %v10385_v0 = vadd.f32 %v3844_v45, %v10981_v41 }
 0x37e   :  { %10980 = vst [vmem:[#allocation75_spill] sm:$0xff] %v10382_v59  ;;  %v10388_v60 = vadd.f32 %v3957_v62, %v10983_v51  ;;  %v3846_v21 = vpop.f32.mrf.mxu0 }
 0x37f   :  { %10982 = vst [vmem:[#allocation49_spill] sm:$0xff] %v10385_v0  ;;  %v3959_v55 = vpop.f32.mrf.mxu1  ;;  %v10391_v46 = vadd.f32 %v3846_v21, %v10201_v40 }
 0x380   :  { %10984 = vst [vmem:[#allocation36_spill] sm:$0xff] %v10388_v60  ;;  %v10394_v25 = vadd.f32 %v3959_v55, %v10204_v35  ;;  %v3848_v57 = vpop.f32.mrf.mxu0  ;;  %v10990_v55 = vld [vmem:[#allocation34_spill] sm:$0xff] }
 0x381   :  { %10985 = vst [vmem:[#allocation37_spill] sm:$0xff] %v10391_v46  ;;  %v3961_v3 = vpop.f32.mrf.mxu1  ;;  %v10397_v2 = vadd.f32 %v3848_v57, %v10206_v18  ;;  %v10989_v46 = vld [vmem:[#allocation33_spill] sm:$0xff] }
 0x382   :  { %10986 = vst [vmem:[#allocation54_spill] sm:$0xff] %v10394_v25  ;;  %v10400_v39 = vadd.f32 %v3961_v3, %v10208_v11  ;;  %v4426_v45 = vpop.f32.mrf.mxu0 }
 0x383   :  { %10987 = vst [vmem:[#allocation57_spill] sm:$0xff] %v10397_v2  ;;  %v4539_v41 = vpop.f32.mrf.mxu1  ;;  %v4618_v51 = vadd.f32 %v4426_v45, %v10211_v24 }
 0x384   :  { %10988 = vst [vmem:[#allocation58_spill] sm:$0xff] %v10400_v39  ;;  %v4620_v62 = vadd.f32 %v4539_v41, %v10214_v16  ;;  %v4428_v60 = vpop.f32.mrf.mxu0 }
 0x385   :  { %v4541_v40 = vpop.f32.mrf.mxu1  ;;  %v4619_v35 = vadd.f32 %v4428_v60, %v10989_v46 }
 0x386   :  { %v4682_v21 = vmax.f32 %v4618_v51, %v4620_v62  ;;  %v4621_v25 = vadd.f32 %v4541_v40, %v10990_v55  ;;  %v4430_v0 = vpop.f32.mrf.mxu0  ;;  %v4730_v62 = vld [vmem:[#allocation10] sm:$0x3] }
 0x387   :  { %v4543_v59 = vpop.f32.mrf.mxu1  ;;  %v4622_v57 = vadd.f32 %v4430_v0, %v10227_v38  ;;  %v10991_v0 = vld [vmem:[#allocation74_spill] sm:$0xff] }
 0x388   :  { %v4683_v18 = vmax.f32 %v4619_v35, %v4621_v25  ;;  %v4624_v11 = vadd.f32 %v4543_v59, %v10230_v50  ;;  %v4432_v3 = vpop.f32.mrf.mxu0  ;;  %v10415_v35 = vrot.slane %v4730_v62, %v10991_v0 }
 0x389   :  { %v4545_v39 = vpop.f32.mrf.mxu1  ;;  %v4623_v24 = vadd.f32 %v4432_v3, %v10232_v20 }
 0x38a   :  { %v4684_v2 = vmax.f32 %v4622_v57, %v4624_v11  ;;  %v4625_v16 = vadd.f32 %v4545_v39, %v10234_v58  ;;  %v4436_v45 = vpop.f32.mrf.mxu0 }
 0x38b   :  { %v4549_v41 = vpop.f32.mrf.mxu1  ;;  %v4626_v60 = vadd.f32 %v4436_v45, %v10237_v32 }
 0x38c   :  { %v4685_v51 = vmax.f32 %v4623_v24, %v4625_v16  ;;  %v4628_v46 = vadd.f32 %v4549_v41, %v10240_v5  ;;  %v4438_v25 = vpop.f32.mrf.mxu0 }
 0x38d   :  { %v4551_v40 = vpop.f32.mrf.mxu1  ;;  %v4627_v50 = vadd.f32 %v4438_v25, %v10243_v61 }
 0x38e   :  { %v4686_v38 = vmax.f32 %v4626_v60, %v4628_v46  ;;  %v4629_v59 = vadd.f32 %v4551_v40, %v10246_v34  ;;  %v4440_v20 = vpop.f32.mrf.mxu0  ;;  %v10992_v34 = vld [vmem:[#allocation76_spill] sm:$0xff] }
 0x38f   :  { %v4553_v58 = vpop.f32.mrf.mxu1  ;;  %v4630_v57 = vadd.f32 %v4440_v20, %v10249_v8  ;;  %v10422_v45 = vrot.slane %v4730_v62, %v10992_v34 }
 0x390   :  { %v4714_v39 = vmax.f32 %v4682_v21, %v4686_v38  ;;  %v4687_v55 = vmax.f32 %v4627_v50, %v4629_v59  ;;  %v4632_v32 = vadd.f32 %v4553_v58, %v10252_v56  ;;  %v4442_v5 = vpop.f32.mrf.mxu0 }
 0x391   :  { %v4555_v11 = vpop.f32.mrf.mxu1  ;;  %v4631_v16 = vadd.f32 %v4442_v5, %v10255_v44 }
 0x392   :  { %v4715_v3 = vmax.f32 %v4683_v18, %v4687_v55  ;;  %v4688_v24 = vmax.f32 %v4630_v57, %v4632_v32  ;;  %v4742_v61 = vadd.f32 %v10415_v35, %v4714_v39  ;;  %v4633_v41 = vadd.f32 %v4555_v11, %v10258_v1  ;;  %v4446_v60 = vpop.f32.mrf.mxu0 }
 0x393   :  { %v4559_v21 = vpop.f32.mrf.mxu1  ;;  %v4634_v8 = vadd.f32 %v4446_v60, %v10261_v26 }
 0x394   :  { %v4716_v46 = vmax.f32 %v4684_v2, %v4688_v24  ;;  %v4689_v25 = vmax.f32 %v4631_v16, %v4633_v41  ;;  %v4636_v56 = vadd.f32 %v4559_v21, %v10264_v4  ;;  %v4448_v40 = vpop.f32.mrf.mxu0  ;;  %v4758_v62 = vmax.f32 %v4742_v61, 0.0 }
 0x395   :  { %v4561_v18 = vpop.f32.mrf.mxu1  ;;  %v4635_v44 = vadd.f32 %v4448_v40, %v10267_v43  ;;  %v4743_v59 = vadd.f32 %v10422_v45, %v4715_v3 }
 0x396   :  { %v4744_v38 = vadd.f32 %v10415_v35, %v4716_v46  ;;  %v4637_v50 = vadd.f32 %v4561_v18, %v10270_v53  ;;  %v4717_v1 = vmax.f32 %v4685_v51, %v4689_v25  ;;  %v4690_v20 = vmax.f32 %v4634_v8, %v4636_v56  ;;  %v4450_v58 = vpop.f32.mrf.mxu0  ;;  %v10993_v56 = vld [vmem:[#allocation59_spill] sm:$0xff] }
 0x397   :  { %v4563_v2 = vpop.f32.mrf.mxu1  ;;  %v4638_v55 = vadd.f32 %v4450_v58, %v10273_v12  ;;  %v4759_v3 = vmax.f32 %v4743_v59, 0.0  ;;  %v10996_v59 = vld [vmem:[#allocation25_spill] sm:$0xff] }
 0x398   :  { %v4760_v39 = vmax.f32 %v4744_v38, 0.0  ;;  %v4691_v26 = vmax.f32 %v4635_v44, %v4637_v50  ;;  %v4640_v4 = vadd.f32 %v4563_v2, %v10276_v29  ;;  %v4745_v57 = vadd.f32 %v10422_v45, %v4717_v1  ;;  %v4452_v32 = vpop.f32.mrf.mxu0  ;;  %v10994_v50 = vld [vmem:[#allocation35_spill] sm:$0xff] }
 0x399   :  { %v4565_v5 = vpop.f32.mrf.mxu1  ;;  %v4639_v11 = vadd.f32 %v4452_v32, %v10279_v9 }
 0x39a   :  { %v10434_v43 = vpack.c.bf16 %v4760_v39, %v4758_v62  ;;  %v4692_v53 = vmax.f32 %v4638_v55, %v4640_v4  ;;  %v4641_v51 = vadd.f32 %v4565_v5, %v10282_v17  ;;  %v4761_v24 = vmax.f32 %v4745_v57, 0.0  ;;  %v4456_v16 = vpop.f32.mrf.mxu0  ;;  %v10995_v62 = vld [vmem:[#allocation60_spill] sm:$0xff] }
 0x39b   :  { %v4569_v61 = vpop.f32.mrf.mxu1  ;;  %v4642_v12 = vadd.f32 %v4456_v16, %v10285_v19  ;;  %v3993_v17 = vadd.f32 %v10302_v22, %v10993_v56  ;;  %v3995_v1 = vadd.f32 %v10996_v59, %v10995_v62 }
 0x39c   :  { %v4693_v41 = vmax.f32 %v4639_v11, %v4641_v51  ;;  %v4644_v29 = vadd.f32 %v4569_v61, %v10288_v23  ;;  %v4458_v60 = vpop.f32.mrf.mxu0  ;;  %v10440_v46 = vpack.c.bf16 %v4761_v24, %v4759_v3 }
 0x39d   :  { %v4571_v21 = vpop.f32.mrf.mxu1  ;;  %v4643_v25 = vadd.f32 %v4458_v60, %v10291_v49 }
 0x39e   :  { %v4694_v8 = vmax.f32 %v4642_v12, %v4644_v29  ;;  %v4645_v9 = vadd.f32 %v4571_v21, %v10294_v37  ;;  %v4460_v40 = vpop.f32.mrf.mxu0 }
 0x39f   :  { %v4573_v18 = vpop.f32.mrf.mxu1  ;;  %v4646_v19 = vadd.f32 %v4460_v40, %v10297_v42 }
 0x3a0   :  { %v4718_v38 = vmax.f32 %v4690_v20, %v4694_v8  ;;  %v4695_v44 = vmax.f32 %v4643_v25, %v4645_v9  ;;  %v4648_v23 = vadd.f32 %v4573_v18, %v10994_v50  ;;  %v4462_v58 = vpop.f32.mrf.mxu0 }
 0x3a1   :  { %v4575_v2 = vpop.f32.mrf.mxu1  ;;  %v4647_v55 = vadd.f32 %v4462_v58, %v3993_v17  ;;  %v10998_v58 = vld [vmem:[#allocation40_spill] sm:$0xff] }
 0x3a2   :  { %v4719_v39 = vmax.f32 %v4691_v26, %v4695_v44  ;;  %v4696_v49 = vmax.f32 %v4646_v19, %v4648_v23  ;;  %v4746_v37 = vadd.f32 %v10415_v35, %v4718_v38  ;;  %v4649_v4 = vadd.f32 %v4575_v2, %v3995_v1  ;;  %v4466_v22 = vpop.f32.mrf.mxu0  ;;  %v10997_v1 = vld [vmem:[#allocation38_spill] sm:$0xff] }
 0x3a3   :  { %v4579_v57 = vpop.f32.mrf.mxu1  ;;  %v4650_v20 = vadd.f32 %v4466_v22, %v10307_v13 }
 0x3a4   :  { %v4720_v32 = vmax.f32 %v4692_v53, %v4696_v49  ;;  %v4697_v5 = vmax.f32 %v4647_v55, %v4649_v4  ;;  %v4652_v42 = vadd.f32 %v4579_v57, %v10310_v28  ;;  %v4468_v11 = vpop.f32.mrf.mxu0  ;;  %v4762_v16 = vmax.f32 %v4746_v37, 0.0  ;;  %v10999_v4 = vld [vmem:[#allocation39_spill] sm:$0xff]  ;;  %v11000_v57 = vld [vmem:[#allocation24_spill] sm:$0xff] }
 0x3a5   :  { %v4581_v51 = vpop.f32.mrf.mxu1  ;;  %v4651_v24 = vadd.f32 %v4468_v11, %v10313_v54  ;;  %v4747_v61 = vadd.f32 %v10422_v45, %v4719_v39  ;;  %v8321_v39 = vld [vmem:[#allocation11 + $0xe8] ss:$16 sps:$4 sm:$0xff]   ;;  %v8324_v11 = vld [vmem:[#allocation11 + $0xc0] ss:$16 sps:$4 sm:$0xff]  }
 0x3a6   :  { %v4748_v3 = vadd.f32 %v10415_v35, %v4720_v32  ;;  %v4653_v26 = vadd.f32 %v4581_v51, %v10316_v33  ;;  %v4721_v12 = vmax.f32 %v4693_v41, %v4697_v5  ;;  %v4698_v29 = vmax.f32 %v4650_v20, %v4652_v42  ;;  %v4470_v60 = vpop.f32.mrf.mxu0  ;;  %v8329_v20 = vld [vmem:[#allocation11 + $0xcc] ss:$16 sps:$4 sm:$0xff]  }
 0x3a7   :  { %v4583_v53 = vpop.f32.mrf.mxu1  ;;  %v4654_v8 = vadd.f32 %v4470_v60, %v10319_v14  ;;  %v4763_v40 = vmax.f32 %v4747_v61, 0.0 }
 0x3a8   :  { %v4764_v21 = vmax.f32 %v4748_v3, 0.0  ;;  %v4699_v13 = vmax.f32 %v4651_v24, %v4653_v26  ;;  %v4656_v28 = vadd.f32 %v4583_v53, %v10322_v15  ;;  %v4749_v25 = vadd.f32 %v10422_v45, %v4721_v12  ;;  %v4472_v9 = vpop.f32.mrf.mxu0  ;;  %v8327_v26 = vld [vmem:[#allocation11 + $0xc8] ss:$16 sps:$4 sm:$0xff]   ;;  %v8335_v53 = vld [vmem:[#allocation11 + $0xac] ss:$16 sps:$4 sm:$0xff]  }
 0x3a9   :  { %v4585_v56 = vpop.f32.mrf.mxu1  ;;  %v10461_v33 = vadd.f32 %v4472_v9, %v10325_v52  ;;  %v8318_v52 = vld [vmem:[#allocation11 + $0xe0] ss:$16 sps:$4 sm:$0xff]  }
 0x3aa   :  { %v4776_v54 = vpack.c.bf16 %v4764_v21, %v4762_v16  ;;  %v4700_v17 = vmax.f32 %v4654_v8, %v4656_v28  ;;  %v10464_v41 = vadd.f32 %v4585_v56, %v10328_v27  ;;  %v4765_v18 = vmax.f32 %v4749_v25, 0.0  ;;  %v4476_v38 = vpop.f32.mrf.mxu0  ;;  %v8332_v16 = vld [vmem:[#allocation11 + $0xa4] ss:$16 sps:$4 sm:$0xff]   ;;  %v8330_v9 = vld [vmem:[#allocation11 + $0xa0] ss:$16 sps:$4 sm:$0xff]  }
 0x3ab   :  { %v4589_v44 = vpop.f32.mrf.mxu1  ;;  %v4658_v15 = vadd.f32 %v4476_v38, %v10331_v31  ;;  %v8326_v31 = vld [vmem:[#allocation11 + $0xc4] ss:$16 sps:$4 sm:$0xff]  }
 0x3ac   :  { %v4701_v14 = vmax.f32 %v10461_v33, %v10464_v41  ;;  %v4660_v19 = vadd.f32 %v4589_v44, %v10334_v47  ;;  %v4478_v50 = vpop.f32.mrf.mxu0  ;;  %v4777_v62 = vpack.c.bf16 %v4765_v18, %v4763_v40  ;;  %v8338_v44 = vld [vmem:[#allocation11 + $0x84] ss:$16 sps:$4 sm:$0xff]  }
 0x3ad   :  { %v4591_v23 = vpop.f32.mrf.mxu1  ;;  %v4659_v27 = vadd.f32 %v4478_v50, %v10997_v1 }
 0x3ae   :  { %v4702_v59 = vmax.f32 %v4658_v15, %v4660_v19  ;;  %v4661_v2 = vadd.f32 %v4591_v23, %v10998_v58  ;;  %7403 = vmatprep.mubr.msk.bf16.mxu0 %vm5133_vm4, %v4777_v62  ;;  %7405 = vmatprep.mubr.msk.bf16.mxu1 %vm5133_vm4, %v4777_v62  ;;  %v4480_v49 = vpop.f32.mrf.mxu0  ;;  %v8341_v15 = vld [vmem:[#allocation11 + $0x8c] ss:$16 sps:$4 sm:$0xff]   ;;  %v8336_v58 = vld [vmem:[#allocation11 + $0x80] ss:$16 sps:$4 sm:$0xff]  }
 0x3af   :  { %v4593_v55 = vpop.f32.mrf.mxu1  ;;  %v4662_v22 = vadd.f32 %v4480_v49, %v10999_v4  ;;  %5183 = vmatmul.mubr.bf16.vlgmr.msra.gmra.mxu0 %v4776_v54  ;;  %5226 = vmatmul.mubr.bf16.vlgmr.msra.gmra.mxu1 %v4776_v54  ;;  %v11002_v54 = vld [vmem:[#allocation43_spill] sm:$0xff]  ;;  %v11003_v23 = vld [vmem:[#allocation26_spill] sm:$0xff] }
 0x3b0   :  { %v4722_v37 = vmax.f32 %v4698_v29, %v4702_v59  ;;  %v4703_v47 = vmax.f32 %v4659_v27, %v4661_v2  ;;  %v4664_v32 = vadd.f32 %v4593_v55, %v11000_v57  ;;  %5502 = vmatpush1.bf16.msra.mxu0 %v8318_v52  ;;  %v4482_v5 = vpop.f32.mrf.mxu0  ;;  %5545 = vmatpush1.bf16.msra.mxu1 %v8321_v39  ;;  %v11004_v52 = vld [vmem:[#allocation47_spill] sm:$0xff] }
 0x3b1   :  { %v4595_v42 = vpop.f32.mrf.mxu1  ;;  %7459 = vmatprep.mubr.msk.bf16.mxu0 %vm5133_vm4, %v10440_v46  ;;  %7461 = vmatprep.mubr.msk.bf16.mxu1 %vm5133_vm4, %v10440_v46  ;;  %v4663_v61 = vadd.f32 %v4482_v5, %v10349_v36 }
 0x3b2   :  { %v4750_v51 = vadd.f32 %v10415_v35, %v4722_v37  ;;  %v4723_v3 = vmax.f32 %v4699_v13, %v4703_v47  ;;  %v4704_v24 = vmax.f32 %v4662_v22, %v4664_v32  ;;  %v4665_v12 = vadd.f32 %v4595_v42, %v10352_v48  ;;  %5503 = vmatprep.subr.bf16.mxu0 %v8326_v31  ;;  %v4486_v29 = vpop.f32.mrf.mxu0  ;;  %v11001_v48 = vld [vmem:[#allocation23_spill] sm:$0xff] }
 0x3b3   :  { %v4599_v60 = vpop.f32.mrf.mxu1  ;;  %5546 = vmatprep.subr.bf16.mxu1 %v8329_v20  ;;  %v10484_v13 = vadd.f32 %v4486_v29, %v10355_v30  ;;  %v8333_v30 = vld [vmem:[#allocation11 + $0xa8] ss:$16 sps:$4 sm:$0xff]   ;;  %v8344_v37 = vld [vmem:[#allocation11 + $0x64] ss:$16 sps:$4 sm:$0xff]   ;;  %v8347_v32 = vld [vmem:[#allocation11 + $0x6c] ss:$16 sps:$4 sm:$0xff]  }
 0x3b4   :  { %v4724_v21 = vmax.f32 %v4700_v17, %v4704_v24  ;;  %v4705_v8 = vmax.f32 %v4663_v61, %v4665_v12  ;;  %v10487_v28 = vadd.f32 %v4599_v60, %v10358_v63  ;;  %5504 = vmatpush1.bf16.msra.mxu0 %v8324_v11  ;;  %v4488_v25 = vpop.f32.mrf.mxu0  ;;  %5547 = vmatpush1.bf16.msra.mxu1 %v8327_v26  ;;  %v4766_v33 = vmax.f32 %v4750_v51, 0.0  ;;  %v8339_v31 = vld [vmem:[#allocation11 + $0x88] ss:$16 sps:$4 sm:$0xff]   ;;  %v11007_v61 = vld [vmem:[#allocation36_spill] sm:$0xff] }
 0x3b5   :  { %v4601_v46 = vpop.f32.mrf.mxu1  ;;  %v10491_v56 = vadd.f32 %v4488_v25, %v11001_v48  ;;  %5505 = vmatprep.subr.bf16.mxu0 %v8332_v16  ;;  %v4751_v41 = vadd.f32 %v10422_v45, %v4723_v3  ;;  %5548 = vmatprep.subr.bf16.mxu1 %v8335_v53  ;;  %v11005_v42 = vld [vmem:[#allocation75_spill] sm:$0xff]  ;;  %v11006_v26 = vld [vmem:[#allocation49_spill] sm:$0xff] }
 0x3b6   :  { %v4752_v36 = vadd.f32 %v10415_v35, %v4724_v21  ;;  %v10494_v17 = vadd.f32 %v4601_v46, %v11002_v54  ;;  %v4725_v63 = vmax.f32 %v4701_v14, %v4705_v8  ;;  %v4706_v40 = vmax.f32 %v10484_v13, %v10487_v28  ;;  %v4490_v18 = vpop.f32.mrf.mxu0  ;;  %v8345_v29 = vld [vmem:[#allocation11 + $0x68] ss:$16 sps:$4 sm:$0xff]   ;;  %v8353_v21 = vld [vmem:[#allocation11 + $0x4c] ss:$16 sps:$4 sm:$0xff]  }
 0x3b7   :  { %v4603_v38 = vpop.f32.mrf.mxu1  ;;  %v4670_v62 = vadd.f32 %v4490_v18, %v11003_v23  ;;  %v4767_v47 = vmax.f32 %v4751_v41, 0.0  ;;  %v11008_v28 = vld [vmem:[#allocation37_spill] sm:$0xff]  ;;  %v11009_v46 = vld [vmem:[#allocation54_spill] sm:$0xff] }
 0x3b8   :  { %v4768_v19 = vmax.f32 %v4752_v36, 0.0  ;;  %v4707_v50 = vmax.f32 %v10491_v56, %v10494_v17  ;;  %v4672_v59 = vadd.f32 %v4603_v38, %v11004_v52  ;;  %v4753_v1 = vadd.f32 %v10422_v45, %v4725_v63  ;;  %5506 = vmatpush1.bf16.msra.mxu0 %v8330_v9  ;;  %v4492_v14 = vpop.f32.mrf.mxu0  ;;  %5549 = vmatpush1.bf16.msra.mxu1 %v8333_v30  ;;  %v8348_v56 = vld [vmem:[#allocation11 + $0x40] ss:$16 sps:$4 sm:$0xff]   ;;  %v8351_v63 = vld [vmem:[#allocation11 + $0x48] ss:$16 sps:$4 sm:$0xff]  }
 0x3b9   :  { %v4605_v27 = vpop.f32.mrf.mxu1  ;;  %v4671_v49 = vadd.f32 %v4492_v14, %v10373_v6  ;;  %5507 = vmatprep.subr.bf16.mxu0 %v8338_v44  ;;  %5550 = vmatprep.subr.bf16.mxu1 %v8341_v15  ;;  %v8342_v6 = vld [vmem:[#allocation11 + $0x60] ss:$16 sps:$4 sm:$0xff]   ;;  %v8356_v18 = vld [vmem:[#allocation11 + $0x24] ss:$16 sps:$4 sm:$0xff]   ;;  %v8359_v44 = vld [vmem:[#allocation11 + $0x2c] ss:$16 sps:$4 sm:$0xff]  }
 0x3ba   :  { %v10504_v2 = vpack.c.bf16 %v4768_v19, %v4766_v33  ;;  %v4708_v39 = vmax.f32 %v4670_v62, %v4672_v59  ;;  %v4673_v55 = vadd.f32 %v4605_v27, %v10376_v7  ;;  %v4769_v4 = vmax.f32 %v4753_v1, 0.0  ;;  %v4496_v22 = vpop.f32.mrf.mxu0  ;;  %v11010_v33 = vld [vmem:[#allocation57_spill] sm:$0xff]  ;;  %v11011_v38 = vld [vmem:[#allocation58_spill] sm:$0xff] }
 0x3bb   :  { %v4609_v57 = vpop.f32.mrf.mxu1  ;;  %v4674_v5 = vadd.f32 %v4496_v22, %v10379_v10  ;;  %v8350_v10 = vld [vmem:[#allocation11 + $0x44] ss:$16 sps:$4 sm:$0xff]   ;;  %v8354_v62 = vld [vmem:[#allocation11 + $0x20] ss:$16 sps:$4 sm:$0xff]   ;;  %v8365_v14 = vld [vmem:[#allocation11 + $0xc] ss:$16 sps:$4 sm:$0xff]  }
 0x3bc   :  { %v4709_v20 = vmax.f32 %v4671_v49, %v4673_v55  ;;  %v4676_v11 = vadd.f32 %v4609_v57, %v11005_v42  ;;  %5508 = vmatpush1.bf16.msra.mxu0 %v8336_v58  ;;  %v4498_v51 = vpop.f32.mrf.mxu0  ;;  %v10510_v24 = vpack.c.bf16 %v4769_v4, %v4767_v47  ;;  %5551 = vmatpush1.bf16.msra.mxu1 %v8339_v31  ;;  %v8362_v59 = vld [vmem:[#allocation11 + $0x4] ss:$16 sps:$4 sm:$0xff]   ;;  %v4831_v55 = vld [vmem:[#allocation11 + $0x188] sm:$0xff] }
 0x3bd   :  { %v4611_v3 = vpop.f32.mrf.mxu1  ;;  %v4675_v16 = vadd.f32 %v4498_v51, %v11006_v26  ;;  %5509 = vmatprep.subr.bf16.mxu0 %v8344_v37  ;;  %5552 = vmatprep.subr.bf16.mxu1 %v8347_v32  ;;  %v4830_v27 = vld [vmem:[#allocation11 + $0x180] sm:$0xff]  ;;  %v7457_v32 = vcombine.high %v4831_v55, %v4831_v55  ;;  %v8375_v51 = vld [vmem:[#allocation11 + $0x16c] ss:$16 sps:$4 sm:$0xff]  }
 0x3be   :  { %v4710_v7 = vmax.f32 %v4674_v5, %v4676_v11  ;;  %v4677_v12 = vadd.f32 %v4611_v3, %v11007_v61  ;;  %v4500_v60 = vpop.f32.mrf.mxu0  ;;  %v7455_v47 = vcombine.high %v4830_v27, %v4830_v27  ;;  %v7454_v4 = vcombine.low %v4830_v27, %v4830_v27  ;;  %v8372_v42 = vld [vmem:[#allocation11 + $0x164] ss:$16 sps:$4 sm:$0xff]   ;;  %v8370_v3 = vld [vmem:[#allocation11 + $0x160] ss:$16 sps:$4 sm:$0xff]   ;;  %v8381_v26 = vld [vmem:[#allocation11 + $0x14c] ss:$16 sps:$4 sm:$0xff]  }
 0x3bf   :  { %v4613_v53 = vpop.f32.mrf.mxu1  ;;  %v4678_v25 = vadd.f32 %v4500_v60, %v11008_v28  ;;  %v8379_v61 = vld [vmem:[#allocation11 + $0x148] ss:$16 sps:$4 sm:$0xff]   ;;  %v8382_v60 = vld [vmem:[#allocation11 + $0x120] ss:$16 sps:$4 sm:$0xff]   ;;  %v8396_v28 = vld [vmem:[#allocation11 + $0x404] ss:$16 sps:$4 sm:$0xff]  }
 0x3c0   :  { %v4726_v13 = vmax.f32 %v4706_v40, %v4710_v7  ;;  %v4711_v8 = vmax.f32 %v4675_v16, %v4677_v12  ;;  %v4680_v9 = vadd.f32 %v4613_v53, %v11009_v46  ;;  %5510 = vmatpush1.bf16.msra.mxu0 %v8342_v6  ;;  %v4502_v36 = vpop.f32.mrf.mxu0  ;;  %5553 = vmatpush1.bf16.msra.mxu1 %v8345_v29  ;;  %v8373_v6 = vld [vmem:[#allocation11 + $0x168] ss:$16 sps:$4 sm:$0xff]   ;;  %v8378_v7 = vld [vmem:[#allocation11 + $0x144] ss:$16 sps:$4 sm:$0xff]   ;;  %v8376_v16 = vld [vmem:[#allocation11 + $0x140] ss:$16 sps:$4 sm:$0xff]  }
 0x3c1   :  { %v4615_v48 = vpop.f32.mrf.mxu1  ;;  %v4679_v41 = vadd.f32 %v4502_v36, %v11010_v33  ;;  %5511 = vmatprep.subr.bf16.mxu0 %v8350_v10  ;;  %5554 = vmatprep.subr.bf16.mxu1 %v8353_v21  ;;  %v8384_v12 = vld [vmem:[#allocation11 + $0x124] ss:$16 sps:$4 sm:$0xff]   ;;  %v8387_v29 = vld [vmem:[#allocation11 + $0x12c] ss:$16 sps:$4 sm:$0xff]   ;;  %v8385_v53 = vld [vmem:[#allocation11 + $0x128] ss:$16 sps:$4 sm:$0xff]  }
 0x3c2   :  { %v4754_v54 = vadd.f32 %v10415_v35, %v4726_v13  ;;  %v4727_v17 = vmax.f32 %v4707_v50, %v4711_v8  ;;  %v4712_v30 = vmax.f32 %v4678_v25, %v4680_v9  ;;  %v4681_v40 = vadd.f32 %v4615_v48, %v11011_v38  ;;  %v8357_v50 = vld [vmem:[#allocation11 + $0x28] ss:$16 sps:$4 sm:$0xff]   ;;  %v8390_v10 = vld [vmem:[#allocation11 + $0x104] ss:$16 sps:$4 sm:$0xff]   ;;  %v8393_v21 = vld [vmem:[#allocation11 + $0x10c] ss:$16 sps:$4 sm:$0xff]  }
 0x3c3   :  { %v8388_v13 = vld [vmem:[#allocation11 + $0x100] ss:$16 sps:$4 sm:$0xff]   ;;  %v8391_v8 = vld [vmem:[#allocation11 + $0x108] ss:$16 sps:$4 sm:$0xff]   ;;  %v8399_v25 = vld [vmem:[#allocation11 + $0x40c] ss:$16 sps:$4 sm:$0xff]  }
 0x3c4   :  { %v4755_v15 = vadd.f32 %v10422_v45, %v4727_v17  ;;  %v4728_v19 = vmax.f32 %v4708_v39, %v4712_v30  ;;  %v4713_v23 = vmax.f32 %v4679_v41, %v4681_v40  ;;  %5512 = vmatpush1.bf16.msra.mxu0 %v8348_v56  ;;  %5555 = vmatpush1.bf16.msra.mxu1 %v8351_v63  ;;  %v4770_v58 = vmax.f32 %v4754_v54, 0.0  ;;  %v8360_v39 = vld [vmem:[#allocation11] ss:$16 sps:$4 sm:$0xff]   ;;  %v8397_v9 = vld [vmem:[#allocation11 + $0x408] ss:$16 sps:$4 sm:$0xff]  }
 0x3c5   :  { %5513 = vmatprep.subr.bf16.mxu0 %v8356_v18  ;;  %5556 = vmatprep.subr.bf16.mxu1 %v8359_v44  ;;  %v8394_v46 = vld [vmem:[#allocation11 + $0x400] ss:$16 sps:$4 sm:$0xff]   ;;  %v8402_v36 = vld [vmem:[#allocation11 + $0x3e4] ss:$16 sps:$4 sm:$0xff]   ;;  %v8405_v48 = vld [vmem:[#allocation11 + $0x3ec] ss:$16 sps:$4 sm:$0xff]  }
 0x3c6   :  { %v4756_v52 = vadd.f32 %v10415_v35, %v4728_v19  ;;  %v4729_v1 = vmax.f32 %v4709_v20, %v4713_v23  ;;  %v8363_v35 = vld [vmem:[#allocation11 + $0x8] ss:$16 sps:$4 sm:$0xff]   ;;  %v4771_v22 = vmax.f32 %v4755_v15, 0.0  ;;  %v7456_v20 = vcombine.low %v4831_v55, %v4831_v55  ;;  %v8400_v56 = vld [vmem:[#allocation11 + $0x3e0] ss:$16 sps:$4 sm:$0xff]  }
 0x3c7   :  { %v8403_v54 = vld [vmem:[#allocation11 + $0x3e8] ss:$16 sps:$4 sm:$0xff]   ;;  %v8408_v17 = vld [vmem:[#allocation11 + $0x3c4] ss:$16 sps:$4 sm:$0xff]   ;;  %v8411_v30 = vld [vmem:[#allocation11 + $0x3cc] ss:$16 sps:$4 sm:$0xff]  }
 0x3c8   :  { %v4772_v49 = vmax.f32 %v4756_v52, 0.0  ;;  %v4757_v31 = vadd.f32 %v10422_v45, %v4729_v1  ;;  %5514 = vmatpush1.bf16.msra.mxu0 %v8354_v62  ;;  %5557 = vmatpush1.bf16.msra.mxu1 %v8357_v50  ;;  %v5490_v45 = vsel %vm5137_vm3, %v7454_v4, 0  ;;  %v5496_v11 = vsel %vm5137_vm3, %v7456_v20, 0  ;;  %v8406_v33 = vld [vmem:[#allocation11 + $0x3c0] ss:$16 sps:$4 sm:$0xff]   ;;  %v5637_v55 = vld [vmem:[#allocation11 + $0x4a8] sm:$0xff] }
 0x3c9   :  { %5515 = vmatprep.subr.bf16.mxu0 %v8362_v59  ;;  %5558 = vmatprep.subr.bf16.mxu1 %v8365_v14  ;;  %v8409_v41 = vld [vmem:[#allocation11 + $0x3c8] ss:$16 sps:$4 sm:$0xff]   ;;  %v8417_v63 = vld [vmem:[#allocation11 + $0x3ac] ss:$16 sps:$4 sm:$0xff]   ;;  %v8412_v18 = vld [vmem:[#allocation11 + $0x3a0] ss:$16 sps:$4 sm:$0xff]   ;;  %v7513_v4 = vcombine.high %v5637_v55, %v5637_v55 }
 0x3ca   :  { %v10522_v37 = vpack.c.bf16 %v4772_v49, %v4770_v58  ;;  %v4773_v57 = vmax.f32 %v4757_v31, 0.0  ;;  %v8415_v38 = vld [vmem:[#allocation11 + $0x3a8] ss:$16 sps:$4 sm:$0xff]   ;;  %v8420_v40 = vld [vmem:[#allocation11 + $0x384] ss:$16 sps:$4 sm:$0xff]  }
 0x3cb   :  { %v8423_v44 = vld [vmem:[#allocation11 + $0x38c] ss:$16 sps:$4 sm:$0xff]   ;;  %v8421_v15 = vld [vmem:[#allocation11 + $0x388] ss:$16 sps:$4 sm:$0xff]   ;;  %v8426_v19 = vld [vmem:[#allocation11 + $0x364] ss:$16 sps:$4 sm:$0xff]  }
 0x3cc   :  { %5516 = vmatpush1.bf16.msra.mxu0 %v8360_v39  ;;  %v10524_v5 = vpack.c.bf16 %v4773_v57, %v4771_v22  ;;  %5559 = vmatpush1.bf16.msra.mxu1 %v8363_v35  ;;  %v8429_v23 = vld [vmem:[#allocation11 + $0x36c] ss:$16 sps:$4 sm:$0xff]   ;;  %v8424_v62 = vld [vmem:[#allocation11 + $0x360] ss:$16 sps:$4 sm:$0xff]   ;;  %v8427_v52 = vld [vmem:[#allocation11 + $0x368] ss:$16 sps:$4 sm:$0xff]   ;;  %v7512_v22 = vcombine.low %v5637_v55, %v5637_v55 }
 0x3cd   :  { %7458 = vmatprep.subr.msk.bf16.mxu0 %vm5137_vm3, %v7455_v47  ;;  %7460 = vmatprep.subr.msk.bf16.mxu1 %vm5137_vm3, %v7457_v32  ;;  %v8432_v50 = vld [vmem:[#allocation11 + $0x344] ss:$16 sps:$4 sm:$0xff]   ;;  %v8435_v59 = vld [vmem:[#allocation11 + $0x34c] ss:$16 sps:$4 sm:$0xff]   ;;  %v8430_v1 = vld [vmem:[#allocation11 + $0x340] ss:$16 sps:$4 sm:$0xff]  }
 0x3ce   :  { %v8433_v14 = vld [vmem:[#allocation11 + $0x348] ss:$16 sps:$4 sm:$0xff]   ;;  %v8438_v27 = vld [vmem:[#allocation11 + $0x324] ss:$16 sps:$4 sm:$0xff]   ;;  %v8441_v58 = vld [vmem:[#allocation11 + $0x32c] ss:$16 sps:$4 sm:$0xff]  }
 0x3cf   :  { %v5636_v49 = vld [vmem:[#allocation11 + $0x4a0] sm:$0xff]  ;;  %v8439_v39 = vld [vmem:[#allocation11 + $0x328] ss:$16 sps:$4 sm:$0xff]   ;;  %v5898_v20 = vsel %vm5137_vm3, %v7512_v22, 0 }
 0x3d0   :  { %5524 = vmatpush2.bf16.msra.mxu0 %v5490_v45  ;;  %5567 = vmatpush2.bf16.msra.mxu1 %v5496_v11  ;;  %v8436_v31 = vld [vmem:[#allocation11 + $0x320] ss:$16 sps:$4 sm:$0xff]   ;;  %v7511_v35 = vcombine.high %v5636_v49, %v5636_v49  ;;  %v7510_v47 = vcombine.low %v5636_v49, %v5636_v49  ;;  %v8448_v32 = vld [vmem:[#allocation11 + $0x484] ss:$16 sps:$4 sm:$0xff]   ;;  %v8451_v45 = vld [vmem:[#allocation11 + $0x48c] ss:$16 sps:$4 sm:$0xff]  }
 0x3d1   :  { %5525 = vmatprep.subr.bf16.mxu0 %v8372_v42  ;;  %5568 = vmatprep.subr.bf16.mxu1 %v8375_v51  ;;  %v8446_v42 = vld [vmem:[#allocation11 + $0x480] ss:$16 sps:$4 sm:$0xff]   ;;  %v8449_v11 = vld [vmem:[#allocation11 + $0x488] ss:$16 sps:$4 sm:$0xff]   ;;  %v8454_v51 = vld [vmem:[#allocation11 + $0x464] ss:$16 sps:$4 sm:$0xff]  }
 0x3d2   :  { %v5892_v57 = vsel %vm5137_vm3, %v7510_v47, 0  ;;  %v8522_v22 = vld [vmem:[#allocation11 + $0x610] ss:$16 sps:$4 sm:$0xff]  }
 0x3d4   :  { %5526 = vmatpush2.bf16.msra.mxu0 %v8370_v3  ;;  %5569 = vmatpush2.bf16.msra.mxu1 %v8373_v6  ;;  %v8457_v3 = vld [vmem:[#allocation11 + $0x46c] ss:$16 sps:$4 sm:$0xff]   ;;  %v8452_v6 = vld [vmem:[#allocation11 + $0x460] ss:$16 sps:$4 sm:$0xff]  }
 0x3d5   :  { %5527 = vmatprep.subr.bf16.mxu0 %v8378_v7  ;;  %5570 = vmatprep.subr.bf16.mxu1 %v8381_v26  ;;  %v8455_v7 = vld [vmem:[#allocation11 + $0x468] ss:$16 sps:$4 sm:$0xff]   ;;  %v8460_v26 = vld [vmem:[#allocation11 + $0x444] ss:$16 sps:$4 sm:$0xff]  }
 0x3d8   :  { %5528 = vmatpush2.bf16.msra.mxu0 %v8376_v16  ;;  %5571 = vmatpush2.bf16.msra.mxu1 %v8379_v61  ;;  %v8463_v16 = vld [vmem:[#allocation11 + $0x44c] ss:$16 sps:$4 sm:$0xff]   ;;  %v8458_v61 = vld [vmem:[#allocation11 + $0x440] ss:$16 sps:$4 sm:$0xff]  }
 0x3d9   :  { %5529 = vmatprep.subr.bf16.mxu0 %v8384_v12  ;;  %5572 = vmatprep.subr.bf16.mxu1 %v8387_v29  ;;  %v8461_v12 = vld [vmem:[#allocation11 + $0x448] ss:$16 sps:$4 sm:$0xff]   ;;  %v8466_v29 = vld [vmem:[#allocation11 + $0x424] ss:$16 sps:$4 sm:$0xff]  }
 0x3dc   :  { %5530 = vmatpush2.bf16.msra.mxu0 %v8382_v60  ;;  %5573 = vmatpush2.bf16.msra.mxu1 %v8385_v53  ;;  %v8469_v60 = vld [vmem:[#allocation11 + $0x42c] ss:$16 sps:$4 sm:$0xff]   ;;  %v8464_v53 = vld [vmem:[#allocation11 + $0x420] ss:$16 sps:$4 sm:$0xff]  }
 0x3dd   :  { %5531 = vmatprep.subr.bf16.mxu0 %v8390_v10  ;;  %5574 = vmatprep.subr.bf16.mxu1 %v8393_v21  ;;  %v8467_v10 = vld [vmem:[#allocation11 + $0x428] ss:$16 sps:$4 sm:$0xff]   ;;  %v8472_v21 = vld [vmem:[#allocation11 + $0x594] ss:$16 sps:$4 sm:$0xff]  }
 0x3e0   :  { %5532 = vmatpush2.bf16.msra.mxu0 %v8388_v13  ;;  %5575 = vmatpush2.bf16.msra.mxu1 %v8391_v8  ;;  %v8475_v13 = vld [vmem:[#allocation11 + $0x59c] ss:$16 sps:$4 sm:$0xff]   ;;  %v8470_v8 = vld [vmem:[#allocation11 + $0x590] ss:$16 sps:$4 sm:$0xff]  }
 0x3e1   :  { %5903 = vmatprep.subr.bf16.mxu0 %v8396_v28  ;;  %5946 = vmatprep.subr.bf16.mxu1 %v8399_v25  ;;  %v8473_v28 = vld [vmem:[#allocation11 + $0x598] ss:$16 sps:$4 sm:$0xff]   ;;  %v8478_v25 = vld [vmem:[#allocation11 + $0x574] ss:$16 sps:$4 sm:$0xff]  }
 0x3e3   :  { %5534 = vmatmul.mubr.bf16.vlgmr.msra.gmra.mxu0 %v10434_v43  ;;  %5577 = vmatmul.mubr.bf16.vlgmr.msra.gmra.mxu1 %v10434_v43  ;;  %v8414_v43 = vld [vmem:[#allocation11 + $0x3a4] ss:$16 sps:$4 sm:$0xff]  }
 0x3e4   :  { %5904 = vmatpush1.bf16.msra.mxu0 %v8394_v46  ;;  %7515 = vmatprep.mubr.msk.bf16.mxu0 %vm5133_vm4, %v10510_v24  ;;  %v8481_v46 = vld [vmem:[#allocation11 + $0x57c] ss:$16 sps:$4 sm:$0xff]  }
 0x3e5   :  { %5947 = vmatpush1.bf16.msra.mxu1 %v8397_v9  ;;  %7517 = vmatprep.mubr.msk.bf16.mxu1 %vm5133_vm4, %v10510_v24  ;;  %v8418_v24 = vld [vmem:[#allocation11 + $0x380] ss:$16 sps:$4 sm:$0xff]  }
 0x3e6   :  { %5905 = vmatprep.subr.bf16.mxu0 %v8402_v36  ;;  %5948 = vmatprep.subr.bf16.mxu1 %v8405_v48  ;;  %v8476_v9 = vld [vmem:[#allocation11 + $0x570] ss:$16 sps:$4 sm:$0xff]   ;;  %v8479_v36 = vld [vmem:[#allocation11 + $0x578] ss:$16 sps:$4 sm:$0xff]   ;;  %v8484_v48 = vld [vmem:[#allocation11 + $0x554] ss:$16 sps:$4 sm:$0xff]  }
 0x3e8   :  { %5906 = vmatpush1.bf16.msra.mxu0 %v8400_v56  ;;  %v8487_v56 = vld [vmem:[#allocation11 + $0x55c] ss:$16 sps:$4 sm:$0xff]  }
 0x3e9   :  { %5949 = vmatpush1.bf16.msra.mxu1 %v8403_v54  ;;  %5907 = vmatprep.subr.bf16.mxu0 %v8408_v17  ;;  %v8482_v54 = vld [vmem:[#allocation11 + $0x550] ss:$16 sps:$4 sm:$0xff]   ;;  %v8485_v17 = vld [vmem:[#allocation11 + $0x558] ss:$16 sps:$4 sm:$0xff]  }
 0x3ea   :  { %5950 = vmatprep.subr.bf16.mxu1 %v8411_v30  ;;  %v8493_v30 = vld [vmem:[#allocation11 + $0x53c] ss:$16 sps:$4 sm:$0xff]  }
 0x3ec   :  { %5908 = vmatpush1.bf16.msra.mxu0 %v8406_v33  ;;  %v8488_v33 = vld [vmem:[#allocation11 + $0x530] ss:$16 sps:$4 sm:$0xff]  }
 0x3ed   :  { %5951 = vmatpush1.bf16.msra.mxu1 %v8409_v41  ;;  %5909 = vmatprep.subr.bf16.mxu0 %v8414_v43  ;;  %v8491_v41 = vld [vmem:[#allocation11 + $0x538] ss:$16 sps:$4 sm:$0xff]   ;;  %v8496_v43 = vld [vmem:[#allocation11 + $0x514] ss:$16 sps:$4 sm:$0xff]  }
 0x3ee   :  { %5952 = vmatprep.subr.bf16.mxu1 %v8417_v63  ;;  %v8499_v63 = vld [vmem:[#allocation11 + $0x51c] ss:$16 sps:$4 sm:$0xff]  }
 0x3f0   :  { %5910 = vmatpush1.bf16.msra.mxu0 %v8412_v18  ;;  %v8497_v18 = vld [vmem:[#allocation11 + $0x518] ss:$16 sps:$4 sm:$0xff]  }
 0x3f1   :  { %5953 = vmatpush1.bf16.msra.mxu1 %v8415_v38  ;;  %5911 = vmatprep.subr.bf16.mxu0 %v8420_v40  ;;  %v8502_v38 = vld [vmem:[#allocation11 + $0x4f4] ss:$16 sps:$4 sm:$0xff]   ;;  %v8505_v40 = vld [vmem:[#allocation11 + $0x4fc] ss:$16 sps:$4 sm:$0xff]  }
 0x3f2   :  { %5954 = vmatprep.subr.bf16.mxu1 %v8423_v44  ;;  %v8500_v44 = vld [vmem:[#allocation11 + $0x4f0] ss:$16 sps:$4 sm:$0xff]  }
 0x3f4   :  { %5912 = vmatpush1.bf16.msra.mxu0 %v8418_v24  ;;  %v8503_v24 = vld [vmem:[#allocation11 + $0x4f8] ss:$16 sps:$4 sm:$0xff]  }
 0x3f5   :  { %5955 = vmatpush1.bf16.msra.mxu1 %v8421_v15  ;;  %5913 = vmatprep.subr.bf16.mxu0 %v8426_v19  ;;  %v8508_v15 = vld [vmem:[#allocation11 + $0x4d4] ss:$16 sps:$4 sm:$0xff]   ;;  %v8511_v19 = vld [vmem:[#allocation11 + $0x4dc] ss:$16 sps:$4 sm:$0xff]  }
 0x3f6   :  { %5956 = vmatprep.subr.bf16.mxu1 %v8429_v23  ;;  %v8506_v23 = vld [vmem:[#allocation11 + $0x4d0] ss:$16 sps:$4 sm:$0xff]  }
 0x3f8   :  { %5914 = vmatpush1.bf16.msra.mxu0 %v8424_v62  ;;  %v8509_v62 = vld [vmem:[#allocation11 + $0x4d8] ss:$16 sps:$4 sm:$0xff]  }
 0x3f9   :  { %5957 = vmatpush1.bf16.msra.mxu1 %v8427_v52  ;;  %5915 = vmatprep.subr.bf16.mxu0 %v8432_v50  ;;  %v8514_v52 = vld [vmem:[#allocation11 + $0x4b4] ss:$16 sps:$4 sm:$0xff]   ;;  %v8517_v50 = vld [vmem:[#allocation11 + $0x4bc] ss:$16 sps:$4 sm:$0xff]  }
 0x3fa   :  { %5958 = vmatprep.subr.bf16.mxu1 %v8435_v59  ;;  %v6046_v59 = vld [vmem:[#allocation11 + $0x630] sm:$0xff] }
 0x3fb   :  { %v7566_v49 = vcombine.low %v6046_v59, %v6046_v59 }
 0x3fc   :  { %5916 = vmatpush1.bf16.msra.mxu0 %v8430_v1  ;;  %v6047_v1 = vld [vmem:[#allocation11 + $0x638] sm:$0xff] }
 0x3fd   :  { %5959 = vmatpush1.bf16.msra.mxu1 %v8433_v14  ;;  %5917 = vmatprep.subr.bf16.mxu0 %v8438_v27  ;;  %v8512_v14 = vld [vmem:[#allocation11 + $0x4b0] ss:$16 sps:$4 sm:$0xff]   ;;  %v8515_v27 = vld [vmem:[#allocation11 + $0x4b8] ss:$16 sps:$4 sm:$0xff]   ;;  %v7569_v55 = vcombine.high %v6047_v1, %v6047_v1 }
 0x3fe   :  { %5960 = vmatprep.subr.bf16.mxu1 %v8441_v58  ;;  %v7567_v58 = vcombine.high %v6046_v59, %v6046_v59 }
 0x400   :  { %5918 = vmatpush1.bf16.msra.mxu0 %v8436_v31  ;;  %v7568_v31 = vcombine.low %v6047_v1, %v6047_v1 }
 0x401   :  { %5961 = vmatpush1.bf16.msra.mxu1 %v8439_v39  ;;  %7514 = vmatprep.subr.msk.bf16.mxu0 %vm5137_vm3, %v7511_v35  ;;  %v6302_v39 = vsel %vm5137_vm3, %v7566_v49, 0  ;;  %v8524_v35 = vld [vmem:[#allocation11 + $0x614] ss:$16 sps:$4 sm:$0xff]  }
 0x402   :  { %7516 = vmatprep.subr.msk.bf16.mxu1 %vm5137_vm3, %v7513_v4  ;;  %v6308_v47 = vsel %vm5137_vm3, %v7568_v31, 0  ;;  %v8527_v4 = vld [vmem:[#allocation11 + $0x61c] ss:$16 sps:$4 sm:$0xff]  }
 0x404   :  { %5926 = vmatpush2.bf16.msra.mxu0 %v5892_v57  ;;  %v8525_v57 = vld [vmem:[#allocation11 + $0x618] ss:$16 sps:$4 sm:$0xff]  }
 0x405   :  { %5969 = vmatpush2.bf16.msra.mxu1 %v5898_v20  ;;  %5927 = vmatprep.subr.bf16.mxu0 %v8448_v32  ;;  %v8530_v32 = vld [vmem:[#allocation11 + $0x5f4] ss:$16 sps:$4 sm:$0xff]   ;;  %v8533_v20 = vld [vmem:[#allocation11 + $0x5fc] ss:$16 sps:$4 sm:$0xff]  }
 0x406   :  { %5970 = vmatprep.subr.bf16.mxu1 %v8451_v45  ;;  %v8528_v45 = vld [vmem:[#allocation11 + $0x5f0] ss:$16 sps:$4 sm:$0xff]  }
 0x408   :  { %5928 = vmatpush2.bf16.msra.mxu0 %v8446_v42  ;;  %v8531_v42 = vld [vmem:[#allocation11 + $0x5f8] ss:$16 sps:$4 sm:$0xff]  }
 0x409   :  { %5971 = vmatpush2.bf16.msra.mxu1 %v8449_v11  ;;  %5929 = vmatprep.subr.bf16.mxu0 %v8454_v51  ;;  %v8536_v11 = vld [vmem:[#allocation11 + $0x5d4] ss:$16 sps:$4 sm:$0xff]   ;;  %v8539_v51 = vld [vmem:[#allocation11 + $0x5dc] ss:$16 sps:$4 sm:$0xff]  }
 0x40a   :  { %5972 = vmatprep.subr.bf16.mxu1 %v8457_v3  ;;  %v8534_v3 = vld [vmem:[#allocation11 + $0x5d0] ss:$16 sps:$4 sm:$0xff]  }
 0x40c   :  { %5930 = vmatpush2.bf16.msra.mxu0 %v8452_v6  ;;  %v8537_v6 = vld [vmem:[#allocation11 + $0x5d8] ss:$16 sps:$4 sm:$0xff]  }
 0x40d   :  { %5973 = vmatpush2.bf16.msra.mxu1 %v8455_v7  ;;  %5931 = vmatprep.subr.bf16.mxu0 %v8460_v26  ;;  %v8542_v7 = vld [vmem:[#allocation11 + $0x5b4] ss:$16 sps:$4 sm:$0xff]   ;;  %v8545_v26 = vld [vmem:[#allocation11 + $0x5bc] ss:$16 sps:$4 sm:$0xff]  }
 0x40e   :  { %5974 = vmatprep.subr.bf16.mxu1 %v8463_v16  ;;  %v8540_v16 = vld [vmem:[#allocation11 + $0x5b0] ss:$16 sps:$4 sm:$0xff]  }
 0x410   :  { %5932 = vmatpush2.bf16.msra.mxu0 %v8458_v61  ;;  %v8543_v61 = vld [vmem:[#allocation11 + $0x5b8] ss:$16 sps:$4 sm:$0xff]  }
 0x411   :  { %5975 = vmatpush2.bf16.msra.mxu1 %v8461_v12  ;;  %5933 = vmatprep.subr.bf16.mxu0 %v8466_v29  ;;  %v8546_v12 = vld [vmem:[%s10671_s7 + $0x78] sm:$0xff]  }
 0x412   :  { %5976 = vmatprep.subr.bf16.mxu1 %v8469_v60  ;;  %v8547_v29 = vld [vmem:[%s10671_s7 + $0xf8] ss:$0 sps:$4 sm:$0x33]  }
 0x413   :  { %v8548_v60 = vld [vmem:[%s10671_s7 + $0x38] sm:$0xff]  }
 0x414   :  { %5934 = vmatpush2.bf16.msra.mxu0 %v8464_v53  ;;  %v8549_v53 = vld [vmem:[%s10671_s7 + $0xb8] sm:$0xff]  }
 0x415   :  { %5977 = vmatpush2.bf16.msra.mxu1 %v8467_v10  ;;  %6313 = vmatprep.subr.bf16.mxu0 %v8472_v21  ;;  %v8551_v10 = vld [vmem:[%s10671_s7 + $0xf0] sm:$0xff]  }
 0x416   :  { %6356 = vmatprep.subr.bf16.mxu1 %v8475_v13  ;;  %v8552_v21 = vld [vmem:[%s10671_s7 + $0x30] sm:$0xff]  }
 0x417   :  { %5936 = vmatmul.mubr.bf16.vlgmr.msra.gmra.mxu0 %v10504_v2  ;;  %v8553_v13 = vld [vmem:[%s10671_s7 + $0xb0] sm:$0xff]  }
 0x418   :  { %5979 = vmatmul.mubr.bf16.vlgmr.msra.gmra.mxu1 %v10504_v2  ;;  %6314 = vmatpush1.bf16.msra.mxu0 %v8470_v8  ;;  %v8490_v2 = vld [vmem:[#allocation11 + $0x534] ss:$16 sps:$4 sm:$0xff]  }
 0x419   :  { %7571 = vmatprep.mubr.msk.bf16.mxu0 %vm5133_vm4, %v10524_v5  ;;  %6357 = vmatpush1.bf16.msra.mxu1 %v8473_v28  ;;  %v8554_v8 = vld [vmem:[%s10671_s7 + $0x68] sm:$0xff]  }
 0x41a   :  { %7573 = vmatprep.mubr.msk.bf16.mxu1 %vm5133_vm4, %v10524_v5  ;;  %6315 = vmatprep.subr.bf16.mxu0 %v8478_v25  ;;  %v8494_v5 = vld [vmem:[#allocation11 + $0x510] ss:$16 sps:$4 sm:$0xff]   ;;  %v8555_v28 = vld [vmem:[%s10671_s7 + $0xe8] sm:$0xff]  }
 0x41b   :  { %6358 = vmatprep.subr.bf16.mxu1 %v8481_v46  ;;  %v8556_v25 = vld [vmem:[%s10671_s7 + $0x28] sm:$0xff]  }
 0x41c   :  { %6316 = vmatpush1.bf16.msra.mxu0 %v8476_v9  ;;  %v8557_v46 = vld [vmem:[%s10671_s7 + $0xa8] sm:$0xff]   ;;  %v8558_v9 = vld [vmem:[%s10671_s7 + $0x60] sm:$0xff]  }
 0x41d   :  { %6359 = vmatpush1.bf16.msra.mxu1 %v8479_v36  ;;  %6317 = vmatprep.subr.bf16.mxu0 %v8484_v48  ;;  %v8559_v36 = vld [vmem:[%s10671_s7 + $0xe0] sm:$0xff]  }
 0x41e   :  { %6360 = vmatprep.subr.bf16.mxu1 %v8487_v56  ;;  %v8560_v48 = vld [vmem:[%s10671_s7 + $0x20] sm:$0xff]  }
 0x41f   :  { %v8561_v56 = vld [vmem:[%s10671_s7 + $0xa0] sm:$0xff]  }
 0x420   :  { %6318 = vmatpush1.bf16.msra.mxu0 %v8482_v54  ;;  %v8562_v54 = vld [vmem:[%s10671_s7 + $0x58] sm:$0xff]  }
 0x421   :  { %6361 = vmatpush1.bf16.msra.mxu1 %v8485_v17  ;;  %6319 = vmatprep.subr.bf16.mxu0 %v8490_v2  ;;  %v8563_v17 = vld [vmem:[%s10671_s7 + $0xd8] sm:$0xff]  }
 0x422   :  { %6362 = vmatprep.subr.bf16.mxu1 %v8493_v30  ;;  %v8564_v2 = vld [vmem:[%s10671_s7 + $0x18] sm:$0xff]  }
 0x423   :  { %v8565_v30 = vld [vmem:[%s10671_s7 + $0x98] sm:$0xff]  }
 0x424   :  { %6320 = vmatpush1.bf16.msra.mxu0 %v8488_v33  ;;  %v8566_v33 = vld [vmem:[%s10671_s7 + $0x50] sm:$0xff]  }
 0x425   :  { %6363 = vmatpush1.bf16.msra.mxu1 %v8491_v41  ;;  %6321 = vmatprep.subr.bf16.mxu0 %v8496_v43  ;;  %v8567_v41 = vld [vmem:[%s10671_s7 + $0xd0] sm:$0xff]  }
 0x426   :  { %6364 = vmatprep.subr.bf16.mxu1 %v8499_v63  ;;  %v8568_v43 = vld [vmem:[%s10671_s7 + $0x10] sm:$0xff]  }
 0x427   :  { %v8569_v63 = vld [vmem:[%s10671_s7 + $0x90] sm:$0xff]  }
 0x428   :  { %6322 = vmatpush1.bf16.msra.mxu0 %v8494_v5  ;;  %v8570_v5 = vld [vmem:[%s10671_s7 + $0x48] sm:$0xff]  }
 0x429   :  { %6365 = vmatpush1.bf16.msra.mxu1 %v8497_v18  ;;  %6323 = vmatprep.subr.bf16.mxu0 %v8502_v38  ;;  %v8571_v18 = vld [vmem:[%s10671_s7 + $0xc8] sm:$0xff]  }
 0x42a   :  { %6366 = vmatprep.subr.bf16.mxu1 %v8505_v40  ;;  %v8572_v38 = vld [vmem:[%s10671_s7 + $0x8] sm:$0xff]  }
 0x42b   :  { %v8573_v40 = vld [vmem:[%s10671_s7 + $0x88] sm:$0xff]  }
 0x42c   :  { %6324 = vmatpush1.bf16.msra.mxu0 %v8500_v44  ;;  %v8574_v44 = vld [vmem:[%s10671_s7 + $0x40] sm:$0xff]  }
 0x42d   :  { %6367 = vmatpush1.bf16.msra.mxu1 %v8503_v24  ;;  %6325 = vmatprep.subr.bf16.mxu0 %v8508_v15  ;;  %v8575_v24 = vld [vmem:[%s10671_s7 + $0xc0] sm:$0xff]  }
 0x42e   :  { %6368 = vmatprep.subr.bf16.mxu1 %v8511_v19  ;;  %v8576_v15 = vld [vmem:[%s10671_s7] sm:$0xff]  }
 0x42f   :  { %v8577_v19 = vld [vmem:[%s10671_s7 + $0x80] sm:$0xff]  }
 0x430   :  { %6326 = vmatpush1.bf16.msra.mxu0 %v8506_v23 }
 0x431   :  { %6369 = vmatpush1.bf16.msra.mxu1 %v8509_v62  ;;  %6327 = vmatprep.subr.bf16.mxu0 %v8514_v52 }
 0x432   :  { %6370 = vmatprep.subr.bf16.mxu1 %v8517_v50 }
 0x434   :  { %6328 = vmatpush1.bf16.msra.mxu0 %v8512_v14 }
 0x435   :  { %6371 = vmatpush1.bf16.msra.mxu1 %v8515_v27  ;;  %7570 = vmatprep.subr.msk.bf16.mxu0 %vm5137_vm3, %v7567_v58 }
 0x436   :  { %7572 = vmatprep.subr.msk.bf16.mxu1 %vm5137_vm3, %v7569_v55 }
 0x438   :  { %6336 = vmatpush2.bf16.msra.mxu0 %v6302_v39 }
 0x439   :  { %6379 = vmatpush2.bf16.msra.mxu1 %v6308_v47  ;;  %6337 = vmatprep.subr.bf16.mxu0 %v8524_v35 }
 0x43a   :  { %6380 = vmatprep.subr.bf16.mxu1 %v8527_v4 }
 0x43c   :  { %6338 = vmatpush2.bf16.msra.mxu0 %v8522_v22 }
 0x43d   :  { %6381 = vmatpush2.bf16.msra.mxu1 %v8525_v57  ;;  %6339 = vmatprep.subr.bf16.mxu0 %v8530_v32 }
 0x43e   :  { %6382 = vmatprep.subr.bf16.mxu1 %v8533_v20 }
 0x440   :  { %6340 = vmatpush2.bf16.msra.mxu0 %v8528_v45 }
 0x441   :  { %6383 = vmatpush2.bf16.msra.mxu1 %v8531_v42  ;;  %6341 = vmatprep.subr.bf16.mxu0 %v8536_v11 }
 0x442   :  { %6384 = vmatprep.subr.bf16.mxu1 %v8539_v51  ;;  %v6407_v51 = vld [vmem:[#allocation13] sm:$0xf] }
 0x444   :  { %6342 = vmatpush2.bf16.msra.mxu0 %v8534_v3  ;;  %v11012_v3 = vld [vmem:[#allocation69_spill] sm:$0xff] }
 0x445   :  { %6385 = vmatpush2.bf16.msra.mxu1 %v8537_v6  ;;  %6343 = vmatprep.subr.bf16.mxu0 %v8542_v7  ;;  %v6423_v6 = vsub.s32 3, %v11012_v3 }
 0x446   :  { %6386 = vmatprep.subr.bf16.mxu1 %v8545_v26 }
 0x448   :  { %6344 = vmatpush2.bf16.msra.mxu0 %v8540_v16  ;;  %v6419_v16 = vsub.s32 2, %v11012_v3 }
 0x449   :  { %6387 = vmatpush2.bf16.msra.mxu1 %v8543_v61  ;;  %7608 = vmatprep.subr.bf16.mxu0 %v8546_v12 }
 0x44a   :  { %7652 = vmatprep.subr.msk.bf16.mxu1 %vm6704_vm5, %v8547_v29  ;;  %v6412_v29 = vrot.slane %v6407_v51, %v10991_v0 }
 0x44b   :  { %6346 = vmatmul.mubr.bf16.vlgmr.msra.gmra.mxu0 %v10522_v37 }
 0x44c   :  { %6389 = vmatmul.mubr.bf16.vlgmr.msra.gmra.mxu1 %v10522_v37  ;;  %v8550_v37 = vld [vmem:[%s10671_s7 + $0x70] sm:$0xff]   ;;  %7609 = vmatpush3.bf16.msra.mxu0 %v8548_v60  ;;  %s8790_s7 = smov [#allocation16]  }
 0x44d   :  { %7631 = vmatpush3.bf16.msra.mxu1 %v8549_v53  ;;  %7610 = vmatprep.subr.bf16.mxu0 %v8550_v37  ;;  %v6416_v53 = vrot.slane %v6407_v51, %v10992_v34  ;;  %s6820_s13 = sshll.u32 %s8790_s7, 4  ;;  %s6821_s13 = int_to_ptr.vmem [resolvable:$true] %s6820_s13 }
 0x44e   :  { %7632 = vmatprep.subr.bf16.mxu1 %v8551_v10  ;;  %s8746_s14 = scalar_lea.vmem %s6821_s13, 256  ;;  %p8751_p13 = scmp.lt.s32.totalorder %s6821_s13, %s6821_s13 }
 0x44f   :  { %p8747_p12 = scmp.ne.s32.totalorder %s6821_s13, %s8746_s14  ;;  %p8752_p0 = scmp.lt.s32.totalorder %s8746_s14, %s8746_s14 }
 0x450   :  { %7611 = vmatpush3.bf16.msra.mxu0 %v8552_v21 }
 0x451   :  { %7633 = vmatpush3.bf16.msra.mxu1 %v8553_v13  ;;  %7612 = vmatprep.subr.bf16.mxu0 %v8554_v8  ;;  %v6424_v8 = vrot.slane %v6407_v51, %v6423_v6  ;;  %p8753_p1 = por %p8752_p0, %p8751_p13 }
 0x452   :  { %7634 = vmatprep.subr.bf16.mxu1 %v8555_v28 }
 0x453   :  { %p8754_p2 = pnand %p8753_p1, %p8747_p12 }
 0x454   :  { %7613 = vmatpush3.bf16.msra.mxu0 %v8556_v25 }
 0x455   :  { %7635 = vmatpush3.bf16.msra.mxu1 %v8557_v46  ;;  %7614 = vmatprep.subr.bf16.mxu0 %v8558_v9 }
 0x456   :  { %7636 = vmatprep.subr.bf16.mxu1 %v8559_v36 }
 0x458   :  { %7615 = vmatpush3.bf16.msra.mxu0 %v8560_v48 }
 0x459   :  { %7637 = vmatpush3.bf16.msra.mxu1 %v8561_v56  ;;  %7616 = vmatprep.subr.bf16.mxu0 %v8562_v54 }
 0x45a   :  { %7638 = vmatprep.subr.bf16.mxu1 %v8563_v17 }
 0x45c   :  { %7617 = vmatpush3.bf16.msra.mxu0 %v8564_v2 }
 0x45d   :  { %7639 = vmatpush3.bf16.msra.mxu1 %v8565_v30  ;;  %7618 = vmatprep.subr.bf16.mxu0 %v8566_v33 }
 0x45e   :  { %7640 = vmatprep.subr.bf16.mxu1 %v8567_v41 }
 0x460   :  { %7619 = vmatpush3.bf16.msra.mxu0 %v8568_v43 }
 0x461   :  { %7641 = vmatpush3.bf16.msra.mxu1 %v8569_v63  ;;  %7620 = vmatprep.subr.bf16.mxu0 %v8570_v5 }
 0x462   :  { %7642 = vmatprep.subr.bf16.mxu1 %v8571_v18 }
 0x464   :  { %7621 = vmatpush3.bf16.msra.mxu0 %v8572_v38 }
 0x465   :  { %7643 = vmatpush3.bf16.msra.mxu1 %v8573_v40  ;;  %7622 = vmatprep.subr.bf16.mxu0 %v8574_v44  ;;  %v6420_v44 = vrot.slane %v6407_v51, %v6419_v16 }
 0x466   :  { %7644 = vmatprep.subr.bf16.mxu1 %v8575_v24 }
 0x468   :  { %7623 = vmatpush3.bf16.msra.mxu0 %v8576_v15 }
 0x469   :  { %7645 = vmatpush3.bf16.msra.mxu1 %v8577_v19 }
 0x46f   :  { %v5184_v23 = vpop.f32.mrf.mxu0  ;;  %v5227_v62 = vpop.f32.mrf.mxu1 }
 0x471   :  { %v5186_v52 = vpop.f32.mrf.mxu0  ;;  %v5229_v50 = vpop.f32.mrf.mxu1 }
 0x473   :  { %v5188_v59 = vpop.f32.mrf.mxu0  ;;  %v5231_v1 = vpop.f32.mrf.mxu1 }
 0x475   :  { %v5190_v14 = vpop.f32.mrf.mxu0  ;;  %v5233_v27 = vpop.f32.mrf.mxu1 }
 0x4a3   :  { %v5535_v58 = vpop.f32.mrf.mxu0  ;;  %v5578_v49 = vpop.f32.mrf.mxu1 }
 0x4a4   :  { %v5536_v37 = vadd.f32 %v5535_v58, %v5184_v23  ;;  %v5579_v28 = vadd.f32 %v5578_v49, %v5227_v62 }
 0x4a5   :  { %v5537_v55 = vpop.f32.mrf.mxu0  ;;  %v5580_v31 = vpop.f32.mrf.mxu1 }
 0x4a6   :  { %v5538_v61 = vadd.f32 %v5537_v55, %v5186_v52  ;;  %v5581_v10 = vadd.f32 %v5580_v31, %v5229_v50 }
 0x4a7   :  { %v5539_v39 = vpop.f32.mrf.mxu0  ;;  %v5582_v35 = vpop.f32.mrf.mxu1 }
 0x4a8   :  { %v5540_v12 = vadd.f32 %v5539_v39, %v5188_v59  ;;  %v5583_v21 = vadd.f32 %v5582_v35, %v5231_v1 }
 0x4a9   :  { %v5541_v47 = vpop.f32.mrf.mxu0  ;;  %v5584_v4 = vpop.f32.mrf.mxu1 }
 0x4aa   :  { %v5542_v25 = vadd.f32 %v5541_v47, %v5190_v14  ;;  %v5585_v48 = vadd.f32 %v5584_v4, %v5233_v27  ;;  %v7574_v47 = vld [vmem:[#allocation14] ss:$0 sm:$0xff] }
 0x4d7   :  { %v5937_v22 = vpop.f32.mrf.mxu0 }
 0x4d8   :  { %v5980_v57 = vpop.f32.mrf.mxu1  ;;  %v5989_v56 = vadd.f32 %v5937_v22, %v5536_v37 }
 0x4d9   :  { %v5939_v32 = vpop.f32.mrf.mxu0  ;;  %v5991_v30 = vadd.f32 %v5980_v57, %v5579_v28 }
 0x4da   :  { %v5982_v20 = vpop.f32.mrf.mxu1  ;;  %v5990_v46 = vadd.f32 %v5939_v32, %v5538_v61 }
 0x4db   :  { %v5941_v45 = vpop.f32.mrf.mxu0  ;;  %v5992_v54 = vadd.f32 %v5982_v20, %v5581_v10 }
 0x4dc   :  { %v5984_v42 = vpop.f32.mrf.mxu1  ;;  %v5993_v9 = vadd.f32 %v5941_v45, %v5540_v12 }
 0x4dd   :  { %v5943_v11 = vpop.f32.mrf.mxu0  ;;  %v5995_v17 = vadd.f32 %v5984_v42, %v5583_v21 }
 0x4de   :  { %v5986_v7 = vpop.f32.mrf.mxu1  ;;  %v5994_v0 = vadd.f32 %v5943_v11, %v5542_v25 }
 0x4df   :  { %v5996_v43 = vadd.f32 %v5986_v7, %v5585_v48 }
 0x50b   :  { %v6347_v26 = vpop.f32.mrf.mxu0 }
 0x50c   :  { %v6390_v60 = vpop.f32.mrf.mxu1  ;;  %v6399_v63 = vadd.f32 %v6347_v26, %v5989_v56 }
 0x50d   :  { %v6349_v13 = vpop.f32.mrf.mxu0  ;;  %v6401_v40 = vadd.f32 %v6390_v60, %v5991_v30 }
 0x50e   :  { %v6392_v36 = vpop.f32.mrf.mxu1  ;;  %v6400_v33 = vadd.f32 %v6349_v13, %v5990_v46  ;;  %v6429_v59 = vadd.f32 %v6412_v29, %v6399_v63 }
 0x50f   :  { %v6351_v2 = vpop.f32.mrf.mxu0  ;;  %v6402_v5 = vadd.f32 %v6392_v36, %v5992_v54  ;;  %v6431_v27 = vadd.f32 %v6420_v44, %v6401_v40 }
 0x510   :  { %v6403_v41 = vadd.f32 %v6351_v2, %v5993_v9  ;;  %v6394_v34 = vpop.f32.mrf.mxu1  ;;  %v6430_v62 = vadd.f32 %v6416_v53, %v6400_v33 }
 0x511   :  { %v6405_v18 = vadd.f32 %v6394_v34, %v5995_v17  ;;  %v6353_v38 = vpop.f32.mrf.mxu0  ;;  %v6432_v1 = vadd.f32 %v6424_v8, %v6402_v5 }
 0x512   :  { %v6404_v24 = vadd.f32 %v6353_v38, %v5994_v0  ;;  %v6396_v15 = vpop.f32.mrf.mxu1  ;;  %v6433_v19 = vadd.f32 %v6412_v29, %v6403_v41 }
 0x513   :  { %v6406_v23 = vadd.f32 %v6396_v15, %v5996_v43  ;;  %v6435_v52 = vadd.f32 %v6420_v44, %v6405_v18 }
 0x514   :  { %v6434_v50 = vadd.f32 %v6416_v53, %v6404_v24  ;;  %v6437_v49 = vpack.c.bf16 %v6433_v19, %v6429_v59 }
 0x515   :  { %v6436_v14 = vadd.f32 %v6424_v8, %v6406_v23  ;;  %v6439_v31 = vpack.c.bf16 %v6435_v52, %v6431_v27 }
 0x516   :  { %v6438_v58 = vpack.c.bf16 %v6434_v50, %v6430_v62 }
 0x517   :  { %v6440_v55 = vpack.c.bf16 %v6436_v14, %v6432_v1 }
 0x518   :  { %6740 = vmatprep.mubr.bf16.mxu0 %v6438_v58 }
 0x519   :  { %7607 = vmatprep.mubr.msk.bf16.mxu1 %vm6700_vm6, %v6440_v55  ;;  %6741 = vmatmul.mubr.bf16.vlgmr.msra.gmra.mxu0 %v6437_v49 }
 0x51a   :  { %6782 = vmatmul.mubr.bf16.vlgmr.msra.gmra.mxu1 %v6439_v31 }
 0x5d9   :  { %v7624_v39 = vpop.f32.mrf.mxu0 }
 0x5da   :  { %v7646_v35 = vpop.f32.mrf.mxu1 }
 0x5db   :  { %v7625_v4 = vpop.f32.mrf.mxu0 }
 0x5dc   :  { %v7626_v22 = vadd.f32 %v7625_v4, %v7624_v39  ;;  %v7647_v57 = vpop.f32.mrf.mxu1 }
 0x5dd   :  { %v7627_v32 = vpop.f32.mrf.mxu0  ;;  %v7648_v45 = vadd.f32 %v7647_v57, %v7646_v35 }
 0x5de   :  { %v6743_v20 = vadd.f32 %v7626_v22, %v7574_v47  ;;  %v7649_v42 = vpop.f32.mrf.mxu1 }
 0x5df   :  { %v7628_v11 = vpop.f32.mrf.mxu0 }
 0x5e0   :  { %v7629_v51 = vadd.f32 %v7628_v11, %v7627_v32  ;;  %v7650_v3 = vpop.f32.mrf.mxu1  ;;  %v6784_v6 = vadd.f32 %v7648_v45, %v6743_v20 }
 0x5e1   :  { %v7651_v26 = vadd.f32 %v7650_v3, %v7649_v42 }
 0x5e2   :  { %v6746_v7 = vadd.f32 %v7629_v51, %v7574_v47  ;;  %v6791_v16 = vsel %vm6790_vm7, %v6784_v6, -inf }
 0x5e3   :  { %6792 = vmax.xlane.f32.xlu0 %v6791_v16 }
 0x5e4   :  { %v6787_v61 = vadd.f32 %v7651_v26, %v6746_v7 }
 0x5e6   :  { %v6794_v12 = vsel %vm6790_vm7, %v6787_v61, -inf }
 0x5e7   :  { %6795 = vmax.xlane.f32.xlu0 %v6794_v12 }
 0x66c   :  { %v6793_v29 = vpop.xlane.xlu0 %6792 }
 0x66d   :  { %v6797_v60 = vsub.f32 %v6784_v6, %v6793_v29 }
 0x66f   :  { %v6799_v53 = vmul.f32 1.442695, %v6797_v60 }
 0x670   :  { %v6796_v37 = vpop.xlane.xlu0 %6795 }
 0x671   :  { %8578 = vpow2.f32 %v6799_v53  ;;  %v6798_v10 = vsub.f32 %v6787_v61, %v6796_v37 }
 0x673   :  { %v6801_v21 = vmul.f32 1.442695, %v6798_v10 }
 0x675   :  { %8580 = vpow2.f32 %v6801_v21 }
 0x67e   :  { %v8579_v13 = vpop.eup %8578 }
 0x67f   :  { %v6803_v8 = vsel %vm6790_vm7, %v8579_v13, 0.0 }
 0x680   :  { %6804 = vadd.xlane.f32.xlu1 %v6803_v8 }
 0x682   :  { %v8581_v28 = vpop.eup %8580 }
 0x683   :  { %v6806_v25 = vsel %vm6790_vm7, %v8581_v28, 0.0 }
 0x684   :  { %6807 = vadd.xlane.f32.xlu1 %v6806_v25 }
 0x709   :  { %v6805_v46 = vpop.xlane.xlu1 %6804 }
 0x70a   :  { %8582 = vrcp.f32 %v6805_v46 }
 0x70d   :  { %v6808_v9 = vpop.xlane.xlu1 %6807 }
 0x70e   :  { %8584 = vrcp.f32 %v6808_v9 }
 0x717   :  { %v8583_v36 = vpop.eup %8582 }
 0x718   :  { %v6810_v48 = vmul.f32 %v8583_v36, %v8579_v13 }
 0x71a   :  { %6813 = vst.msk [vmem:[#allocation16] sm:$0xff] %vm6790_vm7, %v6810_v48 }
 0x71b   :  { %v8585_v56 = vpop.eup %8584 }
 0x71c   :  { %v6812_v54 = vmul.f32 %v8585_v56, %v8581_v28 }
 0x71e   :  { %6814 = vst.msk [vmem:[#allocation16 + $0x8] sm:$0xff] %vm6790_vm7, %v6812_v54 }
 0x71f   :  { %8757 = shalt.err (!%p8754_p2)
}
 0x720   :  { %6826 = dma.vmem_to_hbm [thread:$0]  %s6821_s13, 256, %s10673_s9, [#allocation4], %s8784_s3, %s8784_s3, %s8785_s28  }
 0x721   :  { %8776 = dma.done.wait [#allocation4], 256  }
 0x722   :  { %8777 = vsyncadd [#allocation4], 4294967040 }
 0x723   :  { %6830 = vsyncpa [#allocation3], 1 }
 0x724   :  { %6831 = vsyncpa [#allocation6], 1 }
 0x725   :  { %6832 = vsyncpa [#allocation9], 1 }
 0x726   :  { %6833 = vsyncpa [#allocation12], 1 }
 0x727   :  { %6834 = vsyncpa [#allocation15], 1 }
 0x728   :  { %6835 = vsyncpa [#allocation4], 1 }

</bundles_post_ra>
